<compile_context>
chip_gen: v6e
topology: v6e:2x2x1
jax: 0.10.0
libtpu: 0.0.40
codegen_flags: <defaults>
</compile_context>

<pallas_src>
import jax
import jax.numpy as jnp
from jax import lax
from jax.experimental import pallas as pl
from jax.experimental.pallas import tpu as pltpu

EPS = 1e-8


def _safe_div(n, d):
    # div_with_small_value (exact divide, clamped denominator)
    return n / jnp.where(d > EPS, d, EPS)


# --------------------------------- kernel -----------------------------------

def matching_kernel(p_ref, h_ref, w_s1mp_ref, w_cosa_ref, w_cosb_ref,
                    mv_p_ref, mv_h_ref):
    TB, Lp, H2 = p_ref.shape
    Lh = h_ref.shape[1]
    H = H2 // 2
    P6 = w_cosa_ref.shape[1]          # 6 * num_perspective
    P2 = P6 // 3                      # 2 * num_perspective

    p_all = p_ref[...]                # (TB, Lp, 2H)
    h_all = h_ref[...]                # (TB, Lh, 2H)
    w_s1mp = w_s1mp_ref[...]          # (2H, 8P)  [6 cos-group s1 cols | 2 mp cols]
    w_cosa = w_cosa_ref[...]          # (4H, 6P)  block-diag: full_fw/bw, attmean_fw/bw
    w_cosb = w_cosb_ref[...]          # (2H, 6P)  block-diag: attmax_fw/bw

    p_fw, p_bw = p_all[..., :H], p_all[..., H:]
    h_fw, h_bw = h_all[..., :H], h_all[..., H:]

    rows_p = TB * Lp
    rows_h = TB * Lh

    # ---- squared inputs + pairwise products -> ONE fused 128-lane matmul ----
    sq_p3 = p_all * p_all                                        # (TB, Lp, 2H)
    sq_h3 = h_all * h_all                                        # (TB, Lh, 2H)
    pair = (p_all[:, :, None, :] * h_all[:, None, :, :]).reshape(TB * Lp * Lh, H2)

    s1mp_in = jnp.concatenate(
        [sq_p3.reshape(rows_p, H2), sq_h3.reshape(rows_h, H2), pair], axis=0)
    s1mp_out = jnp.dot(s1mp_in, w_s1mp, preferred_element_type=jnp.float32)

    s1_p6 = s1mp_out[:rows_p, :P6]                               # (TB*Lp, 6P)
    s1_h6 = s1mp_out[rows_p:rows_p + rows_h, :P6]                # (TB*Lh, 6P)
    norm_mp_p = jnp.sqrt(s1mp_out[:rows_p, P6:])                 # (TB*Lp, 2P)
    norm_mp_h = jnp.sqrt(s1mp_out[rows_p:rows_p + rows_h, P6:])  # (TB*Lh, 2P)
    num_mp = s1mp_out[rows_p + rows_h:, P6:]                     # (TB*Lp*Lh, 2P)

    # ---- pairwise maxpool matching (symmetric: one orientation only) --------
    den_mp = (norm_mp_p.reshape(TB, Lp, 1, P2)
              * norm_mp_h.reshape(TB, 1, Lh, P2)).reshape(TB * Lp * Lh, P2)
    inv_den = pl.reciprocal(jnp.where(den_mp > EPS, den_mp, EPS), approx=True)
    cos_mp = (num_mp * inv_den).reshape(TB, Lp, Lh, P2)
    mv_p_max = jnp.max(cos_mp, axis=2).reshape(rows_p, P2)       # (TB*Lp, 2P)
    mv_h_max = jnp.max(cos_mp, axis=1).reshape(rows_h, P2)       # (TB*Lh, 2P)

    # ---- attention matrices (batched MXU matmuls, EUP rsqrt denominators) ---
    np2_fw = jnp.sum(sq_p3[..., :H], axis=-1, keepdims=True)     # (TB, Lp, 1)
    np2_bw = jnp.sum(sq_p3[..., H:], axis=-1, keepdims=True)
    nh2_fw = jnp.sum(sq_h3[..., :H], axis=-1, keepdims=True).reshape(TB, 1, Lh)
    nh2_bw = jnp.sum(sq_h3[..., H:], axis=-1, keepdims=True).reshape(TB, 1, Lh)

    raw_fw = jnp.einsum('bik,bjk->bij', p_fw, h_fw,
                        preferred_element_type=jnp.float32)      # (TB, Lp, Lh)
    raw_bw = jnp.einsum('bik,bjk->bij', p_bw, h_bw,
                        preferred_element_type=jnp.float32)
    att_fw = raw_fw * lax.rsqrt(jnp.maximum(np2_fw * nh2_fw, EPS * EPS))
    att_bw = raw_bw * lax.rsqrt(jnp.maximum(np2_bw * nh2_bw, EPS * EPS))

    # attentive-mean vectors (exact clamped divide; scale cancels in cosine)
    am_h_fw = _safe_div(
        jnp.einsum('bij,bjh->bih', att_fw, h_fw, preferred_element_type=jnp.float32),
        jnp.sum(att_fw, axis=2, keepdims=True))                  # (TB, Lp, H)
    am_h_bw = _safe_div(
        jnp.einsum('bij,bjh->bih', att_bw, h_bw, preferred_element_type=jnp.float32),
        jnp.sum(att_bw, axis=2, keepdims=True))
    att_fw_t = jnp.swapaxes(att_fw, 1, 2)                        # (TB, Lh, Lp)
    att_bw_t = jnp.swapaxes(att_bw, 1, 2)
    am_p_fw = _safe_div(
        jnp.einsum('bji,bih->bjh', att_fw_t, p_fw, preferred_element_type=jnp.float32),
        jnp.sum(att_fw_t, axis=2, keepdims=True))                # (TB, Lh, H)
    am_p_bw = _safe_div(
        jnp.einsum('bji,bih->bjh', att_bw_t, p_bw, preferred_element_type=jnp.float32),
        jnp.sum(att_bw_t, axis=2, keepdims=True))
    am_h_cat = jnp.concatenate([am_h_fw, am_h_bw], axis=-1)      # (TB, Lp, 2H)
    am_p_cat = jnp.concatenate([am_p_fw, am_p_bw], axis=-1)      # (TB, Lh, 2H)

    # max-attentive vectors: fw/bw packed into 2H-lane broadcast + reduce
    att_cat = jnp.concatenate(
        [jnp.broadcast_to(att_fw[..., None], (TB, Lp, Lh, H)),
         jnp.broadcast_to(att_bw[..., None], (TB, Lp, Lh, H))], axis=-1)
    ax_h_cat = jnp.max(att_cat * h_all[:, None, :, :], axis=2)   # (TB, Lp, 2H)
    ax_p_cat = jnp.max(att_cat * p_all[:, :, None, :], axis=1)   # (TB, Lh, 2H)

    # full-match anchor vectors packed as [fw | bw]
    full_p = jnp.broadcast_to(
        jnp.concatenate([h_fw[:, Lh - 1:Lh, :], h_bw[:, 0:1, :]], axis=-1),
        (TB, Lp, H2))                                            # (TB, Lp, 2H)
    full_h = jnp.broadcast_to(
        jnp.concatenate([p_fw[:, Lp - 1:Lp, :], p_bw[:, 0:1, :]], axis=-1),
        (TB, Lh, H2))                                            # (TB, Lh, 2H)

    # ---- dot / s2 terms of the six cosine groups: K=4H + K=2H accumulation --
    dot_a_p = jnp.concatenate([p_all * full_p, p_all * am_h_cat], axis=-1)
    s2_a_p = jnp.concatenate([full_p * full_p, am_h_cat * am_h_cat], axis=-1)
    dot_a_h = jnp.concatenate([h_all * full_h, h_all * am_p_cat], axis=-1)
    s2_a_h = jnp.concatenate([full_h * full_h, am_p_cat * am_p_cat], axis=-1)
    big_a = jnp.concatenate(
        [dot_a_p.reshape(rows_p, 4 * H), s2_a_p.reshape(rows_p, 4 * H),
         dot_a_h.reshape(rows_h, 4 * H), s2_a_h.reshape(rows_h, 4 * H)], axis=0)
    big_b = jnp.concatenate(
        [(p_all * ax_h_cat).reshape(rows_p, H2),
         (ax_h_cat * ax_h_cat).reshape(rows_p, H2),
         (h_all * ax_p_cat).reshape(rows_h, H2),
         (ax_p_cat * ax_p_cat).reshape(rows_h, H2)], axis=0)
    big_out = (jnp.dot(big_a, w_cosa, preferred_element_type=jnp.float32)
               + jnp.dot(big_b, w_cosb, preferred_element_type=jnp.float32))

    dot_p6 = big_out[:rows_p]
    s2_p6 = big_out[rows_p:2 * rows_p]
    dot_h6 = big_out[2 * rows_p:2 * rows_p + rows_h]
    s2_h6 = big_out[2 * rows_p + rows_h:]

    cos_p6 = dot_p6 * lax.rsqrt(jnp.maximum(s1_p6 * s2_p6, EPS * EPS))
    cos_h6 = dot_h6 * lax.rsqrt(jnp.maximum(s1_h6 * s2_h6, EPS * EPS))

    # final lane order: [full_fw, full_bw, max_fw, max_bw,
    #                    attmean_fw, attmean_bw, attmax_fw, attmax_bw]
    out_p = jnp.concatenate([cos_p6[:, :P2], mv_p_max, cos_p6[:, P2:]], axis=1)
    out_h = jnp.concatenate([cos_h6[:, :P2], mv_h_max, cos_h6[:, P2:]], axis=1)
    mv_p_ref[...] = out_p.reshape(TB, Lp, 4 * P2)
    mv_h_ref[...] = out_h.reshape(TB, Lh, 4 * P2)


# -------------------------------- wrapper -----------------------------------

def _build_weight_blocks(weights):
    """weights (8,P,H) -> (w_s1mp (2H,8P), w_cos_a (4H,6P), w_cos_b (2H,6P))."""
    _, P, H = weights.shape
    wsq = weights.astype(jnp.float32) ** 2          # only w^2 is ever needed
    z = jnp.zeros((H, P), jnp.float32)

    def col(top, bot):
        return jnp.concatenate([top, bot], axis=0)  # (2H, P)

    # s1 routing for the 6 cosine groups (even groups read the fw half of
    # [v_fw^2 | v_bw^2], odd groups the bw half) fused with the maxpool cols.
    w_s1mp = jnp.concatenate(
        [col(wsq[0].T, z), col(z, wsq[1].T),        # full fw / bw
         col(wsq[4].T, z), col(z, wsq[5].T),        # attentive-mean fw / bw
         col(wsq[6].T, z), col(z, wsq[7].T),        # attentive-max fw / bw
         col(wsq[2].T, z), col(z, wsq[3].T)],       # maxpool fw / bw
        axis=1)                                     # (2H, 8P)

    def row_block(g, c_idx):
        return jnp.concatenate(
            [wsq[g].T if c == c_idx else z for c in range(6)], axis=1)  # (H, 6P)

    w_cos_a = jnp.concatenate([row_block(0, 0), row_block(1, 1),
                               row_block(4, 2), row_block(5, 3)], axis=0)  # (4H, 6P)
    w_cos_b = jnp.concatenate([row_block(6, 4), row_block(7, 5)], axis=0)  # (2H, 6P)
    return w_s1mp, w_cos_a, w_cos_b


def matching_layer(con_p, con_h, weights, hidden_dim, block_batch=None):
    """con_p: (B, Lp, 2H), con_h: (B, Lh, 2H), weights: (8, P, H) -> (mv_p, mv_h)."""
    B, Lp, C = con_p.shape
    _, Lh, _ = con_h.shape
    num_matching, P, H = weights.shape
    assert num_matching == 8 and H == hidden_dim and C == 2 * H
    # Lane-dense output: 8*P == 128 keeps all output stores unmasked.
    assert 8 * P == 128, "kernel assumes 8*num_perspective == 128 (pad P otherwise)"

    if block_batch is None:
        # Single-TC v5e/v6e: maximize the batch block (smallest grid) to
        # amortize the ~0.35us per-grid-step pipeline overhead; cap so the
        # quadratic (TB*Lp*Lh, 2H) intermediates stay well inside VMEM.
        # TODO(synk): on v7x (2 TCs, 64 MiB VMEM) pass block_batch = B // (2k)
        #             explicitly to keep an even grid for dual-TC sharding.
        cap = max(1, min(B, 64, 4096 // max(1, Lp * Lh)))
        TB = 1
        for cand in range(cap, 0, -1):
            if B % cand == 0:
                TB = cand
                break
    else:
        TB = block_batch
    assert B % TB == 0

    w_s1mp, w_cos_a, w_cos_b = _build_weight_blocks(weights)

    out_shape = (jax.ShapeDtypeStruct((B, Lp, 8 * P), jnp.float32),
                 jax.ShapeDtypeStruct((B, Lh, 8 * P), jnp.float32))

    grid_spec = pltpu.PrefetchScalarGridSpec(
        num_scalar_prefetch=0,
        grid=(B // TB,),
        in_specs=[
            pl.BlockSpec((TB, Lp, 2 * H), lambda b: (b, 0, 0)),
            pl.BlockSpec((TB, Lh, 2 * H), lambda b: (b, 0, 0)),
            pl.BlockSpec((2 * H, 8 * P), lambda b: (0, 0)),
            pl.BlockSpec((4 * H, 6 * P), lambda b: (0, 0)),
            pl.BlockSpec((2 * H, 6 * P), lambda b: (0, 0)),
        ],
        out_specs=[
            pl.BlockSpec((TB, Lp, 8 * P), lambda b: (b, 0, 0)),
            pl.BlockSpec((TB, Lh, 8 * P), lambda b: (b, 0, 0)),
        ],
    )

    return pl.pallas_call(
        matching_kernel,
        out_shape=out_shape,
        grid_spec=grid_spec,
        compiler_params=pltpu.CompilerParams(dimension_semantics=("parallel",)),
    )(con_p.astype(jnp.float32), con_h.astype(jnp.float32),
      w_s1mp, w_cos_a, w_cos_b)


# --------------------------- pure-JAX reference ------------------------------

def reference_forward(con_p, con_h, weights, hidden_dim):
    eps = 1e-8
    p_fw, p_bw = con_p[..., :hidden_dim], con_p[..., hidden_dim:]
    h_fw, h_bw = con_h[..., :hidden_dim], con_h[..., hidden_dim:]
    w = [weights[i] for i in range(8)]

    def div_sv(n, d):
        return n / jnp.where(d > eps, d, eps)

    def attention(v1, v2):
        n1 = jnp.sqrt(jnp.sum(v1 * v1, axis=2, keepdims=True))
        n2 = jnp.sqrt(jnp.sum(v2 * v2, axis=2, keepdims=True))
        a = jnp.einsum('bik,bjk->bij', v1, v2)
        return div_sv(a, n1 * jnp.transpose(n2, (0, 2, 1)))

    def mp_match(v1, v2, ww):
        w2 = ww * ww
        if v2.ndim == 2:
            v2 = jnp.broadcast_to(v2[:, None, :], v1.shape)
        dot = jnp.einsum('blh,ph->blp', v1 * v2, w2)
        s1 = jnp.einsum('blh,ph->blp', v1 * v1, w2)
        s2 = jnp.einsum('blh,ph->blp', v2 * v2, w2)
        return dot / jnp.sqrt(jnp.maximum(s1 * s2, eps * eps))

    def mp_pairwise(v1, v2, ww):
        w2 = ww * ww
        n = jnp.einsum('bih,bjh,ph->bpij', v1, v2, w2)
        s1 = jnp.sqrt(jnp.einsum('bih,ph->bpi', v1 * v1, w2))
        s2 = jnp.sqrt(jnp.einsum('bjh,ph->bpj', v2 * v2, w2))
        d = s1[..., :, None] * s2[..., None, :]
        return jnp.transpose(div_sv(n, d), (0, 2, 3, 1))   # (B,L1,L2,P)

    mv_p, mv_h = [], []
    # full
    mv_p.append(mp_match(p_fw, h_fw[:, -1, :], w[0]))
    mv_p.append(mp_match(p_bw, h_bw[:, 0, :], w[1]))
    mv_h.append(mp_match(h_fw, p_fw[:, -1, :], w[0]))
    mv_h.append(mp_match(h_bw, p_bw[:, 0, :], w[1]))
    # maxpool
    mfw = mp_pairwise(p_fw, h_fw, w[2])
    mbw = mp_pairwise(p_bw, h_bw, w[3])
    mv_p.append(jnp.max(mfw, axis=2)); mv_p.append(jnp.max(mbw, axis=2))
    mv_h.append(jnp.max(mfw, axis=1)); mv_h.append(jnp.max(mbw, axis=1))
    # attention
    att_fw = attention(p_fw, h_fw)
    att_bw = attention(p_bw, h_bw)
    att_h_fw = h_fw[:, None, :, :] * att_fw[:, :, :, None]
    att_h_bw = h_bw[:, None, :, :] * att_bw[:, :, :, None]
    att_p_fw = p_fw[:, :, None, :] * att_fw[:, :, :, None]
    att_p_bw = p_bw[:, :, None, :] * att_bw[:, :, :, None]
    am_h_fw = div_sv(jnp.sum(att_h_fw, axis=2), jnp.sum(att_fw, axis=2, keepdims=True))
    am_h_bw = div_sv(jnp.sum(att_h_bw, axis=2), jnp.sum(att_bw, axis=2, keepdims=True))
    am_p_fw = div_sv(jnp.sum(att_p_fw, axis=1),
                     jnp.transpose(jnp.sum(att_fw, axis=1, keepdims=True), (0, 2, 1)))
    am_p_bw = div_sv(jnp.sum(att_p_bw, axis=1),
                     jnp.transpose(jnp.sum(att_bw, axis=1, keepdims=True), (0, 2, 1)))
    mv_p.append(mp_match(p_fw, am_h_fw, w[4])); mv_p.append(mp_match(p_bw, am_h_bw, w[5]))
    mv_h.append(mp_match(h_fw, am_p_fw, w[4])); mv_h.append(mp_match(h_bw, am_p_bw, w[5]))
    # max-attentive
    amx_h_fw = jnp.max(att_h_fw, axis=2); amx_h_bw = jnp.max(att_h_bw, axis=2)
    amx_p_fw = jnp.max(att_p_fw, axis=1); amx_p_bw = jnp.max(att_p_bw, axis=1)
    mv_p.append(mp_match(p_fw, amx_h_fw, w[6])); mv_p.append(mp_match(p_bw, amx_h_bw, w[7]))
    mv_h.append(mp_match(h_fw, amx_p_fw, w[6])); mv_h.append(mp_match(h_bw, amx_p_bw, w[7]))
    return jnp.concatenate(mv_p, axis=2), jnp.concatenate(mv_h, axis=2)


# ---------------------------------- main -------------------------------------

if __name__ == "__main__":
    B, Lp, Lh, H, P = 2, 8, 16, 32, 16   # hidden=32, num_perspective=16 (8*P = 128)
    key = jax.random.PRNGKey(0)
    k1, k2, k3 = jax.random.split(key, 3)
    con_p = jax.random.normal(k1, (B, Lp, 2 * H), dtype=jnp.float32)
    con_h = jax.random.normal(k2, (B, Lh, 2 * H), dtype=jnp.float32)
    # kaiming_normal_ on (P, H): std = sqrt(2 / fan_in) with fan_in = H
    weights = jax.random.normal(k3, (8, P, H), dtype=jnp.float32) * jnp.sqrt(2.0 / H)

    mv_p, mv_h = matching_layer(con_p, con_h, weights, H)
    jax.block_until_ready((mv_p, mv_h))

    ref_p, ref_h = reference_forward(con_p, con_h, weights, H)
    assert mv_p.shape == (B, Lp, 8 * P), mv_p.shape
    assert mv_h.shape == (B, Lh, 8 * P), mv_h.shape
    assert jnp.allclose(mv_p, ref_p, rtol=2e-3, atol=2e-3), \
        float(jnp.max(jnp.abs(mv_p - ref_p)))
    assert jnp.allclose(mv_h, ref_h, rtol=2e-3, atol=2e-3), \
        float(jnp.max(jnp.abs(mv_h - ref_h)))
    print("KERNEL_OK")
</pallas_src>

<mosaic_0001>
module attributes {stable_mosaic.version = 11 : i64} {
  func.func @matching_kernel(%arg0: i32, %arg1: memref<2x8x64xf32, #tpu.memory_space<vmem>>, %arg2: memref<2x16x64xf32, #tpu.memory_space<vmem>>, %arg3: memref<64x128xf32, #tpu.memory_space<vmem>>, %arg4: memref<128x96xf32, #tpu.memory_space<vmem>>, %arg5: memref<64x96xf32, #tpu.memory_space<vmem>>, %arg6: memref<2x8x128xf32, #tpu.memory_space<vmem>>, %arg7: memref<2x16x128xf32, #tpu.memory_space<vmem>>) attributes {dimension_semantics = [#tpu.dimension_semantics<parallel>], iteration_bounds = array<i64: 1>, scalar_prefetch = 0 : i64, scratch_operands = 0 : i64, tpu.core_type = #tpu.core_type<tc>, window_params = [{transform_indices = @transform_0, window_bounds = array<i64: 2, 8, 64>}, {transform_indices = @transform_1, window_bounds = array<i64: 2, 16, 64>}, {pipeline_mode = #tpu.pipeline_mode<synchronous>, transform_indices = @transform_2, window_bounds = array<i64: 64, 128>}, {pipeline_mode = #tpu.pipeline_mode<synchronous>, transform_indices = @transform_3, window_bounds = array<i64: 128, 96>}, {pipeline_mode = #tpu.pipeline_mode<synchronous>, transform_indices = @transform_4, window_bounds = array<i64: 64, 96>}, {transform_indices = @transform_5, window_bounds = array<i64: 2, 8, 128>}, {transform_indices = @transform_6, window_bounds = array<i64: 2, 16, 128>}]} {
    %c0 = arith.constant 0 : index
    %c0_0 = arith.constant 0 : index
    %c0_1 = arith.constant 0 : index
    %0 = vector.load %arg1[%c0, %c0_0, %c0_1] : memref<2x8x64xf32, #tpu.memory_space<vmem>>, vector<2x8x64xf32>
    %c0_2 = arith.constant 0 : index
    %c0_3 = arith.constant 0 : index
    %c0_4 = arith.constant 0 : index
    %1 = vector.load %arg2[%c0_2, %c0_3, %c0_4] : memref<2x16x64xf32, #tpu.memory_space<vmem>>, vector<2x16x64xf32>
    %c0_5 = arith.constant 0 : index
    %c0_6 = arith.constant 0 : index
    %2 = vector.load %arg3[%c0_5, %c0_6] : memref<64x128xf32, #tpu.memory_space<vmem>>, vector<64x128xf32>
    %c0_7 = arith.constant 0 : index
    %c0_8 = arith.constant 0 : index
    %3 = vector.load %arg4[%c0_7, %c0_8] : memref<128x96xf32, #tpu.memory_space<vmem>>, vector<128x96xf32>
    %c0_9 = arith.constant 0 : index
    %c0_10 = arith.constant 0 : index
    %4 = vector.load %arg5[%c0_9, %c0_10] : memref<64x96xf32, #tpu.memory_space<vmem>>, vector<64x96xf32>
    %5 = vector.extract_strided_slice %0 {offsets = [0, 0, 0], sizes = [2, 8, 32], strides = [1, 1, 1]} : vector<2x8x64xf32> to vector<2x8x32xf32>
    %6 = vector.extract_strided_slice %0 {offsets = [0, 0, 32], sizes = [2, 8, 32], strides = [1, 1, 1]} : vector<2x8x64xf32> to vector<2x8x32xf32>
    %7 = vector.extract_strided_slice %1 {offsets = [0, 0, 0], sizes = [2, 16, 32], strides = [1, 1, 1]} : vector<2x16x64xf32> to vector<2x16x32xf32>
    %8 = vector.extract_strided_slice %1 {offsets = [0, 0, 32], sizes = [2, 16, 32], strides = [1, 1, 1]} : vector<2x16x64xf32> to vector<2x16x32xf32>
    %9 = arith.mulf %0, %0 : vector<2x8x64xf32>
    %10 = arith.mulf %1, %1 : vector<2x16x64xf32>
    %11 = vector.shape_cast %0 : vector<2x8x64xf32> to vector<2x8x1x64xf32>
    %12 = vector.shape_cast %1 : vector<2x16x64xf32> to vector<2x1x16x64xf32>
    %13 = vector.broadcast %11 : vector<2x8x1x64xf32> to vector<2x8x16x64xf32>
    %14 = vector.broadcast %12 : vector<2x1x16x64xf32> to vector<2x8x16x64xf32>
    %15 = arith.mulf %13, %14 : vector<2x8x16x64xf32>
    %16 = vector.shape_cast %15 : vector<2x8x16x64xf32> to vector<256x64xf32>
    %17 = vector.shape_cast %9 : vector<2x8x64xf32> to vector<16x64xf32>
    %18 = vector.shape_cast %10 : vector<2x16x64xf32> to vector<32x64xf32>
    %19 = tpu.concatenate %17, %18, %16 in 0 : vector<16x64xf32>, vector<32x64xf32>, vector<256x64xf32> -> vector<304x64xf32>
    %cst = arith.constant dense<0.000000e+00> : vector<304x128xf32>
    %20 = tpu.matmul %19, %2, %cst {dimension_numbers = #tpu.dot_dimension_numbers<[1], [0], [0], [1], [0, 0, 1, 1], [], []>} : vector<304x64xf32>, vector<64x128xf32>, vector<304x128xf32> -> vector<304x128xf32>
    %21 = vector.extract_strided_slice %20 {offsets = [0, 0], sizes = [16, 96], strides = [1, 1]} : vector<304x128xf32> to vector<16x96xf32>
    %22 = vector.extract_strided_slice %20 {offsets = [16, 0], sizes = [32, 96], strides = [1, 1]} : vector<304x128xf32> to vector<32x96xf32>
    %23 = vector.extract_strided_slice %20 {offsets = [0, 96], sizes = [16, 32], strides = [1, 1]} : vector<304x128xf32> to vector<16x32xf32>
    %24 = math.sqrt %23 : vector<16x32xf32>
    %25 = vector.extract_strided_slice %20 {offsets = [16, 96], sizes = [32, 32], strides = [1, 1]} : vector<304x128xf32> to vector<32x32xf32>
    %26 = math.sqrt %25 : vector<32x32xf32>
    %27 = vector.extract_strided_slice %20 {offsets = [48, 96], sizes = [256, 32], strides = [1, 1]} : vector<304x128xf32> to vector<256x32xf32>
    %28 = vector.shape_cast %24 : vector<16x32xf32> to vector<2x8x1x32xf32>
    %29 = vector.shape_cast %26 : vector<32x32xf32> to vector<2x1x16x32xf32>
    %30 = vector.broadcast %28 : vector<2x8x1x32xf32> to vector<2x8x16x32xf32>
    %31 = vector.broadcast %29 : vector<2x1x16x32xf32> to vector<2x8x16x32xf32>
    %32 = arith.mulf %30, %31 : vector<2x8x16x32xf32>
    %33 = vector.shape_cast %32 : vector<2x8x16x32xf32> to vector<256x32xf32>
    %cst_11 = arith.constant 9.99999993E-9 : f32
    %34 = vector.broadcast %cst_11 : f32 to vector<256x32xf32>
    %35 = arith.cmpf ogt, %33, %34 : vector<256x32xf32>
    %cst_12 = arith.constant 9.99999993E-9 : f32
    %36 = vector.broadcast %cst_12 : f32 to vector<256x32xf32>
    %37 = arith.select %35, %33, %36 : vector<256x32xi1>, vector<256x32xf32>
    %38 = tpu.reciprocal %37 {approx = true} : vector<256x32xf32> -> vector<256x32xf32>
    %39 = arith.mulf %27, %38 : vector<256x32xf32>
    %40 = vector.shape_cast %39 : vector<256x32xf32> to vector<2x8x16x32xf32>
    %cst_13 = arith.constant dense<0xFF800000> : vector<2x8x32xf32>
    %41 = vector.multi_reduction <maximumf>, %40, %cst_13 [2] : vector<2x8x16x32xf32> to vector<2x8x32xf32>
    %42 = vector.shape_cast %41 : vector<2x8x32xf32> to vector<16x32xf32>
    %cst_14 = arith.constant dense<0xFF800000> : vector<2x16x32xf32>
    %43 = vector.multi_reduction <maximumf>, %40, %cst_14 [1] : vector<2x8x16x32xf32> to vector<2x16x32xf32>
    %44 = vector.shape_cast %43 : vector<2x16x32xf32> to vector<32x32xf32>
    %45 = vector.extract_strided_slice %9 {offsets = [0, 0, 0], sizes = [2, 8, 32], strides = [1, 1, 1]} : vector<2x8x64xf32> to vector<2x8x32xf32>
    %cst_15 = arith.constant dense<0.000000e+00> : vector<2x8xf32>
    %46 = vector.multi_reduction <add>, %45, %cst_15 [2] : vector<2x8x32xf32> to vector<2x8xf32>
    %47 = vector.shape_cast %46 : vector<2x8xf32> to vector<2x8x1xf32>
    %48 = vector.extract_strided_slice %9 {offsets = [0, 0, 32], sizes = [2, 8, 32], strides = [1, 1, 1]} : vector<2x8x64xf32> to vector<2x8x32xf32>
    %cst_16 = arith.constant dense<0.000000e+00> : vector<2x8xf32>
    %49 = vector.multi_reduction <add>, %48, %cst_16 [2] : vector<2x8x32xf32> to vector<2x8xf32>
    %50 = vector.shape_cast %49 : vector<2x8xf32> to vector<2x8x1xf32>
    %51 = vector.extract_strided_slice %10 {offsets = [0, 0, 0], sizes = [2, 16, 32], strides = [1, 1, 1]} : vector<2x16x64xf32> to vector<2x16x32xf32>
    %cst_17 = arith.constant dense<0.000000e+00> : vector<2x16xf32>
    %52 = vector.multi_reduction <add>, %51, %cst_17 [2] : vector<2x16x32xf32> to vector<2x16xf32>
    %53 = vector.shape_cast %52 : vector<2x16xf32> to vector<2x16x1xf32>
    %54 = vector.shape_cast %53 : vector<2x16x1xf32> to vector<2x1x16xf32>
    %55 = vector.extract_strided_slice %10 {offsets = [0, 0, 32], sizes = [2, 16, 32], strides = [1, 1, 1]} : vector<2x16x64xf32> to vector<2x16x32xf32>
    %cst_18 = arith.constant dense<0.000000e+00> : vector<2x16xf32>
    %56 = vector.multi_reduction <add>, %55, %cst_18 [2] : vector<2x16x32xf32> to vector<2x16xf32>
    %57 = vector.shape_cast %56 : vector<2x16xf32> to vector<2x16x1xf32>
    %58 = vector.shape_cast %57 : vector<2x16x1xf32> to vector<2x1x16xf32>
    "tpu.trace_start"() <{level = 10 : i32, message = "bik,bjk->bij"}> : () -> ()
    %cst_19 = arith.constant dense<0.000000e+00> : vector<2x8x16xf32>
    %59 = tpu.matmul %5, %7, %cst_19 {dimension_numbers = #tpu.dot_dimension_numbers<[2], [2], [1], [1], [0, 0, 0, 1, 1, 1], [0], [0]>} : vector<2x8x32xf32>, vector<2x16x32xf32>, vector<2x8x16xf32> -> vector<2x8x16xf32>
    %cst_20 = arith.constant dense<0.000000e+00> : vector<2x8x16xf32>
    %60 = tpu.matmul %6, %8, %cst_20 {dimension_numbers = #tpu.dot_dimension_numbers<[2], [2], [1], [1], [0, 0, 0, 1, 1, 1], [0], [0]>} : vector<2x8x32xf32>, vector<2x16x32xf32>, vector<2x8x16xf32> -> vector<2x8x16xf32>
    "tpu.trace_stop"() : () -> ()
    %61 = vector.broadcast %47 : vector<2x8x1xf32> to vector<2x8x16xf32>
    %62 = vector.broadcast %54 : vector<2x1x16xf32> to vector<2x8x16xf32>
    %63 = arith.mulf %61, %62 : vector<2x8x16xf32>
    %cst_21 = arith.constant 1.000000e-16 : f32
    %64 = vector.broadcast %cst_21 : f32 to vector<2x8x16xf32>
    %65 = arith.maximumf %63, %64 : vector<2x8x16xf32>
    %66 = math.rsqrt %65 : vector<2x8x16xf32>
    %67 = arith.mulf %59, %66 : vector<2x8x16xf32>
    %68 = vector.broadcast %50 : vector<2x8x1xf32> to vector<2x8x16xf32>
    %69 = vector.broadcast %58 : vector<2x1x16xf32> to vector<2x8x16xf32>
    %70 = arith.mulf %68, %69 : vector<2x8x16xf32>
    %cst_22 = arith.constant 1.000000e-16 : f32
    %71 = vector.broadcast %cst_22 : f32 to vector<2x8x16xf32>
    %72 = arith.maximumf %70, %71 : vector<2x8x16xf32>
    %73 = math.rsqrt %72 : vector<2x8x16xf32>
    %74 = arith.mulf %60, %73 : vector<2x8x16xf32>
    "tpu.trace_start"() <{level = 10 : i32, message = "bij,bjh->bih"}> : () -> ()
    %cst_23 = arith.constant dense<0.000000e+00> : vector<2x8x32xf32>
    %75 = tpu.matmul %67, %7, %cst_23 {dimension_numbers = #tpu.dot_dimension_numbers<[2], [1], [1], [2], [0, 0, 0, 1, 1, 2], [0], [0]>} : vector<2x8x16xf32>, vector<2x16x32xf32>, vector<2x8x32xf32> -> vector<2x8x32xf32>
    "tpu.trace_stop"() : () -> ()
    %cst_24 = arith.constant dense<0.000000e+00> : vector<2x8xf32>
    %76 = vector.multi_reduction <add>, %67, %cst_24 [2] : vector<2x8x16xf32> to vector<2x8xf32>
    %77 = vector.shape_cast %76 : vector<2x8xf32> to vector<2x8x1xf32>
    %cst_25 = arith.constant 9.99999993E-9 : f32
    %78 = vector.broadcast %cst_25 : f32 to vector<2x8x1xf32>
    %79 = arith.cmpf ogt, %77, %78 : vector<2x8x1xf32>
    %cst_26 = arith.constant 9.99999993E-9 : f32
    %80 = vector.broadcast %cst_26 : f32 to vector<2x8x1xf32>
    %81 = arith.select %79, %77, %80 : vector<2x8x1xi1>, vector<2x8x1xf32>
    %82 = vector.broadcast %81 : vector<2x8x1xf32> to vector<2x8x32xf32>
    %83 = arith.divf %75, %82 : vector<2x8x32xf32>
    "tpu.trace_start"() <{level = 10 : i32, message = "bij,bjh->bih"}> : () -> ()
    %cst_27 = arith.constant dense<0.000000e+00> : vector<2x8x32xf32>
    %84 = tpu.matmul %74, %8, %cst_27 {dimension_numbers = #tpu.dot_dimension_numbers<[2], [1], [1], [2], [0, 0, 0, 1, 1, 2], [0], [0]>} : vector<2x8x16xf32>, vector<2x16x32xf32>, vector<2x8x32xf32> -> vector<2x8x32xf32>
    "tpu.trace_stop"() : () -> ()
    %cst_28 = arith.constant dense<0.000000e+00> : vector<2x8xf32>
    %85 = vector.multi_reduction <add>, %74, %cst_28 [2] : vector<2x8x16xf32> to vector<2x8xf32>
    %86 = vector.shape_cast %85 : vector<2x8xf32> to vector<2x8x1xf32>
    %cst_29 = arith.constant 9.99999993E-9 : f32
    %87 = vector.broadcast %cst_29 : f32 to vector<2x8x1xf32>
    %88 = arith.cmpf ogt, %86, %87 : vector<2x8x1xf32>
    %cst_30 = arith.constant 9.99999993E-9 : f32
    %89 = vector.broadcast %cst_30 : f32 to vector<2x8x1xf32>
    %90 = arith.select %88, %86, %89 : vector<2x8x1xi1>, vector<2x8x1xf32>
    %91 = vector.broadcast %90 : vector<2x8x1xf32> to vector<2x8x32xf32>
    %92 = arith.divf %84, %91 : vector<2x8x32xf32>
    %93 = tpu.transpose %67, [0, 2, 1] : vector<2x8x16xf32> -> vector<2x16x8xf32>
    %94 = tpu.transpose %74, [0, 2, 1] : vector<2x8x16xf32> -> vector<2x16x8xf32>
    "tpu.trace_start"() <{level = 10 : i32, message = "bji,bih->bjh"}> : () -> ()
    %cst_31 = arith.constant dense<0.000000e+00> : vector<2x16x32xf32>
    %95 = tpu.matmul %93, %5, %cst_31 {dimension_numbers = #tpu.dot_dimension_numbers<[2], [1], [1], [2], [0, 0, 0, 1, 1, 2], [0], [0]>} : vector<2x16x8xf32>, vector<2x8x32xf32>, vector<2x16x32xf32> -> vector<2x16x32xf32>
    "tpu.trace_stop"() : () -> ()
    %cst_32 = arith.constant dense<0.000000e+00> : vector<2x16xf32>
    %96 = vector.multi_reduction <add>, %93, %cst_32 [2] : vector<2x16x8xf32> to vector<2x16xf32>
    %97 = vector.shape_cast %96 : vector<2x16xf32> to vector<2x16x1xf32>
    %cst_33 = arith.constant 9.99999993E-9 : f32
    %98 = vector.broadcast %cst_33 : f32 to vector<2x16x1xf32>
    %99 = arith.cmpf ogt, %97, %98 : vector<2x16x1xf32>
    %cst_34 = arith.constant 9.99999993E-9 : f32
    %100 = vector.broadcast %cst_34 : f32 to vector<2x16x1xf32>
    %101 = arith.select %99, %97, %100 : vector<2x16x1xi1>, vector<2x16x1xf32>
    %102 = vector.broadcast %101 : vector<2x16x1xf32> to vector<2x16x32xf32>
    %103 = arith.divf %95, %102 : vector<2x16x32xf32>
    "tpu.trace_start"() <{level = 10 : i32, message = "bji,bih->bjh"}> : () -> ()
    %cst_35 = arith.constant dense<0.000000e+00> : vector<2x16x32xf32>
    %104 = tpu.matmul %94, %6, %cst_35 {dimension_numbers = #tpu.dot_dimension_numbers<[2], [1], [1], [2], [0, 0, 0, 1, 1, 2], [0], [0]>} : vector<2x16x8xf32>, vector<2x8x32xf32>, vector<2x16x32xf32> -> vector<2x16x32xf32>
    "tpu.trace_stop"() : () -> ()
    %cst_36 = arith.constant dense<0.000000e+00> : vector<2x16xf32>
    %105 = vector.multi_reduction <add>, %94, %cst_36 [2] : vector<2x16x8xf32> to vector<2x16xf32>
    %106 = vector.shape_cast %105 : vector<2x16xf32> to vector<2x16x1xf32>
    %cst_37 = arith.constant 9.99999993E-9 : f32
    %107 = vector.broadcast %cst_37 : f32 to vector<2x16x1xf32>
    %108 = arith.cmpf ogt, %106, %107 : vector<2x16x1xf32>
    %cst_38 = arith.constant 9.99999993E-9 : f32
    %109 = vector.broadcast %cst_38 : f32 to vector<2x16x1xf32>
    %110 = arith.select %108, %106, %109 : vector<2x16x1xi1>, vector<2x16x1xf32>
    %111 = vector.broadcast %110 : vector<2x16x1xf32> to vector<2x16x32xf32>
    %112 = arith.divf %104, %111 : vector<2x16x32xf32>
    %113 = tpu.concatenate %83, %92 in 2 : vector<2x8x32xf32>, vector<2x8x32xf32> -> vector<2x8x64xf32>
    %114 = tpu.concatenate %103, %112 in 2 : vector<2x16x32xf32>, vector<2x16x32xf32> -> vector<2x16x64xf32>
    %115 = vector.shape_cast %67 : vector<2x8x16xf32> to vector<2x8x16x1xf32>
    %116 = vector.shape_cast %115 : vector<2x8x16x1xf32> to vector<2x8x16x1xf32>
    %117 = vector.broadcast %116 : vector<2x8x16x1xf32> to vector<2x8x16x32xf32>
    %118 = vector.shape_cast %74 : vector<2x8x16xf32> to vector<2x8x16x1xf32>
    %119 = vector.shape_cast %118 : vector<2x8x16x1xf32> to vector<2x8x16x1xf32>
    %120 = vector.broadcast %119 : vector<2x8x16x1xf32> to vector<2x8x16x32xf32>
    %121 = tpu.concatenate %117, %120 in 3 : vector<2x8x16x32xf32>, vector<2x8x16x32xf32> -> vector<2x8x16x64xf32>
    %122 = vector.shape_cast %1 : vector<2x16x64xf32> to vector<2x1x16x64xf32>
    %123 = vector.broadcast %122 : vector<2x1x16x64xf32> to vector<2x8x16x64xf32>
    %124 = arith.mulf %121, %123 : vector<2x8x16x64xf32>
    %cst_39 = arith.constant dense<0xFF800000> : vector<2x8x64xf32>
    %125 = vector.multi_reduction <maximumf>, %124, %cst_39 [2] : vector<2x8x16x64xf32> to vector<2x8x64xf32>
    %126 = vector.shape_cast %0 : vector<2x8x64xf32> to vector<2x8x1x64xf32>
    %127 = vector.broadcast %126 : vector<2x8x1x64xf32> to vector<2x8x16x64xf32>
    %128 = arith.mulf %121, %127 : vector<2x8x16x64xf32>
    %cst_40 = arith.constant dense<0xFF800000> : vector<2x16x64xf32>
    %129 = vector.multi_reduction <maximumf>, %128, %cst_40 [1] : vector<2x8x16x64xf32> to vector<2x16x64xf32>
    %130 = vector.extract_strided_slice %7 {offsets = [0, 15, 0], sizes = [2, 1, 32], strides = [1, 1, 1]} : vector<2x16x32xf32> to vector<2x1x32xf32>
    %131 = vector.extract_strided_slice %8 {offsets = [0, 0, 0], sizes = [2, 1, 32], strides = [1, 1, 1]} : vector<2x16x32xf32> to vector<2x1x32xf32>
    %132 = tpu.concatenate %130, %131 in 2 : vector<2x1x32xf32>, vector<2x1x32xf32> -> vector<2x1x64xf32>
    %133 = vector.shape_cast %132 : vector<2x1x64xf32> to vector<2x1x64xf32>
    %134 = vector.broadcast %133 : vector<2x1x64xf32> to vector<2x8x64xf32>
    %135 = vector.extract_strided_slice %5 {offsets = [0, 7, 0], sizes = [2, 1, 32], strides = [1, 1, 1]} : vector<2x8x32xf32> to vector<2x1x32xf32>
    %136 = vector.extract_strided_slice %6 {offsets = [0, 0, 0], sizes = [2, 1, 32], strides = [1, 1, 1]} : vector<2x8x32xf32> to vector<2x1x32xf32>
    %137 = tpu.concatenate %135, %136 in 2 : vector<2x1x32xf32>, vector<2x1x32xf32> -> vector<2x1x64xf32>
    %138 = vector.shape_cast %137 : vector<2x1x64xf32> to vector<2x1x64xf32>
    %139 = vector.broadcast %138 : vector<2x1x64xf32> to vector<2x16x64xf32>
    %140 = arith.mulf %0, %134 : vector<2x8x64xf32>
    %141 = arith.mulf %0, %113 : vector<2x8x64xf32>
    %142 = tpu.concatenate %140, %141 in 2 : vector<2x8x64xf32>, vector<2x8x64xf32> -> vector<2x8x128xf32>
    %143 = arith.mulf %134, %134 : vector<2x8x64xf32>
    %144 = arith.mulf %113, %113 : vector<2x8x64xf32>
    %145 = tpu.concatenate %143, %144 in 2 : vector<2x8x64xf32>, vector<2x8x64xf32> -> vector<2x8x128xf32>
    %146 = arith.mulf %1, %139 : vector<2x16x64xf32>
    %147 = arith.mulf %1, %114 : vector<2x16x64xf32>
    %148 = tpu.concatenate %146, %147 in 2 : vector<2x16x64xf32>, vector<2x16x64xf32> -> vector<2x16x128xf32>
    %149 = arith.mulf %139, %139 : vector<2x16x64xf32>
    %150 = arith.mulf %114, %114 : vector<2x16x64xf32>
    %151 = tpu.concatenate %149, %150 in 2 : vector<2x16x64xf32>, vector<2x16x64xf32> -> vector<2x16x128xf32>
    %152 = vector.shape_cast %142 : vector<2x8x128xf32> to vector<16x128xf32>
    %153 = vector.shape_cast %145 : vector<2x8x128xf32> to vector<16x128xf32>
    %154 = vector.shape_cast %148 : vector<2x16x128xf32> to vector<32x128xf32>
    %155 = vector.shape_cast %151 : vector<2x16x128xf32> to vector<32x128xf32>
    %156 = tpu.concatenate %152, %153, %154, %155 in 0 : vector<16x128xf32>, vector<16x128xf32>, vector<32x128xf32>, vector<32x128xf32> -> vector<96x128xf32>
    %157 = arith.mulf %0, %125 : vector<2x8x64xf32>
    %158 = vector.shape_cast %157 : vector<2x8x64xf32> to vector<16x64xf32>
    %159 = arith.mulf %125, %125 : vector<2x8x64xf32>
    %160 = vector.shape_cast %159 : vector<2x8x64xf32> to vector<16x64xf32>
    %161 = arith.mulf %1, %129 : vector<2x16x64xf32>
    %162 = vector.shape_cast %161 : vector<2x16x64xf32> to vector<32x64xf32>
    %163 = arith.mulf %129, %129 : vector<2x16x64xf32>
    %164 = vector.shape_cast %163 : vector<2x16x64xf32> to vector<32x64xf32>
    %165 = tpu.concatenate %158, %160, %162, %164 in 0 : vector<16x64xf32>, vector<16x64xf32>, vector<32x64xf32>, vector<32x64xf32> -> vector<96x64xf32>
    %cst_41 = arith.constant dense<0.000000e+00> : vector<96x96xf32>
    %166 = tpu.matmul %156, %3, %cst_41 {dimension_numbers = #tpu.dot_dimension_numbers<[1], [0], [0], [1], [0, 0, 1, 1], [], []>} : vector<96x128xf32>, vector<128x96xf32>, vector<96x96xf32> -> vector<96x96xf32>
    %cst_42 = arith.constant dense<0.000000e+00> : vector<96x96xf32>
    %167 = tpu.matmul %165, %4, %cst_42 {dimension_numbers = #tpu.dot_dimension_numbers<[1], [0], [0], [1], [0, 0, 1, 1], [], []>} : vector<96x64xf32>, vector<64x96xf32>, vector<96x96xf32> -> vector<96x96xf32>
    %168 = arith.addf %166, %167 : vector<96x96xf32>
    %169 = vector.extract_strided_slice %168 {offsets = [0, 0], sizes = [16, 96], strides = [1, 1]} : vector<96x96xf32> to vector<16x96xf32>
    %170 = vector.extract_strided_slice %168 {offsets = [16, 0], sizes = [16, 96], strides = [1, 1]} : vector<96x96xf32> to vector<16x96xf32>
    %171 = vector.extract_strided_slice %168 {offsets = [32, 0], sizes = [32, 96], strides = [1, 1]} : vector<96x96xf32> to vector<32x96xf32>
    %172 = vector.extract_strided_slice %168 {offsets = [64, 0], sizes = [32, 96], strides = [1, 1]} : vector<96x96xf32> to vector<32x96xf32>
    %173 = arith.mulf %21, %170 : vector<16x96xf32>
    %cst_43 = arith.constant 1.000000e-16 : f32
    %174 = vector.broadcast %cst_43 : f32 to vector<16x96xf32>
    %175 = arith.maximumf %173, %174 : vector<16x96xf32>
    %176 = math.rsqrt %175 : vector<16x96xf32>
    %177 = arith.mulf %169, %176 : vector<16x96xf32>
    %178 = arith.mulf %22, %172 : vector<32x96xf32>
    %cst_44 = arith.constant 1.000000e-16 : f32
    %179 = vector.broadcast %cst_44 : f32 to vector<32x96xf32>
    %180 = arith.maximumf %178, %179 : vector<32x96xf32>
    %181 = math.rsqrt %180 : vector<32x96xf32>
    %182 = arith.mulf %171, %181 : vector<32x96xf32>
    %183 = vector.extract_strided_slice %177 {offsets = [0, 0], sizes = [16, 32], strides = [1, 1]} : vector<16x96xf32> to vector<16x32xf32>
    %184 = vector.extract_strided_slice %177 {offsets = [0, 32], sizes = [16, 64], strides = [1, 1]} : vector<16x96xf32> to vector<16x64xf32>
    %185 = tpu.concatenate %183, %42, %184 in 1 : vector<16x32xf32>, vector<16x32xf32>, vector<16x64xf32> -> vector<16x128xf32>
    %186 = vector.extract_strided_slice %182 {offsets = [0, 0], sizes = [32, 32], strides = [1, 1]} : vector<32x96xf32> to vector<32x32xf32>
    %187 = vector.extract_strided_slice %182 {offsets = [0, 32], sizes = [32, 64], strides = [1, 1]} : vector<32x96xf32> to vector<32x64xf32>
    %188 = tpu.concatenate %186, %44, %187 in 1 : vector<32x32xf32>, vector<32x32xf32>, vector<32x64xf32> -> vector<32x128xf32>
    %189 = vector.shape_cast %185 : vector<16x128xf32> to vector<2x8x128xf32>
    %c0_45 = arith.constant 0 : index
    %c0_46 = arith.constant 0 : index
    %c0_47 = arith.constant 0 : index
    %190 = vector.load %arg6[%c0_45, %c0_46, %c0_47] : memref<2x8x128xf32, #tpu.memory_space<vmem>>, vector<2x8x128xf32>
    tpu.vector_store %arg6[%c0_45, %c0_46, %c0_47], %189 {strides = array<i32>} : memref<2x8x128xf32, #tpu.memory_space<vmem>>, vector<2x8x128xf32>,
    %191 = vector.shape_cast %188 : vector<32x128xf32> to vector<2x16x128xf32>
    %c0_48 = arith.constant 0 : index
    %c0_49 = arith.constant 0 : index
    %c0_50 = arith.constant 0 : index
    %192 = vector.load %arg7[%c0_48, %c0_49, %c0_50] : memref<2x16x128xf32, #tpu.memory_space<vmem>>, vector<2x16x128xf32>
    tpu.vector_store %arg7[%c0_48, %c0_49, %c0_50], %191 {strides = array<i32>} : memref<2x16x128xf32, #tpu.memory_space<vmem>>, vector<2x16x128xf32>,
    return
  }
  func.func @transform_0(%arg0: i32) -> (i32, i32, i32) {
    %c0_i32 = arith.constant 0 : i32
    %c0_i32_0 = arith.constant 0 : i32
    %c0_i32_1 = arith.constant 0 : i32
    return %arg0, %c0_i32, %c0_i32_0 : i32, i32, i32
  }
  func.func @transform_1(%arg0: i32) -> (i32, i32, i32) {
    %c0_i32 = arith.constant 0 : i32
    %c0_i32_0 = arith.constant 0 : i32
    %c0_i32_1 = arith.constant 0 : i32
    return %arg0, %c0_i32, %c0_i32_0 : i32, i32, i32
  }
  func.func @transform_2(%arg0: i32) -> (i32, i32) {
    %c0_i32 = arith.constant 0 : i32
    %c0_i32_0 = arith.constant 0 : i32
    %c0_i32_1 = arith.constant 0 : i32
    return %c0_i32, %c0_i32_0 : i32, i32
  }
  func.func @transform_3(%arg0: i32) -> (i32, i32) {
    %c0_i32 = arith.constant 0 : i32
    %c0_i32_0 = arith.constant 0 : i32
    %c0_i32_1 = arith.constant 0 : i32
    return %c0_i32, %c0_i32_0 : i32, i32
  }
  func.func @transform_4(%arg0: i32) -> (i32, i32) {
    %c0_i32 = arith.constant 0 : i32
    %c0_i32_0 = arith.constant 0 : i32
    %c0_i32_1 = arith.constant 0 : i32
    return %c0_i32, %c0_i32_0 : i32, i32
  }
  func.func @transform_5(%arg0: i32) -> (i32, i32, i32) {
    %c0_i32 = arith.constant 0 : i32
    %c0_i32_0 = arith.constant 0 : i32
    %c0_i32_1 = arith.constant 0 : i32
    return %arg0, %c0_i32, %c0_i32_0 : i32, i32, i32
  }
  func.func @transform_6(%arg0: i32) -> (i32, i32, i32) {
    %c0_i32 = arith.constant 0 : i32
    %c0_i32_0 = arith.constant 0 : i32
    %c0_i32_1 = arith.constant 0 : i32
    return %arg0, %c0_i32, %c0_i32_0 : i32, i32, i32
  }
}

</mosaic_0001>

<bundles_post_ra>
// kernel: tpu_custom_call.1
= control target key start
LH: loop header
LB: loop body
LE: loop exit
PB: predicated region body
PF: predicated region fallthrough
CT: control target
= control target key end

     0   :  { %12 = vsyncpa [#allocation3], 0  ;;  %vm1205_vm0 = vcmask 261120   ;;  %s4486_s25 = smov 96   ;;  %v4487_v4 = vmov 0.0   ;;  %vm4488_vm1 = vmmov 0   ;;  %s6195_s0 = inlined_call_operand.vmem [shape: f32[2,8,64], index: 0, kind: input, shape index: {}]   ;;  %s6196_s1 = inlined_call_operand.vmem [shape: f32[2,16,64], index: 1, kind: input, shape index: {}]   ;;  %s6197_s2 = inlined_call_operand.vmem [shape: f32[64,128], index: 2, kind: input, shape index: {}]   ;;  %s6198_s3 = inlined_call_operand.vmem [shape: f32[128,96], index: 3, kind: input, shape index: {}]   ;;  %s6199_s4 = inlined_call_operand.vmem [shape: f32[64,96], index: 4, kind: input, shape index: {}]   ;;  %s6200_s5 = inlined_call_operand.hbm [shape: f32[2,8,128], index: 5, kind: output, shape index: {0}]   ;;  %s6201_s6 = inlined_call_operand.hbm [shape: f32[2,16,128], index: 6, kind: output, shape index: {1}]  }
   0x1   :  { %v4534_v0 = vld [vmem:[%s6196_s1 + $0x8] sm:$0xff]  ;;  %v4539_v1 = vld [vmem:[%s6195_s0] sm:$0xff]  ;;  %v4553_v3 = vld [vmem:[%s6196_s1 + $0x18] sm:$0xff]  ;;  %4106 = vmatprep.subr.mxu1 %v4487_v4  ;;  %4110 = vmatprep.mubr.msk.f32.mxu1 %vm4488_vm1, %v4487_v4 }
   0x2   :  { %1420 = vrot.lane.b32.xlu0 %v4534_v0, %s4486_s25  ;;  %1416 = vrot.lane.b32.xlu1 %v4539_v1, %s4486_s25  ;;  %v4548_v2 = vld [vmem:[%s6196_s1] sm:$0xff] }
   0x3   :  { %13 = vsyncpa [#allocation5], 0  ;;  %4107 = vmatpush3.xpose.msk.msra.mxu1 %vm1205_vm0, %v4534_v0  ;;  %v4568_v5 = vld [vmem:[%s6196_s1 + $0x10] sm:$0xff]  ;;  %v4573_v6 = vld [vmem:[%s6195_s0 + $0x8] sm:$0xff]  ;;  %v4584_v7 = vmul.f32 %v4548_v2, %v4548_v2  ;;  %v4588_v8 = vmul.f32 %v4534_v0, %v4534_v0  ;;  %v4607_v10 = vmul.f32 %v4539_v1, %v4539_v1  ;;  %v4622_v12 = vmul.f32 %v4553_v3, %v4553_v3  ;;  %s4491_s9 = smov 64  }
   0x4   :  { %4108 = vmatprep.subr.mxu1 %v4487_v4  ;;  %v4603_v9 = vmul.f32 %v4568_v5, %v4568_v5  ;;  %v4618_v11 = vmul.f32 %v4573_v6, %v4573_v6  ;;  %v74_v37 = vlaneseq  ;;  %vm1595_vm2 = vcmask 130112  }
   0x5   :  { %v1224_v13 = vsel %vm1205_vm0, %v4584_v7, 0.0  ;;  %v1206_v14 = vsel %vm1205_vm0, %v4607_v10, 0.0  ;;  %v1227_v15 = vsel %vm1205_vm0, %v4588_v8, 0.0  ;;  %v1233_v17 = vsel %vm1205_vm0, %v4622_v12, 0.0 }
   0x6   :  { %1418 = vrot.lane.b32.xlu0 %v4548_v2, %s4486_s25  ;;  %1502 = vrot.lane.b32.xlu1 %v4553_v3, %s4486_s25  ;;  %v1230_v16 = vsel %vm1205_vm0, %v4603_v9, 0.0  ;;  %v1209_v18 = vsel %vm1205_vm0, %v4618_v11, 0.0  ;;  %v1585_v38 = vand.u32 127, %v74_v37  ;;  %v4686_v39 = vshrl.u32 %v74_v37, 7 }
   0x7   :  { %4109 = vmatpush3.xpose.msk.msra.mxu1 %vm1205_vm0, %v4548_v2  ;;  %vm1679_vm3 = vcmask 130048   ;;  %vm2132_vm4 = vcmask 64512   ;;  %vm280_vm5 = vcmask 523264   ;;  %vm1606_vm9 = vcmask 1041409  }
   0x8   :  { %4113 = vmatprep.subr.mxu1 %v4487_v4  ;;  %v1590_v40 = vadd.s32 4294967288, %v1585_v38  ;;  %v4689_v41 = vsub.s32 %v1585_v38, %v4686_v39  ;;  %v4701_v63 = vsub.s32 0, %v4686_v39  ;;  %4049 = vmatprep.mubr.msk.f32.mxu0 %vm280_vm5, %v4607_v10  ;;  %vm1607_vm11 = vcmask 1042434  }
   0xa   :  { %1500 = vrot.lane.b32.xlu0 %v4568_v5, %s4486_s25  ;;  %1498 = vrot.lane.b32.xlu1 %v4573_v6, %s4486_s25  ;;  %v4692_v43 = vsub.s32 %v1590_v40, %v4686_v39  ;;  %6221 = vst [vmem:[#allocation8_spill] sm:$0xff] %v4701_v63 }
   0xb   :  { %4111 = vmatmul.mubr.msk.f32.vlgmr.msra.gmra.mxu1 %vm1205_vm0, %v4539_v1 }
   0xc   :  { %4114 = vmatpush3.xpose.msk.msra.mxu1 %vm1205_vm0, %v4553_v3  ;;  %4117 = vmatprep.mubr.msk.f32.mxu1 %vm4488_vm1, %v4487_v4 }
   0xd   :  { %4115 = vmatprep.subr.mxu1 %v4487_v4 }
   0xe   :  { %1236 = vrot.lane.b32.xlu0 %v4584_v7, %s4486_s25  ;;  %1238 = vrot.lane.b32.xlu1 %v4588_v8, %s4486_s25 }
  0x10   :  { %4116 = vmatpush3.xpose.msk.msra.mxu1 %vm1205_vm0, %v4568_v5 }
  0x11   :  { %4120 = vmatprep.subr.mxu1 %v4487_v4 }
  0x12   :  { %1240 = vrot.lane.b32.xlu1 %v4603_v9, %s4486_s25  ;;  %1212 = vrot.lane.b32.xlu0 %v4607_v10, %s4486_s25 }
  0x13   :  { %4118 = vmatmul.mubr.msk.f32.vlgmr.msra.gmra.mxu1 %vm1205_vm0, %v4573_v6 }
  0x14   :  { %4124 = vmatprep.mubr.msk.f32.mxu1 %vm4488_vm1, %v4487_v4 }
  0x16   :  { %1214 = vrot.lane.b32.xlu1 %v4618_v11, %s4486_s25  ;;  %1242 = vrot.lane.b32.xlu0 %v4622_v12, %s4486_s25 }
  0x35   :  { %1225 = vadd.xlane.f32.xlu0 %v1224_v13 }
  0x39   :  { %1207 = vadd.xlane.f32.xlu0 %v1206_v14 }
  0x3a   :  { %1228 = vadd.xlane.f32.xlu1 %v1227_v15 }
  0x3d   :  { %1231 = vadd.xlane.f32.xlu0 %v1230_v16 }
  0x3e   :  { %1234 = vadd.xlane.f32.xlu1 %v1233_v17 }
  0x41   :  { %1210 = vadd.xlane.f32.xlu0 %v1209_v18 }
  0x74   :  { %v4644_v19 = vpop.permute.xlu0 %1420  ;;  %v4646_v20 = vpop.permute.xlu1 %1416 }
  0x75   :  { %4121 = vmatpush3.xpose.msk.msra.mxu1 %vm1205_vm0, %v4644_v19 }
  0x76   :  { %4122 = vmatprep.subr.mxu1 %v4487_v4 }
  0x78   :  { %v4651_v21 = vpop.permute.xlu0 %1418  ;;  %v4653_v22 = vpop.permute.xlu1 %1502 }
  0x79   :  { %4123 = vmatpush3.xpose.msk.msra.mxu1 %vm1205_vm0, %v4651_v21 }
  0x7a   :  { %4127 = vmatprep.subr.mxu1 %v4487_v4 }
  0x7c   :  { %v4658_v23 = vpop.permute.xlu0 %1500  ;;  %v4660_v24 = vpop.permute.xlu1 %1498  ;;  %4125 = vmatmul.mubr.msk.f32.vlgmr.msra.gmra.mxu1 %vm1205_vm0, %v4646_v20 }
  0x7d   :  { %4128 = vmatpush3.xpose.msk.msra.mxu1 %vm1205_vm0, %v4653_v22  ;;  %4131 = vmatprep.mubr.msk.f32.mxu1 %vm4488_vm1, %v4487_v4 }
  0x7e   :  { %4129 = vmatprep.subr.mxu1 %v4487_v4 }
  0x80   :  { %v1237_v25 = vpop.permute.xlu0 %1236  ;;  %v1239_v26 = vpop.permute.xlu1 %1238 }
  0x81   :  { %4130 = vmatpush3.xpose.msk.msra.mxu1 %vm1205_vm0, %v4658_v23  ;;  %v1248_v27 = vsel %vm1205_vm0, %v1237_v25, 0.0  ;;  %v1251_v28 = vsel %vm1205_vm0, %v1239_v26, 0.0 }
  0x82   :  { %1249 = vadd.xlane.f32.xlu1 %v1248_v27  ;;  %1252 = vadd.xlane.f32.xlu0 %v1251_v28 }
  0x83   :  { %4134 = vmatprep.subr.mxu1 %v4487_v4 }
  0x84   :  { %v1241_v29 = vpop.permute.xlu1 %1240  ;;  %4132 = vmatmul.mubr.msk.f32.vlgmr.msra.gmra.mxu1 %vm1205_vm0, %v4660_v24  ;;  %v1213_v30 = vpop.permute.xlu0 %1212 }
  0x85   :  { %v1218_v31 = vsel %vm1205_vm0, %v1213_v30, 0.0  ;;  %v1254_v32 = vsel %vm1205_vm0, %v1241_v29, 0.0  ;;  %4135 = vmatpush3.msra.mxu1 %v4534_v0  ;;  %4138 = vmatprep.mubr.msk.f32.mxu1 %vm4488_vm1, %v4487_v4 }
  0x86   :  { %1219 = vadd.xlane.f32.xlu1 %v1218_v31  ;;  %1255 = vadd.xlane.f32.xlu0 %v1254_v32 }
  0x87   :  { %4136 = vmatprep.subr.mxu1 %v4487_v4 }
  0x88   :  { %v1215_v33 = vpop.permute.xlu1 %1214  ;;  %v1243_v34 = vpop.permute.xlu0 %1242  ;;  %4137 = vmatpush3.msra.mxu1 %v4548_v2 }
  0x89   :  { %v1257_v35 = vsel %vm1205_vm0, %v1243_v34, 0.0  ;;  %v1221_v36 = vsel %vm1205_vm0, %v1215_v33, 0.0  ;;  %4141 = vmatprep.subr.mxu1 %v4487_v4 }
  0x8a   :  { %1258 = vadd.xlane.f32.xlu1 %v1257_v35  ;;  %1222 = vadd.xlane.f32.xlu0 %v1221_v36 }
  0xbe   :  { %v1226_v42 = vpop.xlane.xlu0 %1225 }
  0xbf   :  { %v1589_v44 = vrot.slane %v1226_v42, %v4689_v41 }
  0xc2   :  { %v1208_v45 = vpop.xlane.xlu0 %1207 }
  0xc3   :  { %v1229_v46 = vpop.xlane.xlu1 %1228 }
  0xc4   :  { %v1594_v47 = vrot.slane %v1229_v46, %v4692_v43 }
  0xc6   :  { %v1596_v48 = vsel %vm1595_vm2, %v1594_v47, %v1589_v44  ;;  %v1232_v49 = vpop.xlane.xlu0 %1231 }
  0xc7   :  { %v1627_v50 = vmul.f32 %v1596_v48, %v1208_v45  ;;  %v1600_v51 = vrot.slane %v1232_v49, %v4689_v41  ;;  %v1235_v52 = vpop.xlane.xlu1 %1234 }
  0xc8   :  { %v1604_v53 = vrot.slane %v1235_v52, %v4692_v43 }
  0xc9   :  { %v1629_v54 = vmax.f32 %v1627_v50, 1e-16 }
  0xca   :  { %v1605_v55 = vsel %vm1595_vm2, %v1604_v53, %v1600_v51  ;;  %v1211_v56 = vpop.xlane.xlu0 %1210 }
  0xcb   :  { %4308 = vrsqrt.f32 %v1629_v54  ;;  %v1628_v57 = vmul.f32 %v1605_v55, %v1211_v56  ;;  %v1334_v58 = vpop.f32.mrf.mxu1  ;;  %v2558_v55 = vsub.s32 1, %v4686_v39 }
  0xcd   :  { %v1630_v59 = vmax.f32 %v1628_v57, 1e-16  ;;  %v4112_v60 = vpop.f32.mrf.mxu1 }
  0xcf   :  { %4310 = vrsqrt.f32 %v1630_v59 }
  0xd3   :  { %v1412_v61 = vpop.f32.mrf.mxu1 }
  0xd5   :  { %v4119_v62 = vpop.f32.mrf.mxu1 }
  0xd6   :  { %v4781_v62 = vsub.s32 2, %v4686_v39 }
  0xd8   :  { %v4309_v13 = vpop.eup %4308 }
  0xd9   :  { %v4703_v14 = vmul.f32 %v4309_v13, %v1334_v58 }
  0xdb   :  { %2004 = vxpose.xlu1.b32.start.end [1/1] (short) (narrow) %v4703_v14, 16  ;;  %4139 = vmatmul.mubr.msk.f32.vlgmr.msra.gmra.mxu1 %vm1679_vm3, %v4703_v14  ;;  %v2548_v15 = vrot.slane %v4703_v14, %v4701_v63  ;;  %v1826_v18 = vsel %vm1679_vm3, %v4703_v14, 0.0  ;;  %v2559_v56 = vrot.slane %v4703_v14, %v2558_v55  ;;  %v2570_v10 = vrot.slane %v4703_v14, %v4781_v62 }
  0xdc   :  { %v4311_v16 = vpop.eup %4310  ;;  %4142 = vmatpush3.msra.mxu1 %v4553_v3  ;;  %4145 = vmatprep.mubr.msk.f32.mxu1 %vm4488_vm1, %v4487_v4 }
  0xdd   :  { %v4713_v17 = vmul.f32 %v4311_v16, %v1412_v61  ;;  %4143 = vmatprep.subr.mxu1 %v4487_v4  ;;  %2550 = vbcast.lane.b32.xlu0 %v2548_v15, 256 }
  0xde   :  { %4144 = vmatpush3.msra.mxu1 %v4568_v5 }
  0xdf   :  { %4148 = vmatprep.subr.mxu1 %v4487_v4  ;;  %4146 = vmatmul.mubr.msk.f32.vlgmr.msra.gmra.mxu1 %vm1679_vm3, %v4713_v17  ;;  %v1829_v35 = vsel %vm1679_vm3, %v4713_v17, 0.0  ;;  %v2636_v13 = vrot.slane %v4713_v17, %v4701_v63 }
  0xe0   :  { %4149 = vmatpush3.msra.mxu1 %v4644_v19  ;;  %4152 = vmatprep.mubr.msk.f32.mxu1 %vm4488_vm1, %v4487_v4 }
  0xe1   :  { %4150 = vmatprep.subr.mxu1 %v4487_v4 }
  0xe2   :  { %4151 = vmatpush3.msra.mxu1 %v4651_v21 }
  0xe3   :  { %4155 = vmatprep.subr.mxu1 %v4487_v4 }
  0xfb   :  { %2036 = vxpose.xlu0.b32.start.end [1/1] (short) (narrow) %v4713_v17, 16 }
 0x106   :  { %1827 = vadd.xlane.f32.xlu1 %v1826_v18  ;;  %v4791_v18 = vsub.s32 3, %v4686_v39 }
 0x10b   :  { %v1250_v25 = vpop.xlane.xlu1 %1249  ;;  %v1253_v26 = vpop.xlane.xlu0 %1252 }
 0x10c   :  { %v1642_v19 = vrot.slane %v1250_v25, %v4689_v41  ;;  %v1646_v28 = vrot.slane %v1253_v26, %v4692_v43  ;;  %v2581_v25 = vrot.slane %v4703_v14, %v4791_v18 }
 0x10e   :  { %v1647_v29 = vsel %vm1595_vm2, %v1646_v28, %v1642_v19 }
 0x10f   :  { %v1220_v27 = vpop.xlane.xlu1 %1219  ;;  %v1256_v31 = vpop.xlane.xlu0 %1255 }
 0x110   :  { %v1671_v21 = vmul.f32 %v1647_v29, %v1220_v27  ;;  %v1651_v33 = vrot.slane %v1256_v31, %v4689_v41 }
 0x112   :  { %v1673_v34 = vmax.f32 %v1671_v21, 1e-16 }
 0x113   :  { %v1259_v30 = vpop.xlane.xlu1 %1258  ;;  %v1223_v37 = vpop.xlane.xlu0 %1222 }
 0x114   :  { %v1655_v32 = vrot.slane %v1259_v30, %v4692_v43  ;;  %4312 = vrsqrt.f32 %v1673_v34 }
 0x116   :  { %v1656_v36 = vsel %vm1595_vm2, %v1655_v32, %v1651_v33 }
 0x117   :  { %2554 = vbcast.lane.b32.xlu1 %v2548_v15, 264  ;;  %v1672_v38 = vmul.f32 %v1656_v36, %v1223_v37  ;;  %v2647_v15 = vrot.slane %v4713_v17, %v2558_v55 }
 0x119   :  { %v1674_v40 = vmax.f32 %v1672_v38, 1e-16 }
 0x11b   :  { %4314 = vrsqrt.f32 %v1674_v40 }
 0x121   :  { %v4313_v42 = vpop.eup %4312 }
 0x128   :  { %v4315_v41 = vpop.eup %4314 }
 0x12c   :  { %1830 = vadd.xlane.f32.xlu0 %v1829_v35 }
 0x13c   :  { %v1494_v44 = vpop.f32.mrf.mxu1 }
 0x13d   :  { %v4737_v45 = vmul.f32 %v4313_v42, %v1494_v44 }
 0x13e   :  { %v4126_v46 = vpop.f32.mrf.mxu1 }
 0x13f   :  { %4153 = vmatmul.mubr.msk.f32.vlgmr.msra.gmra.mxu1 %vm1679_vm3, %v4737_v45  ;;  %v2724_v57 = vrot.slane %v4737_v45, %v4701_v63  ;;  %v2735_v61 = vrot.slane %v4737_v45, %v2558_v55  ;;  %v2746_v16 = vrot.slane %v4737_v45, %v4781_v62  ;;  %v1990_v26 = vsel %vm1679_vm3, %v4737_v45, 0.0 }
 0x140   :  { %4156 = vmatpush3.msra.mxu1 %v4653_v22  ;;  %4159 = vmatprep.mubr.msk.f32.mxu1 %vm4488_vm1, %v4487_v4  ;;  %vm1609_vm1 = vcmask 1043459  }
 0x141   :  { %4157 = vmatprep.subr.mxu1 %v4487_v4 }
 0x142   :  { %4158 = vmatpush3.msra.mxu1 %v4658_v23 }
 0x143   :  { %4162 = vmatprep.subr.mxu1 %v4539_v1 }
 0x144   :  { %v1576_v43 = vpop.f32.mrf.mxu1 }
 0x145   :  { %v4747_v47 = vmul.f32 %v4315_v41, %v1576_v43 }
 0x146   :  { %v4133_v48 = vpop.f32.mrf.mxu1 }
 0x147   :  { %4160 = vmatmul.mubr.msk.f32.vlgmr.msra.gmra.mxu1 %vm1679_vm3, %v4747_v47  ;;  %v1993_v32 = vsel %vm1679_vm3, %v4747_v47, 0.0  ;;  %v2812_v40 = vrot.slane %v4747_v47, %v4701_v63  ;;  %v2823_v46 = vrot.slane %v4747_v47, %v2558_v55  ;;  %vm1611_vm3 = vcmask 1044484  }
 0x148   :  { %4163 = vmatpush3.msra.mxu1 %v4539_v1 }
 0x149   :  { %4167 = vmatprep.subr.mxu1 %v4573_v6 }
 0x14f   :  { %v4759_v50 = vpop.permute.xlu0 %2550 }
 0x157   :  { %v2020_v22 = vpop.trf.xlu1 }
 0x158   :  { %4164 = vmatprep.mubr.msk.f32.mxu1 %vm2132_vm4, %v2020_v22  ;;  %v2295_v4 = vsel %vm2132_vm4, %v2020_v22, 0.0 }
 0x159   :  { %2296 = vadd.xlane.f32.xlu1 %v2295_v4 }
 0x15b   :  { %v2021_v23 = vpop.trf.xlu1 }
 0x15c   :  { %4165 = vmatmul.mubr.msk.f32.vlgmr.msra.gmra.mxu1 %vm2132_vm4, %v2021_v23  ;;  %v2298_v49 = vsel %vm2132_vm4, %v2021_v23, 0.0  ;;  %v4489_v23 = vmov 1966171168  }
 0x15d   :  { %4168 = vmatpush3.msra.mxu1 %v4573_v6  ;;  %2299 = vadd.xlane.f32.xlu0 %v2298_v49  ;;  %v72_v49 = vunpack.c.l.s4 %v4489_v23 }
 0x15e   :  { %4172 = vmatprep.subr.mxu1 %v4646_v20 }
 0x177   :  { %v2052_v51 = vpop.trf.xlu0 }
 0x178   :  { %4169 = vmatprep.mubr.msk.f32.mxu1 %vm2132_vm4, %v2052_v51  ;;  %v2301_v52 = vsel %vm2132_vm4, %v2052_v51, 0.0 }
 0x179   :  { %2302 = vadd.xlane.f32.xlu1 %v2301_v52  ;;  %v73_v52 = vunpack.c.0.s8 %v72_v49  ;;  %v2658_v49 = vrot.slane %v4713_v17, %v4781_v62 }
 0x17b   :  { %v2053_v53 = vpop.trf.xlu0  ;;  %v4824_v55 = vsub.s32 %v73_v52, %v4686_v39 }
 0x17c   :  { %4170 = vmatmul.mubr.msk.f32.vlgmr.msra.gmra.mxu1 %vm2132_vm4, %v2053_v53  ;;  %v2304_v54 = vsel %vm2132_vm4, %v2053_v53, 0.0 }
 0x17d   :  { %4173 = vmatpush3.msra.mxu1 %v4646_v20  ;;  %2305 = vadd.xlane.f32.xlu0 %v2304_v54 }
 0x17e   :  { %4177 = vmatprep.subr.mxu1 %v4660_v24 }
 0x18a   :  { %2565 = vbcast.lane.b32.xlu1 %v2559_v56, 264 }
 0x18e   :  { %2730 = vbcast.lane.b32.xlu1 %v2724_v57, 264 }
 0x18f   :  { %v4805_v33 = vpop.xlane.xlu1 %1827 }
 0x190   :  { %vm1832_vm2 = vcmp.gt.f32.partialorder %v4805_v33, 1e-08 }
 0x193   :  { %v2555_v34 = vpop.permute.xlu1 %2554 }
 0x19b   :  { %v4773_v58 = vpop.f32.mrf.mxu1 }
 0x19d   :  { %v4140_v59 = vpop.f32.mrf.mxu1 }
 0x19e   :  { %v77_v59 = vrot.slane %v4539_v1, %v4824_v55 }
 0x19f   :  { %v4775_v20 = vpop.f32.mrf.mxu1 }
 0x1a1   :  { %v4147_v60 = vpop.f32.mrf.mxu1 }
 0x1a2   :  { %v85_v60 = vcombine.high %v77_v59, %v77_v59 }
 0x1aa   :  { %2068 = vxpose.xlu0.b32.start.end [1/1] (short) (narrow) %v4737_v45, 16 }
 0x1b5   :  { %v4799_v28 = vpop.xlane.xlu0 %1830 }
 0x1b7   :  { %2100 = vxpose.xlu1.b32.start.end [1/1] (short) (narrow) %v4747_v47, 16 }
 0x1d7   :  { %2561 = vbcast.lane.b32.xlu0 %v2559_v56, 256 }
 0x1d9   :  { %2741 = vbcast.lane.b32.xlu1 %v2735_v61, 264 }
 0x1dd   :  { %2576 = vbcast.lane.b32.xlu1 %v2570_v10, 264 }
 0x1e1   :  { %2642 = vbcast.lane.b32.xlu1 %v2636_v13, 264 }
 0x1e2   :  { %v4807_v37 = vpop.xlane.xlu1 %2296 }
 0x1e5   :  { %2653 = vbcast.lane.b32.xlu1 %v2647_v15, 264 }
 0x1e6   :  { %v2300_v29 = vpop.xlane.xlu0 %2299 }
 0x1e7   :  { %vm2308_vm6 = vcmp.gt.f32.partialorder %v2300_v29, 1e-08 }
 0x1e8   :  { %v2312_v31 = vsel %vm2308_vm6, %v2300_v29, 1e-08  ;;  %vm1613_vm6 = vcmask 1045509  }
 0x1e9   :  { %2752 = vbcast.lane.b32.xlu1 %v2746_v16, 264  ;;  %4316 = vrcp.f32 %v2312_v31 }
 0x1ed   :  { %2587 = vbcast.lane.b32.xlu1 %v2581_v25, 264 }
 0x1f6   :  { %1991 = vadd.xlane.f32.xlu0 %v1990_v26  ;;  %v4317_v35 = vpop.eup %4316 }
 0x1ff   :  { %v4797_v27 = vpop.f32.mrf.mxu1 }
 0x201   :  { %v4154_v19 = vpop.f32.mrf.mxu1 }
 0x202   :  { %v4813_v44 = vpop.xlane.xlu1 %2302 }
 0x206   :  { %v2306_v42 = vpop.xlane.xlu0 %2305  ;;  %v2566_v43 = vpop.permute.xlu1 %2565 }
 0x207   :  { %v4801_v30 = vpop.f32.mrf.mxu1  ;;  %vm2310_vm7 = vcmp.gt.f32.partialorder %v2306_v42, 1e-08 }
 0x208   :  { %v2314_v22 = vsel %vm2310_vm7, %v2306_v42, 1e-08  ;;  %vm2307_vm7 = vcmp.gt.f32.partialorder %v4807_v37, 1e-08 }
 0x209   :  { %v4161_v21 = vpop.f32.mrf.mxu1  ;;  %4318 = vrcp.f32 %v2314_v22 }
 0x20a   :  { %v2731_v4 = vpop.permute.xlu1 %2730 }
 0x20c   :  { %2726 = vbcast.lane.b32.xlu0 %v2724_v57, 256 }
 0x210   :  { %2737 = vbcast.lane.b32.xlu0 %v2735_v61, 256  ;;  %v93_v61 = vrot.slane %v77_v59, %v4824_v55  ;;  %v2834_v59 = vrot.slane %v4747_v47, %v4781_v62 }
 0x211   :  { %1994 = vadd.xlane.f32.xlu1 %v1993_v32 }
 0x214   :  { %2572 = vbcast.lane.b32.xlu0 %v2570_v10, 256  ;;  %v4832_v10 = vrot.slane %v85_v60, %v4824_v55  ;;  %v4885_v60 = vsub.s32 4, %v4686_v39 }
 0x216   :  { %v4319_v56 = vpop.eup %4318  ;;  %v2592_v62 = vrot.slane %v4703_v14, %v4885_v60 }
 0x218   :  { %2638 = vbcast.lane.b32.xlu0 %v2636_v13, 256  ;;  %v4835_v13 = vrot.slane %v93_v61, %v4701_v63 }
 0x21c   :  { %v4166_v36 = vpop.f32.mrf.mxu1  ;;  %2649 = vbcast.lane.b32.xlu0 %v2647_v15, 256  ;;  %v4838_v15 = vsel %vm1205_vm0, %v2555_v34, %v2731_v4 }
 0x21d   :  { %v4809_v38 = vmul.f32 %v4317_v35, %v4166_v36  ;;  %v3106_v19 = vmul.f32 %v4838_v15, %v4835_v13 }
 0x21e   :  { %v4821_v54 = vpop.f32.mrf.mxu1 }
 0x21f   :  { %v3152_v35 = vsel %vm280_vm5, %v3106_v19, -inf  ;;  %v32_v19 = vld [vmem:[%s6197_s2 + $0x10] sm:$0xff] }
 0x220   :  { %2748 = vbcast.lane.b32.xlu0 %v2746_v16, 256 }
 0x222   :  { %2818 = vbcast.lane.b32.xlu1 %v2812_v40, 264 }
 0x224   :  { %2583 = vbcast.lane.b32.xlu0 %v2581_v25, 256  ;;  %v4843_v25 = vrot.slane %v4832_v10, %v4701_v63 }
 0x226   :  { %2829 = vbcast.lane.b32.xlu1 %v2823_v46, 264  ;;  %v2084_v41 = vpop.trf.xlu0 }
 0x227   :  { %4174 = vmatprep.mubr.msk.f32.mxu1 %vm2132_vm4, %v2084_v41  ;;  %v2487_v16 = vsel %vm2132_vm4, %v2084_v41, 0.0  ;;  %v115_v41 = vcombine.high %v93_v61, %v93_v61  ;;  %v35_v61 = vld [vmem:[%s6197_s2 + $0x28] sm:$0xff] }
 0x228   :  { %2814 = vbcast.lane.b32.xlu0 %v2812_v40, 256 }
 0x22a   :  { %v2085_v48 = vpop.trf.xlu0 }
 0x22b   :  { %4175 = vmatmul.mubr.msk.f32.vlgmr.msra.gmra.mxu1 %vm2132_vm4, %v2085_v48  ;;  %v2490_v26 = vsel %vm2132_vm4, %v2085_v48, 0.0  ;;  %v4862_v48 = vrot.slane %v115_v41, %v4701_v63 }
 0x22c   :  { %4178 = vmatpush3.msra.mxu1 %v4660_v24  ;;  %2825 = vbcast.lane.b32.xlu0 %v2823_v46, 256 }
 0x233   :  { %v2116_v51 = vpop.trf.xlu1 }
 0x234   :  { %4179 = vmatprep.mubr.msk.f32.mxu1 %vm2132_vm4, %v2116_v51  ;;  %v2493_v32 = vsel %vm2132_vm4, %v2116_v51, 0.0 }
 0x237   :  { %v2117_v53 = vpop.trf.xlu1 }
 0x238   :  { %4180 = vmatmul.mubr.msk.f32.vlgmr.msra.gmra.mxu1 %vm2132_vm4, %v2117_v53  ;;  %v2496_v34 = vsel %vm2132_vm4, %v2117_v53, 0.0  ;;  %v2757_v53 = vrot.slane %v4737_v45, %v4791_v18  ;;  %vm1833_vm4 = vcmp.gt.f32.partialorder %v4799_v28, 1e-08 }
 0x23c   :  { %v4171_v57 = vpop.f32.mrf.mxu1 }
 0x23d   :  { %v4826_v24 = vmul.f32 %v4319_v56, %v4171_v57  ;;  %v37_v56 = vld [vmem:[%s6197_s2 + $0x38] sm:$0xff]  ;;  %v36_v57 = vld [vmem:[%s6197_s2 + $0x30] sm:$0xff] }
 0x23e   :  { %4033 = vmatprep.subr.mxu0 %v37_v56 }
 0x23f   :  { %4034 = vmatpush3.msra.mxu0 %v37_v56 }
 0x240   :  { %4035 = vmatprep.subr.mxu0 %v36_v57 }
 0x241   :  { %4036 = vmatpush3.msra.mxu0 %v36_v57  ;;  %v252_v57 = vmul.f32 %v4862_v48, %v4548_v2 }
 0x242   :  { %4037 = vmatprep.subr.mxu0 %v35_v61 }
 0x243   :  { %4038 = vmatpush3.msra.mxu0 %v35_v61  ;;  %v253_v61 = vmul.f32 %v4862_v48, %v4534_v0 }
 0x24a   :  { %2488 = vadd.xlane.f32.xlu1 %v2487_v16  ;;  %v34_v16 = vld [vmem:[%s6197_s2 + $0x20] sm:$0xff] }
 0x24b   :  { %v2742_v29 = vpop.permute.xlu1 %2741  ;;  %2491 = vadd.xlane.f32.xlu0 %v2490_v26  ;;  %4039 = vmatprep.subr.mxu0 %v34_v16  ;;  %v33_v26 = vld [vmem:[%s6197_s2 + $0x18] sm:$0xff] }
 0x24c   :  { %v4849_v21 = vsel %vm1205_vm0, %v2566_v43, %v2742_v29  ;;  %4040 = vmatpush3.msra.mxu0 %v34_v16  ;;  %v2669_v29 = vrot.slane %v4713_v17, %v4791_v18 }
 0x24d   :  { %v3108_v31 = vmul.f32 %v4849_v21, %v4843_v25  ;;  %4041 = vmatprep.subr.mxu0 %v33_v26 }
 0x24e   :  { %2494 = vadd.xlane.f32.xlu1 %v2493_v32  ;;  %4042 = vmatpush3.msra.mxu0 %v33_v26  ;;  %v30_v32 = vld [vmem:[%s6197_s2] sm:$0xff]  ;;  %v2932_v26 = vmul.f32 %v4849_v21, %v4534_v0 }
 0x24f   :  { %v3153_v36 = vsel %vm280_vm5, %v3108_v31, -inf  ;;  %v2577_v40 = vpop.permute.xlu1 %2576  ;;  %2497 = vadd.xlane.f32.xlu0 %v2496_v34  ;;  %4043 = vmatprep.subr.mxu0 %v32_v19  ;;  %v31_v31 = vld [vmem:[%s6197_s2 + $0x8] sm:$0xff]  ;;  %v2768_v34 = vrot.slane %v4737_v45, %v4885_v60  ;;  %s4490_s2 = smov 32  }
 0x250   :  { %v3154_v42 = vmax.f32 %v3152_v35, %v3153_v36  ;;  %4044 = vmatpush3.msra.mxu0 %v32_v19  ;;  %v2845_v35 = vrot.slane %v4747_v47, %v4791_v18  ;;  %v4918_v36 = vsub.s32 5, %v4686_v39  ;;  %v2680_v18 = vrot.slane %v4713_v17, %v4885_v60 }
 0x251   :  { %4045 = vmatprep.subr.mxu0 %v31_v31 }
 0x252   :  { %4046 = vmatpush3.msra.mxu0 %v31_v31 }
 0x253   :  { %v4857_v46 = vpop.permute.xlu1 %2642  ;;  %4047 = vmatprep.subr.mxu0 %v30_v32 }
 0x254   :  { %4048 = vmatpush3.msra.mxu0 %v30_v32 }
 0x255   :  { %4050 = vmatmul.mubr.msk.f32.vlgmr.msra.gmra.mxu0 %vm280_vm5, %v4618_v11  ;;  %v2603_v11 = vrot.slane %v4703_v14, %v4918_v36 }
 0x256   :  { %4052 = vmatprep.mubr.msk.f32.mxu0 %vm280_vm5, %v4584_v7  ;;  %v248_v7 = vmul.f32 %v4835_v13, %v4548_v2 }
 0x257   :  { %v4859_v43 = vpop.permute.xlu1 %2653 }
 0x259   :  { %4053 = vmatmul.mubr.msk.f32.gmra.mxu0 %vm280_vm5, %v4588_v8  ;;  %v249_v8 = vmul.f32 %v4835_v13, %v4534_v0 }
 0x25a   :  { %4055 = vmatprep.mubr.msk.f32.mxu0 %vm280_vm5, %v4603_v9  ;;  %v70_v9 = vcombine.high %v4539_v1, %v4539_v1  ;;  %v117_v1 = vcombine.high %v4832_v10, %v4832_v10  ;;  %v2856_v10 = vrot.slane %v4747_v47, %v4885_v60 }
 0x25b   :  { %v2753_v22 = vpop.permute.xlu1 %2752 }
 0x25c   :  { %v4865_v4 = vsel %vm1205_vm0, %v2577_v40, %v2753_v22  ;;  %v2562_v40 = vpop.permute.xlu0 %2561  ;;  %v2779_v22 = vrot.slane %v4737_v45, %v4918_v36 }
 0x25d   :  { %v3110_v23 = vmul.f32 %v4865_v4, %v4862_v48  ;;  %4056 = vmatmul.mubr.msk.f32.gmra.mxu0 %vm280_vm5, %v4622_v12  ;;  %v250_v12 = vmul.f32 %v4843_v25, %v4548_v2 }
 0x25e   :  { %4058 = vmatprep.mubr.msk.f32.mxu0 %vm280_vm5, %v248_v7 }
 0x25f   :  { %v3155_v51 = vsel %vm280_vm5, %v3110_v23, -inf  ;;  %2664 = vbcast.lane.b32.xlu1 %v2658_v49, 264  ;;  %v251_v23 = vmul.f32 %v4843_v25, %v4534_v0 }
 0x260   :  { %v4872_v52 = vmax.f32 %v3154_v42, %v3155_v51  ;;  %v2930_v51 = vmul.f32 %v4838_v15, %v4534_v0  ;;  %v4961_v15 = vrot.slane %v117_v1, %v4701_v63 }
 0x261   :  { %4059 = vmatmul.mubr.msk.f32.gmra.mxu0 %vm280_vm5, %v249_v8 }
 0x262   :  { %4061 = vmatprep.mubr.msk.f32.mxu0 %vm280_vm5, %v250_v12  ;;  %v255_v21 = vmul.f32 %v4961_v15, %v4534_v0 }
 0x263   :  { %2763 = vbcast.lane.b32.xlu1 %v2757_v53, 264 }
 0x265   :  { %2660 = vbcast.lane.b32.xlu0 %v2658_v49, 256  ;;  %v84_v49 = vrot.slane %v70_v9, %v4824_v55  ;;  %4062 = vmatmul.mubr.msk.f32.gmra.mxu0 %vm280_vm5, %v251_v23 }
 0x266   :  { %4064 = vmatprep.mubr.msk.f32.mxu0 %vm280_vm5, %v252_v57 }
 0x267   :  { %2840 = vbcast.lane.b32.xlu1 %v2834_v59, 264  ;;  %v100_v16 = vrot.slane %v84_v49, %v4824_v55 }
 0x269   :  { %2759 = vbcast.lane.b32.xlu0 %v2757_v53, 256  ;;  %4065 = vmatmul.mubr.msk.f32.gmra.mxu0 %vm280_vm5, %v253_v61  ;;  %v5005_v61 = vsub.s32 6, %v4686_v39 }
 0x26b   :  { %2598 = vbcast.lane.b32.xlu1 %v2592_v62, 264 }
 0x26d   :  { %2836 = vbcast.lane.b32.xlu0 %v2834_v59, 256 }
 0x26f   :  { %2675 = vbcast.lane.b32.xlu1 %v2669_v29, 264 }
 0x271   :  { %2594 = vbcast.lane.b32.xlu0 %v2592_v62, 256  ;;  %v86_v62 = vcombine.high %v84_v49, %v84_v49 }
 0x273   :  { %2774 = vbcast.lane.b32.xlu1 %v2768_v34, 264 }
 0x275   :  { %2671 = vbcast.lane.b32.xlu0 %v2669_v29, 256 }
 0x277   :  { %2851 = vbcast.lane.b32.xlu1 %v2845_v35, 264 }
 0x279   :  { %2770 = vbcast.lane.b32.xlu0 %v2768_v34, 256  ;;  %v254_v34 = vmul.f32 %v4961_v15, %v4548_v2 }
 0x27b   :  { %2609 = vbcast.lane.b32.xlu1 %v2603_v11, 264  ;;  %4067 = vmatprep.mubr.msk.f32.mxu0 %vm280_vm5, %v254_v34 }
 0x27c   :  { %4068 = vmatmul.mubr.msk.f32.gmra.mxu0 %vm280_vm5, %v255_v21 }
 0x27d   :  { %2847 = vbcast.lane.b32.xlu0 %v2845_v35, 256 }
 0x27f   :  { %2686 = vbcast.lane.b32.xlu1 %v2680_v18, 264  ;;  %v1992_v42 = vpop.xlane.xlu0 %1991 }
 0x280   :  { %vm1996_vm8 = vcmp.gt.f32.partialorder %v1992_v42, 1e-08 }
 0x281   :  { %v1998_v41 = vsel %vm1996_vm8, %v1992_v42, 1e-08  ;;  %2605 = vbcast.lane.b32.xlu0 %v2603_v11, 256 }
 0x282   :  { %4320 = vrcp.f32 %v1998_v41 }
 0x283   :  { %2785 = vbcast.lane.b32.xlu1 %v2779_v22, 264  ;;  %v2727_v53 = vpop.permute.xlu0 %2726 }
 0x284   :  { %v2897_v56 = vsel %vm1205_vm0, %v4759_v50, %v2727_v53  ;;  %v2962_v50 = vsel %vm280_vm5, %v2930_v51, -inf  ;;  %v116_v53 = vcombine.high %v100_v16, %v100_v16 }
 0x285   :  { %v2929_v59 = vmul.f32 %v2897_v56, %v4548_v2  ;;  %2682 = vbcast.lane.b32.xlu0 %v2680_v18, 256  ;;  %v3105_v60 = vmul.f32 %v2897_v56, %v4835_v13  ;;  %v4979_v13 = vrot.slane %v100_v16, %v4701_v63  ;;  %v114_v18 = vrot.slane %v86_v62, %v4824_v55 }
 0x287   :  { %v2961_v19 = vsel %vm280_vm5, %v2929_v59, -inf  ;;  %2862 = vbcast.lane.b32.xlu1 %v2856_v10, 264  ;;  %v2738_v29 = vpop.permute.xlu0 %2737  ;;  %v4985_v8 = vsel %vm280_vm5, %v3105_v60, -inf  ;;  %v256_v23 = vmul.f32 %v4979_v13, %v4548_v2  ;;  %v257_v1 = vmul.f32 %v4979_v13, %v4534_v0 }
 0x288   :  { %v2963_v31 = vmax.f32 %v2961_v19, %v2962_v50  ;;  %v2899_v32 = vsel %vm1205_vm0, %v2562_v40, %v2738_v29  ;;  %v2971_v40 = vsel %vm280_vm5, %v2932_v26, -inf  ;;  %v4999_v56 = vrot.slane %v114_v18, %v4701_v63 }
 0x289   :  { %v2931_v35 = vmul.f32 %v2899_v32, %v4548_v2  ;;  %v3107_v11 = vmul.f32 %v2899_v32, %v4843_v25  ;;  %2781 = vbcast.lane.b32.xlu0 %v2779_v22, 256  ;;  %4070 = vmatprep.mubr.msk.f32.mxu0 %vm280_vm5, %v256_v23  ;;  %v118_v29 = vcombine.high %v114_v18, %v114_v18 }
 0x28a   :  { %v2964_v7 = vrot.slane %v2963_v31, 4  ;;  %4071 = vmatmul.mubr.msk.f32.gmra.mxu0 %vm280_vm5, %v257_v1  ;;  %v258_v26 = vmul.f32 %v4999_v56, %v4548_v2  ;;  %v259_v19 = vmul.f32 %v4999_v56, %v4534_v0 }
 0x28b   :  { %v2970_v9 = vsel %vm280_vm5, %v2931_v35, -inf  ;;  %v4989_v25 = vsel %vm280_vm5, %v3107_v11, -inf  ;;  %v2573_v42 = vpop.permute.xlu0 %2572  ;;  %v5026_v11 = vrot.slane %v4703_v14, %v5005_v61  ;;  %v5041_v23 = vrot.slane %v118_v29, %v4701_v63 }
 0x28c   :  { %v2965_v12 = vmax.f32 %v2963_v31, %v2964_v7  ;;  %v2972_v41 = vmax.f32 %v2970_v9, %v2971_v40  ;;  %v3139_v22 = vmax.f32 %v4985_v8, %v4989_v25  ;;  %4073 = vmatprep.mubr.msk.f32.mxu0 %vm280_vm5, %v258_v26  ;;  %v5018_v31 = vrot.slane %v116_v53, %v4701_v63  ;;  %v5034_v9 = vpop.permute.xlu1 %2587 }
 0x28d   :  { %2858 = vbcast.lane.b32.xlu0 %v2856_v10, 256  ;;  %v126_v10 = vrot.slane %v4573_v6, %v4824_v55  ;;  %v2934_v40 = vmul.f32 %v4865_v4, %v4534_v0 }
 0x28e   :  { %v2966_v49 = vrot.slane %v2965_v12, 2  ;;  %v2973_v51 = vrot.slane %v2972_v41, 4  ;;  %4074 = vmatmul.mubr.msk.f32.gmra.mxu0 %vm280_vm5, %v259_v19  ;;  %v260_v21 = vmul.f32 %v5018_v31, %v4548_v2  ;;  %v261_v18 = vmul.f32 %v5018_v31, %v4534_v0 }
 0x28f   :  { %v4321_v57 = vpop.eup %4320  ;;  %v5002_v59 = vpop.permute.xlu0 %2638  ;;  %v134_v7 = vcombine.high %v126_v10, %v126_v10  ;;  %v2980_v19 = vsel %vm280_vm5, %v2934_v40, -inf }
 0x290   :  { %v2967_v62 = vmax.f32 %v2965_v12, %v2966_v49  ;;  %v2974_v50 = vmax.f32 %v2972_v41, %v2973_v51  ;;  %v2001_v16 = vmul.f32 %v4321_v57, %v4797_v27  ;;  %v142_v27 = vrot.slane %v126_v10, %v4824_v55  ;;  %4076 = vmatprep.mubr.msk.f32.mxu0 %vm280_vm5, %v260_v21 }
 0x291   :  { %v119_v41 = vcombine.high %v4573_v6, %v4573_v6  ;;  %v5045_v51 = vrot.slane %v4713_v17, %v4918_v36  ;;  %v262_v6 = vmul.f32 %v5041_v23, %v4548_v2  ;;  %v263_v10 = vmul.f32 %v5041_v23, %v4534_v0 }
 0x292   :  { %v2975_v60 = vrot.slane %v2974_v50, 2  ;;  %2517 = vrot.lane.b32.xlu1 %v2001_v16, %s4490_s2  ;;  %v2968_v32 = vrot.slane %v2967_v62, 1  ;;  %v203_v4 = vrot.slane %v142_v27, %v4701_v63  ;;  %4077 = vmatmul.mubr.msk.f32.gmra.mxu0 %vm280_vm5, %v261_v18  ;;  %v156_v16 = vrot.slane %v134_v7, %v4824_v55 }
 0x293   :  { %v5020_v34 = vpop.permute.xlu0 %2649  ;;  %v164_v26 = vcombine.high %v142_v27, %v142_v27  ;;  %4079 = vmatprep.mubr.msk.f32.mxu0 %vm280_vm5, %v262_v6  ;;  %v5096_v6 = vld [vmem:[%s6196_s1 + $0x18] sm:$0xff] }
 0x294   :  { %v2976_v35 = vmax.f32 %v2974_v50, %v2975_v60  ;;  %v2969_v1 = vmax.f32 %v2967_v62, %v2968_v32  ;;  %v5063_v32 = vrot.slane %v119_v41, %v4824_v55  ;;  %v264_v18 = vmul.f32 %v203_v4, %v4568_v5 }
 0x295   :  { %v265_v40 = vmul.f32 %v203_v4, %v4553_v3  ;;  %v5090_v3 = vrot.slane %v164_v26, %v4701_v63  ;;  %v5105_v26 = vld [vmem:[%s6196_s1 + $0x10] sm:$0xff] }
 0x296   :  { %v2977_v12 = vrot.slane %v2976_v35, 1  ;;  %2620 = vbcast.lane.b32.xlu1 %v5026_v11, 264  ;;  %v3341_v0 = vmul.f32 %v2969_v1, %v2969_v1  ;;  %4080 = vmatmul.mubr.msk.f32.gmra.mxu0 %vm280_vm5, %v263_v10 }
 0x297   :  { %v2749_v49 = vpop.permute.xlu0 %2748  ;;  %4082 = vmatprep.mubr.msk.f32.mxu0 %vm280_vm5, %v264_v18  ;;  %v268_v18 = vmul.f32 %v5105_v26, %v5090_v3 }
 0x298   :  { %v2978_v53 = vmax.f32 %v2976_v35, %v2977_v12  ;;  %v2901_v57 = vsel %vm1205_vm0, %v2573_v42, %v2749_v49  ;;  %v166_v49 = vcombine.high %v156_v16, %v156_v16 }
 0x299   :  { %v2933_v62 = vmul.f32 %v2901_v57, %v4548_v2  ;;  %v3109_v50 = vmul.f32 %v2901_v57, %v4862_v48 }
 0x29a   :  { %v5059_v60 = vsel %vm1606_vm9, %v2978_v53, %v2969_v1  ;;  %v3342_v29 = vmul.f32 %v2978_v53, %v2978_v53  ;;  %v1995_v42 = vpop.xlane.xlu1 %1994  ;;  %2697 = vbcast.lane.b32.xlu1 %v5045_v51, 264  ;;  %v5083_v53 = vrot.slane %v5063_v32, %v4824_v55  ;;  %4083 = vmatmul.mubr.msk.f32.gmra.mxu0 %vm280_vm5, %v265_v40 }
 0x29b   :  { %v2979_v2 = vsel %vm280_vm5, %v2933_v62, -inf  ;;  %v3140_v48 = vsel %vm280_vm5, %v3109_v50, -inf  ;;  %vm1997_vm10 = vcmp.gt.f32.partialorder %v1995_v42, 1e-08  ;;  %v5068_v27 = vpop.permute.xlu0 %2583 }
 0x29c   :  { %v2981_v35 = vmax.f32 %v2979_v2, %v2980_v19  ;;  %v5074_v21 = vmax.f32 %v3139_v22, %v3140_v48  ;;  %v1999_v7 = vsel %vm1997_vm10, %v1995_v42, 1e-08  ;;  %v5079_v12 = vsel %vm1606_vm9, %v3342_v29, %v3341_v0 }
 0x29d   :  { %4322 = vrcp.f32 %v1999_v7  ;;  %v207_v22 = vrot.slane %v156_v16, %v4701_v63  ;;  %v5111_v48 = vrot.slane %v166_v49, %v4701_v63  ;;  %v135_v7 = vcombine.high %v5063_v32, %v5063_v32 }
 0x29e   :  { %v2982_v41 = vrot.slane %v2981_v35, 4  ;;  %v2819_v1 = vpop.permute.xlu1 %2818  ;;  %v165_v32 = vcombine.high %v5083_v53, %v5083_v53  ;;  %vm2309_vm10 = vcmp.gt.f32.partialorder %v4813_v44, 1e-08 }
 0x29f   :  { %v2914_v8 = vsel %vm1205_vm0, %v4857_v46, %v2819_v1  ;;  %v2815_v25 = vpop.permute.xlu0 %2814  ;;  %v266_v19 = vmul.f32 %v5105_v26, %v207_v22  ;;  %v267_v29 = vmul.f32 %v5096_v6, %v207_v22 }
 0x2a0   :  { %v2983_v57 = vmax.f32 %v2981_v35, %v2982_v41  ;;  %v2946_v10 = vmul.f32 %v5096_v6, %v2914_v8  ;;  %v3122_v62 = vmul.f32 %v2914_v8, %v203_v4  ;;  %v2913_v46 = vsel %vm1205_vm0, %v5002_v59, %v2815_v25 }
 0x2a1   :  { %v2945_v50 = vmul.f32 %v2913_v46, %v4568_v5  ;;  %v3121_v16 = vmul.f32 %v2913_v46, %v203_v4  ;;  %v5115_v5 = vrot.slane %v5083_v53, %v4701_v63  ;;  %4085 = vmatprep.mubr.msk.f32.mxu0 %vm280_vm5, %v266_v19  ;;  %v269_v25 = vmul.f32 %v5096_v6, %v5090_v3 }
 0x2a2   :  { %v2984_v42 = vrot.slane %v2983_v57, 2  ;;  %v3034_v0 = vsel %vm280_vm5, %v2946_v10, -inf  ;;  %v2830_v2 = vpop.permute.xlu1 %2829  ;;  %4086 = vmatmul.mubr.msk.f32.gmra.mxu0 %vm280_vm5, %v267_v29  ;;  %v5128_v8 = vsel %vm280_vm5, %v3122_v62, -inf  ;;  %v270_v53 = vmul.f32 %v5105_v26, %v5111_v48 }
 0x2a3   :  { %v3033_v59 = vsel %vm280_vm5, %v2945_v50, -inf  ;;  %v2916_v4 = vsel %vm1205_vm0, %v4859_v43, %v2830_v2  ;;  %v2826_v35 = vpop.permute.xlu0 %2825  ;;  %4088 = vmatprep.mubr.msk.f32.mxu0 %vm280_vm5, %v268_v18  ;;  %v271_v2 = vmul.f32 %v5096_v6, %v5111_v48 }
 0x2a4   :  { %v2985_v40 = vmax.f32 %v2983_v57, %v2984_v42  ;;  %v3035_v41 = vmax.f32 %v3033_v59, %v3034_v0  ;;  %v2948_v1 = vmul.f32 %v5096_v6, %v2916_v4  ;;  %v3124_v49 = vmul.f32 %v2916_v4, %v207_v22 }
 0x2a5   :  { %v2915_v43 = vsel %vm1205_vm0, %v5020_v34, %v2826_v35  ;;  %v5147_v0 = vsel %vm280_vm5, %v3121_v16, -inf  ;;  %v163_v35 = vrot.slane %v135_v7, %v4824_v55  ;;  %v273_v7 = vmul.f32 %v5096_v6, %v5115_v5 }
 0x2a6   :  { %v2986_v57 = vrot.slane %v2985_v40, 1  ;;  %v3036_v10 = vrot.slane %v3035_v41, 4  ;;  %v3043_v46 = vsel %vm280_vm5, %v2948_v1, -inf  ;;  %v5139_v50 = vsel %vm280_vm5, %v3124_v49, -inf  ;;  %4089 = vmatmul.mubr.msk.f32.gmra.mxu0 %vm280_vm5, %v269_v25 }
 0x2a7   :  { %v3184_v62 = vmax.f32 %v5128_v8, %v5139_v50  ;;  %v2947_v34 = vmul.f32 %v5105_v26, %v2915_v43  ;;  %v3123_v19 = vmul.f32 %v2915_v43, %v207_v22  ;;  %4091 = vmatprep.mubr.msk.f32.mxu0 %vm280_vm5, %v270_v53  ;;  %v272_v22 = vmul.f32 %v5105_v26, %v5115_v5 }
 0x2a8   :  { %v2987_v29 = vmax.f32 %v2985_v40, %v2986_v57  ;;  %v3037_v42 = vmax.f32 %v3035_v41, %v3036_v10  ;;  %v5168_v25 = vrot.slane %v163_v35, %v4701_v63 }
 0x2a9   :  { %v3042_v59 = vsel %vm280_vm5, %v2947_v34, -inf  ;;  %v5154_v4 = vsel %vm280_vm5, %v3123_v19, -inf  ;;  %v167_v34 = vcombine.high %v163_v35, %v163_v35 }
 0x2aa   :  { %v4323_v18 = vpop.eup %4322  ;;  %v5162_v16 = vsel %vm1607_vm11, %v2987_v29, %v5059_v60  ;;  %v3343_v40 = vmul.f32 %v2987_v29, %v2987_v29  ;;  %v3038_v41 = vrot.slane %v3037_v42, 2  ;;  %v3044_v1 = vmax.f32 %v3042_v59, %v3043_v46  ;;  %4092 = vmatmul.mubr.msk.f32.gmra.mxu0 %vm280_vm5, %v271_v2 }
 0x2ab   :  { %v2003_v43 = vmul.f32 %v4323_v18, %v4801_v30  ;;  %4094 = vmatprep.mubr.msk.f32.mxu0 %vm280_vm5, %v272_v22  ;;  %v274_v30 = vmul.f32 %v5105_v26, %v5168_v25  ;;  %v5182_v46 = vrot.slane %v165_v32, %v4701_v63  ;;  %v5192_v2 = vrot.slane %v167_v34, %v4701_v63 }
 0x2ac   :  { %v3039_v57 = vmax.f32 %v3037_v42, %v3038_v41  ;;  %v3045_v10 = vrot.slane %v3044_v1, 4  ;;  %v5175_v60 = vsel %vm1607_vm11, %v3343_v40, %v5079_v12  ;;  %v275_v12 = vmul.f32 %v5096_v6, %v5168_v25 }
 0x2ad   :  { %2519 = vrot.lane.b32.xlu0 %v2003_v43, %s4490_s2  ;;  %v276_v42 = vmul.f32 %v5105_v26, %v5182_v46  ;;  %6222 = vst [vmem:[#allocation9_spill] sm:$0xff] %v5192_v2  ;;  %v277_v35 = vmul.f32 %v5096_v6, %v5182_v46  ;;  %v279_v43 = vmul.f32 %v5096_v6, %v5192_v2 }
 0x2ae   :  { %v3046_v19 = vmax.f32 %v3044_v1, %v3045_v10  ;;  %v3040_v53 = vrot.slane %v3039_v57, 1  ;;  %4095 = vmatmul.mubr.msk.f32.gmra.mxu0 %vm280_vm5, %v273_v7  ;;  %v6223_v8 = vmax.f32 %v5147_v0, %v5154_v4 }
 0x2af   :  { %4097 = vmatprep.mubr.msk.f32.mxu0 %vm280_vm5, %v274_v30 }
 0x2b0   :  { %v3047_v29 = vrot.slane %v3046_v19, 2  ;;  %v3041_v59 = vmax.f32 %v3039_v57, %v3040_v53 }
 0x2b1   :  { %2616 = vbcast.lane.b32.xlu0 %v5026_v11, 256  ;;  %v278_v11 = vmul.f32 %v5105_v26, %v5192_v2 }
 0x2b2   :  { %v3048_v32 = vmax.f32 %v3046_v19, %v3047_v29  ;;  %4098 = vmatmul.mubr.msk.f32.gmra.mxu0 %vm280_vm5, %v275_v12  ;;  %v3349_v40 = vmul.f32 %v3041_v59, %v3041_v59 }
 0x2b3   :  { %4100 = vmatprep.mubr.msk.f32.mxu0 %vm280_vm5, %v276_v42 }
 0x2b4   :  { %v3049_v22 = vrot.slane %v3048_v32, 1 }
 0x2b5   :  { %2693 = vbcast.lane.b32.xlu0 %v5045_v51, 256 }
 0x2b6   :  { %v3050_v18 = vmax.f32 %v3048_v32, %v3049_v22  ;;  %4101 = vmatmul.mubr.msk.f32.gmra.mxu0 %vm280_vm5, %v277_v35 }
 0x2b7   :  { %4103 = vmatprep.mubr.msk.f32.mxu0 %vm280_vm5, %v278_v11 }
 0x2b8   :  { %v5202_v41 = vsel %vm1606_vm9, %v3050_v18, %v3041_v59  ;;  %v3350_v1 = vmul.f32 %v3050_v18, %v3050_v18  ;;  %v5217_v59 = vld [vmem:[%s6196_s1 + $0x8] sm:$0xff]  ;;  %v5226_v18 = vld [vmem:[%s6196_s1] sm:$0xff] }
 0x2ba   :  { %v5209_v51 = vsel %vm1606_vm9, %v3350_v1, %v3349_v40  ;;  %4104 = vmatmul.mubr.msk.f32.gmra.mxu0 %vm280_vm5, %v279_v43 }
 0x2d3   :  { %v2489_v57 = vpop.xlane.xlu1 %2488 }
 0x2d4   :  { %v2492_v10 = vpop.xlane.xlu0 %2491  ;;  %vm2499_vm13 = vcmp.gt.f32.partialorder %v2489_v57, 1e-08 }
 0x2d5   :  { %vm2500_vm12 = vcmp.gt.f32.partialorder %v2492_v10, 1e-08  ;;  %v2503_v29 = vsel %vm2499_vm13, %v2489_v57, 1e-08 }
 0x2d6   :  { %v2504_v34 = vsel %vm2500_vm12, %v2492_v10, 1e-08 }
 0x2d7   :  { %v2495_v7 = vpop.xlane.xlu1 %2494  ;;  %4324 = vrcp.f32 %v2504_v34 }
 0x2d8   :  { %v2498_v30 = vpop.xlane.xlu0 %2497  ;;  %4326 = vrcp.f32 %v2503_v29  ;;  %vm2501_vm14 = vcmp.gt.f32.partialorder %v2495_v7, 1e-08 }
 0x2d9   :  { %vm2502_vm15 = vcmp.gt.f32.partialorder %v2498_v30, 1e-08 }
 0x2db   :  { %v2665_v19 = vpop.permute.xlu1 %2664 }
 0x2dc   :  { %v2661_v53 = vpop.permute.xlu0 %2660 }
 0x2df   :  { %v2764_v12 = vpop.permute.xlu1 %2763 }
 0x2e0   :  { %v2904_v42 = vsel %vm1205_vm0, %v5034_v9, %v2764_v12  ;;  %v2760_v32 = vpop.permute.xlu0 %2759 }
 0x2e1   :  { %v2936_v22 = vmul.f32 %v5217_v59, %v2904_v42  ;;  %v3112_v35 = vmul.f32 %v2904_v42, %v4961_v15  ;;  %v2903_v11 = vsel %vm1205_vm0, %v5068_v27, %v2760_v32 }
 0x2e2   :  { %v2935_v9 = vmul.f32 %v5226_v18, %v2903_v11  ;;  %v3111_v40 = vmul.f32 %v2903_v11, %v4961_v15 }
 0x2e3   :  { %v2989_v1 = vsel %vm280_vm5, %v2936_v22, -inf  ;;  %v5232_v43 = vsel %vm280_vm5, %v3112_v35, -inf  ;;  %v2841_v57 = vpop.permute.xlu1 %2840 }
 0x2e4   :  { %v2988_v27 = vsel %vm280_vm5, %v2935_v9, -inf  ;;  %v5238_v34 = vsel %vm280_vm5, %v3111_v40, -inf  ;;  %v2918_v29 = vsel %vm1205_vm0, %v2665_v19, %v2841_v57  ;;  %v2837_v12 = vpop.permute.xlu0 %2836  ;;  %v4325_v49 = vpop.eup %4324 }
 0x2e5   :  { %v2990_v42 = vmax.f32 %v2988_v27, %v2989_v1  ;;  %v3143_v15 = vmax.f32 %v5074_v21, %v5238_v34  ;;  %v2950_v32 = vmul.f32 %v5096_v6, %v2918_v29  ;;  %v3126_v22 = vmul.f32 %v2918_v29, %v5090_v3  ;;  %v5255_v34 = vpop.f32.mrf.mxu1 }
 0x2e6   :  { %v2917_v35 = vsel %vm1205_vm0, %v2661_v53, %v2837_v12  ;;  %v2506_v29 = vsel %vm2502_vm15, %v2498_v30, 1e-08 }
 0x2e7   :  { %v2991_v11 = vrot.slane %v2990_v42, 4  ;;  %v3052_v9 = vsel %vm280_vm5, %v2950_v32, -inf  ;;  %v3185_v40 = vsel %vm280_vm5, %v3126_v22, -inf  ;;  %v2949_v19 = vmul.f32 %v5105_v26, %v2917_v35  ;;  %v2599_v57 = vpop.permute.xlu1 %2598 }
 0x2e8   :  { %v5252_v21 = vmax.f32 %v3184_v62, %v3185_v40  ;;  %v3125_v1 = vmul.f32 %v2917_v35, %v5090_v3  ;;  %v2595_v27 = vpop.permute.xlu0 %2594  ;;  %v2505_v32 = vsel %vm2501_vm14, %v2495_v7, 1e-08  ;;  %4328 = vrcp.f32 %v2506_v29 }
 0x2e9   :  { %v2992_v53 = vmax.f32 %v2990_v42, %v2991_v11  ;;  %v3051_v12 = vsel %vm280_vm5, %v2949_v19, -inf  ;;  %4330 = vrcp.f32 %v2505_v32 }
 0x2ea   :  { %v3053_v10 = vmax.f32 %v3051_v12, %v3052_v9  ;;  %v3170_v22 = vsel %vm280_vm5, %v3125_v1, -inf  ;;  %v4327_v9 = vpop.eup %4326 }
 0x2eb   :  { %v2993_v2 = vrot.slane %v2992_v53, 2  ;;  %v5262_v50 = vmax.f32 %v6223_v8, %v3170_v22  ;;  %v2676_v62 = vpop.permute.xlu1 %2675  ;;  %v4176_v3 = vpop.f32.mrf.mxu1 }
 0x2ec   :  { %v3054_v35 = vrot.slane %v3053_v10, 4  ;;  %v2510_v40 = vmul.f32 %v4325_v49, %v4176_v3  ;;  %v2672_v30 = vpop.permute.xlu0 %2671 }
 0x2ed   :  { %v2994_v42 = vmax.f32 %v2992_v53, %v2993_v2  ;;  %v2396_v11 = vpop.f32.mrf.mxu1 }
 0x2ee   :  { %v3055_v7 = vmax.f32 %v3053_v10, %v3054_v35  ;;  %2531 = vrot.lane.b32.xlu1 %v2510_v40, %s4490_s2  ;;  %v2508_v0 = vmul.f32 %v4327_v9, %v2396_v11 }
 0x2ef   :  { %v2995_v19 = vrot.slane %v2994_v42, 1  ;;  %v2775_v1 = vpop.permute.xlu1 %2774 }
 0x2f0   :  { %v3056_v12 = vrot.slane %v3055_v7, 2  ;;  %v2906_v4 = vsel %vm1205_vm0, %v2599_v57, %v2775_v1  ;;  %v2771_v22 = vpop.permute.xlu0 %2770 }
 0x2f1   :  { %v2996_v8 = vmax.f32 %v2994_v42, %v2995_v19  ;;  %v2938_v29 = vmul.f32 %v5217_v59, %v2906_v4  ;;  %v3114_v49 = vmul.f32 %v2906_v4, %v4979_v13  ;;  %v2905_v2 = vsel %vm1205_vm0, %v2595_v27, %v2771_v22 }
 0x2f2   :  { %v3057_v53 = vmax.f32 %v3055_v7, %v3056_v12  ;;  %v2937_v10 = vmul.f32 %v5226_v18, %v2905_v2  ;;  %v3113_v32 = vmul.f32 %v2905_v2, %v4979_v13  ;;  %2529 = vrot.lane.b32.xlu1 %v2508_v0, %s4490_s2  ;;  %v6224_v27 = vmax.f32 %v4872_v52, %v5232_v43 }
 0x2f3   :  { %v5274_v3 = vsel %vm1609_vm1, %v2996_v8, %v5162_v16  ;;  %v3344_v57 = vmul.f32 %v2996_v8, %v2996_v8  ;;  %v2998_v35 = vsel %vm280_vm5, %v2938_v29, -inf  ;;  %v3159_v40 = vsel %vm280_vm5, %v3114_v49, -inf  ;;  %v2852_v42 = vpop.permute.xlu1 %2851 }
 0x2f4   :  { %v3058_v11 = vrot.slane %v3057_v53, 1  ;;  %v5281_v7 = vmax.f32 %v6224_v27, %v3159_v40  ;;  %v2997_v13 = vsel %vm280_vm5, %v2937_v10, -inf  ;;  %v3144_v9 = vsel %vm280_vm5, %v3113_v32, -inf  ;;  %v2848_v19 = vpop.permute.xlu0 %2847 }
 0x2f5   :  { %v2999_v1 = vmax.f32 %v2997_v13, %v2998_v35  ;;  %v5285_v16 = vmax.f32 %v3143_v15, %v3144_v9  ;;  %v2920_v12 = vsel %vm1205_vm0, %v2676_v62, %v2852_v42  ;;  %v2919_v0 = vsel %vm1205_vm0, %v2672_v30, %v2848_v19  ;;  %v4329_v35 = vpop.eup %4328 }
 0x2f6   :  { %v3059_v4 = vmax.f32 %v3057_v53, %v3058_v11  ;;  %v2952_v22 = vmul.f32 %v5096_v6, %v2920_v12  ;;  %v3128_v8 = vmul.f32 %v2920_v12, %v5111_v48  ;;  %v2951_v52 = vmul.f32 %v5105_v26, %v2919_v0 }
 0x2f7   :  { %v3000_v43 = vrot.slane %v2999_v1, 4  ;;  %v3127_v29 = vmul.f32 %v2919_v0, %v5111_v48  ;;  %v2610_v49 = vpop.permute.xlu1 %2609  ;;  %v5295_v2 = vsel %vm1609_vm1, %v3344_v57, %v5175_v60  ;;  %v5318_v0 = vsub.s32 7, %v4686_v39 }
 0x2f8   :  { %v5299_v15 = vsel %vm1607_vm11, %v3059_v4, %v5202_v41  ;;  %v3351_v62 = vmul.f32 %v3059_v4, %v3059_v4  ;;  %v3061_v30 = vsel %vm280_vm5, %v2952_v22, -inf  ;;  %v5303_v53 = vsel %vm280_vm5, %v3128_v8, -inf  ;;  %v4181_v10 = vpop.f32.mrf.mxu1  ;;  %v2606_v32 = vpop.permute.xlu0 %2605 }
 0x2f9   :  { %v3001_v40 = vmax.f32 %v2999_v1, %v3000_v43  ;;  %v3188_v48 = vmax.f32 %v5252_v21, %v5303_v53  ;;  %v3060_v60 = vsel %vm280_vm5, %v2951_v52, -inf  ;;  %v5309_v57 = vsel %vm280_vm5, %v3127_v29, -inf  ;;  %v4331_v41 = vpop.eup %4330  ;;  %6225 = vst [vmem:[#allocation10_spill] sm:$0xff] %v5318_v0  ;;  %v47_v21 = vld [vmem:[%s6198_s3 + $0x48] sm:$0xff] }
 0x2fa   :  { %v3062_v42 = vmax.f32 %v3060_v60, %v3061_v30  ;;  %v3173_v11 = vmax.f32 %v5262_v50, %v5309_v57  ;;  %v2514_v27 = vmul.f32 %v4329_v35, %v4181_v10  ;;  %v2478_v13 = vpop.f32.mrf.mxu1  ;;  %v5315_v9 = vsel %vm1607_vm11, %v3351_v62, %v5209_v51  ;;  %v53_v51 = vld [vmem:[%s6198_s3 + $0x78] sm:$0xff]  ;;  %v52_v60 = vld [vmem:[%s6198_s3 + $0x70] sm:$0xff] }
 0x2fb   :  { %v3002_v19 = vrot.slane %v3001_v40, 2  ;;  %v2512_v1 = vmul.f32 %v4331_v41, %v2478_v13  ;;  %v2687_v12 = vpop.permute.xlu1 %2686  ;;  %v2790_v43 = vrot.slane %v4737_v45, %v5005_v61  ;;  %v2625_v62 = vrot.slane %v4703_v14, %v5318_v0  ;;  %4216 = vmatprep.subr.mxu0 %v53_v51 }
 0x2fc   :  { %v3063_v4 = vrot.slane %v3062_v42, 4  ;;  %2535 = vrot.lane.b32.xlu1 %v2514_v27, %s4490_s2  ;;  %v2683_v22 = vpop.permute.xlu0 %2682  ;;  %4217 = vmatpush3.msra.mxu0 %v53_v51  ;;  %v1835_v53 = vsel %vm1833_vm4, %v4799_v28, 1e-08  ;;  %v2801_v28 = vrot.slane %v4737_v45, %v5318_v0  ;;  %v2878_v45 = vrot.slane %v4747_v47, %v5005_v61 }
 0x2fd   :  { %v3003_v8 = vmax.f32 %v3001_v40, %v3002_v19  ;;  %2533 = vrot.lane.b32.xlu0 %v2512_v1, %s4490_s2  ;;  %v2867_v40 = vrot.slane %v4747_v47, %v4918_v36  ;;  %4218 = vmatprep.subr.mxu0 %v52_v60  ;;  %v51_v1 = vld [vmem:[%s6198_s3 + $0x68] sm:$0xff] }
 0x2fe   :  { %v3064_v52 = vmax.f32 %v3062_v42, %v3063_v4  ;;  %4219 = vmatpush3.msra.mxu0 %v52_v60 }
 0x2ff   :  { %v3004_v29 = vrot.slane %v3003_v8, 1  ;;  %v2786_v39 = vpop.permute.xlu1 %2785  ;;  %4220 = vmatprep.subr.mxu0 %v51_v1 }
 0x300   :  { %v3065_v30 = vrot.slane %v3064_v52, 2  ;;  %v2908_v10 = vsel %vm1205_vm0, %v2610_v49, %v2786_v39  ;;  %2796 = vbcast.lane.b32.xlu1 %v2790_v43, 264  ;;  %v2782_v35 = vpop.permute.xlu0 %2781  ;;  %v1834_v49 = vsel %vm1832_vm2, %v4805_v33, 1e-08  ;;  %4221 = vmatpush3.msra.mxu0 %v51_v1 }
 0x301   :  { %v3005_v41 = vmax.f32 %v3003_v8, %v3004_v29  ;;  %v2940_v42 = vmul.f32 %v5217_v59, %v2908_v10  ;;  %v3116_v14 = vmul.f32 %v2908_v10, %v4999_v56  ;;  %v2907_v27 = vsel %vm1205_vm0, %v2606_v32, %v2782_v35  ;;  %2792 = vbcast.lane.b32.xlu0 %v2790_v43, 256 }
 0x302   :  { %v3066_v13 = vmax.f32 %v3064_v52, %v3065_v30  ;;  %v2939_v36 = vmul.f32 %v5226_v18, %v2907_v27  ;;  %v3115_v19 = vmul.f32 %v2907_v27, %v4999_v56  ;;  %v50_v30 = vld [vmem:[%s6198_s3 + $0x60] sm:$0xff]  ;;  %4332 = vrcp.f32 %v1834_v49 }
 0x303   :  { %v3345_v4 = vmul.f32 %v3005_v41, %v3005_v41  ;;  %v3007_v8 = vsel %vm280_vm5, %v2940_v42, -inf  ;;  %v5349_v32 = vsel %vm280_vm5, %v3116_v14, -inf  ;;  %v2863_v43 = vpop.permute.xlu1 %2862  ;;  %v5353_v33 = vsel %vm1611_vm3, %v3005_v41, %v5274_v3  ;;  %4222 = vmatprep.subr.mxu0 %v50_v30 }
 0x304   :  { %v3067_v52 = vrot.slane %v3066_v13, 1  ;;  %v3006_v51 = vsel %vm280_vm5, %v2939_v36, -inf  ;;  %v5359_v29 = vsel %vm280_vm5, %v3115_v19, -inf  ;;  %2873 = vbcast.lane.b32.xlu1 %v2867_v40, 264  ;;  %v2859_v39 = vpop.permute.xlu0 %2858  ;;  %v2922_v35 = vsel %vm1205_vm0, %v2687_v12, %v2863_v43  ;;  %v49_v36 = vld [vmem:[%s6198_s3 + $0x58] sm:$0xff]  ;;  %4223 = vmatpush3.msra.mxu0 %v50_v30  ;;  %v48_v43 = vld [vmem:[%s6198_s3 + $0x50] sm:$0xff] }
 0x305   :  { %v3008_v10 = vmax.f32 %v3006_v51, %v3007_v8  ;;  %v2921_v60 = vsel %vm1205_vm0, %v2683_v22, %v2859_v39  ;;  %2869 = vbcast.lane.b32.xlu0 %v2867_v40, 256  ;;  %v2954_v42 = vmul.f32 %v5096_v6, %v2922_v35  ;;  %v3130_v14 = vmul.f32 %v2922_v35, %v5115_v5  ;;  %v44_v35 = vld [vmem:[%s6198_s3 + $0x30] sm:$0xff] }
 0x306   :  { %v3068_v41 = vmax.f32 %v3066_v13, %v3067_v52  ;;  %v2953_v27 = vmul.f32 %v5105_v26, %v2921_v60  ;;  %v3129_v12 = vmul.f32 %v2921_v60, %v5115_v5  ;;  %v3384_v22 = vsel %vm1611_vm3, %v3345_v4, %v5295_v2  ;;  %4224 = vmatprep.subr.mxu0 %v49_v36 }
 0x307   :  { %v3009_v19 = vrot.slane %v3008_v10, 4  ;;  %v3070_v1 = vsel %vm280_vm5, %v2954_v42, -inf  ;;  %v3189_v8 = vsel %vm280_vm5, %v3130_v14, -inf  ;;  %v2702_v39 = vrot.slane %v4713_v17, %v5005_v61  ;;  %4225 = vmatpush3.msra.mxu0 %v49_v36  ;;  %v43_v42 = vld [vmem:[%s6198_s3 + $0x28] sm:$0xff] }
 0x308   :  { %v5380_v40 = vsel %vm1609_vm1, %v3068_v41, %v5299_v15  ;;  %v3352_v13 = vmul.f32 %v3068_v41, %v3068_v41  ;;  %2631 = vbcast.lane.b32.xlu1 %v2625_v62, 264  ;;  %v5390_v2 = vmax.f32 %v3188_v48, %v3189_v8  ;;  %v3069_v15 = vsel %vm280_vm5, %v2953_v27, -inf  ;;  %4226 = vmatprep.subr.mxu0 %v48_v43 }
 0x309   :  { %v3010_v5 = vmax.f32 %v3008_v10, %v3009_v19  ;;  %v3174_v4 = vsel %vm280_vm5, %v3129_v12, -inf  ;;  %2627 = vbcast.lane.b32.xlu0 %v2625_v62, 256  ;;  %v3071_v52 = vmax.f32 %v3069_v15, %v3070_v1  ;;  %4227 = vmatpush3.msra.mxu0 %v48_v43  ;;  %4334 = vrcp.f32 %v1835_v53  ;;  %v42_v19 = vld [vmem:[%s6198_s3 + $0x20] sm:$0xff]  ;;  %v61_v1 = vld [vmem:[%s6199_s4 + $0x38] sm:$0xff]  ;;  %v2518_v15 = vpop.permute.xlu1 %2517 }
 0x30a   :  { %v5397_v51 = vmax.f32 %v3173_v11, %v3174_v4  ;;  %v3390_v50 = vsel %vm1609_vm1, %v3352_v13, %v5315_v9  ;;  %v46_v11 = vld [vmem:[%s6198_s3 + $0x40] sm:$0xff]  ;;  %4228 = vmatprep.subr.mxu0 %v47_v21  ;;  %v45_v9 = vld [vmem:[%s6198_s3 + $0x38] sm:$0xff]  ;;  %v2713_v13 = vrot.slane %v4713_v17, %v5318_v0  ;;  %v40_v17 = vld [vmem:[%s6198_s3 + $0x10] sm:$0xff]  ;;  %v2889_v4 = vrot.slane %v4747_v47, %v5318_v0 }
 0x30b   :  { %v3011_v48 = vrot.slane %v3010_v5, 2  ;;  %v3072_v57 = vrot.slane %v3071_v52, 4  ;;  %4229 = vmatpush3.msra.mxu0 %v47_v21  ;;  %4182 = vmatprep.subr.mxu1 %v61_v1  ;;  %v39_v21 = vld [vmem:[%s6198_s3 + $0x8] sm:$0xff] }
 0x30c   :  { %2708 = vbcast.lane.b32.xlu1 %v2702_v39, 264  ;;  %4230 = vmatprep.subr.mxu0 %v46_v11  ;;  %v59_v47 = vld [vmem:[%s6199_s4 + $0x28] sm:$0xff] }
 0x30d   :  { %v3012_v62 = vmax.f32 %v3010_v5, %v3011_v48  ;;  %2704 = vbcast.lane.b32.xlu0 %v2702_v39, 256  ;;  %v3073_v49 = vmax.f32 %v3071_v52, %v3072_v57  ;;  %4231 = vmatpush3.msra.mxu0 %v46_v11  ;;  %v60_v5 = vld [vmem:[%s6199_s4 + $0x30] sm:$0xff]  ;;  %v5476_v11 = vld [vmem:[%s6195_s0] sm:$0xff] }
 0x30e   :  { %4232 = vmatprep.subr.mxu0 %v45_v9  ;;  %4183 = vmatpush3.msra.mxu1 %v61_v1  ;;  %6228 = vst [vmem:[#allocation13_spill] sm:$0xff] %v5476_v11 }
 0x30f   :  { %v3013_v30 = vrot.slane %v3012_v62, 1  ;;  %v3074_v10 = vrot.slane %v3073_v49, 2  ;;  %4233 = vmatpush3.msra.mxu0 %v45_v9  ;;  %v4333_v8 = vpop.eup %4332  ;;  %4184 = vmatprep.subr.mxu1 %v60_v5 }
 0x310   :  { %2807 = vbcast.lane.b32.xlu1 %v2801_v28, 264  ;;  %4234 = vmatprep.subr.mxu0 %v44_v35  ;;  %v1837_v39 = vmul.f32 %v4333_v8, %v4773_v58  ;;  %v38_v58 = vld [vmem:[%s6198_s3] sm:$0xff] }
 0x311   :  { %v3014_v60 = vmax.f32 %v3012_v62, %v3013_v30  ;;  %2803 = vbcast.lane.b32.xlu0 %v2801_v28, 256  ;;  %v3075_v41 = vmax.f32 %v3073_v49, %v3074_v10  ;;  %4235 = vmatpush3.msra.mxu0 %v44_v35  ;;  %v5486_v30 = vld [vmem:[%s6195_s0 + $0x8] sm:$0xff] }
 0x312   :  { %4236 = vmatprep.subr.mxu0 %v43_v42  ;;  %v2523_v53 = vsel %vm1205_vm0, %v1837_v39, %v2518_v15  ;;  %4185 = vmatpush3.msra.mxu1 %v60_v5  ;;  %6229 = vst [vmem:[#allocation14_spill] sm:$0xff] %v5486_v30  ;;  %v2311_v5 = vsel %vm2307_vm7, %v4807_v37, 1e-08  ;;  %v2313_v39 = vsel %vm2309_vm10, %v4813_v44, 1e-08 }
 0x313   :  { %v5427_v14 = vsel %vm1613_vm6, %v3014_v60, %v5353_v33  ;;  %v3346_v27 = vmul.f32 %v3014_v60, %v3014_v60  ;;  %v3076_v36 = vrot.slane %v3075_v41, 1  ;;  %4237 = vmatpush3.msra.mxu0 %v43_v42  ;;  %v41_v33 = vld [vmem:[%s6198_s3 + $0x18] sm:$0xff]  ;;  %4186 = vmatprep.subr.mxu1 %v59_v47  ;;  %v3227_v62 = vmul.f32 %v5476_v11, %v2523_v53  ;;  %v54_v42 = vld [vmem:[%s6199_s4] sm:$0xff] }
 0x314   :  { %2884 = vbcast.lane.b32.xlu1 %v2878_v45, 264  ;;  %4238 = vmatprep.subr.mxu0 %v42_v19  ;;  %v3241_v28 = vmul.f32 %v2523_v53, %v2523_v53 }
 0x315   :  { %2880 = vbcast.lane.b32.xlu0 %v2878_v45, 256  ;;  %v5433_v61 = vsel %vm1613_vm6, %v3346_v27, %v3384_v22  ;;  %v3077_v12 = vmax.f32 %v3075_v41, %v3076_v36  ;;  %4239 = vmatpush3.msra.mxu0 %v42_v19  ;;  %v56_v41 = vld [vmem:[%s6199_s4 + $0x10] sm:$0xff]  ;;  %v55_v45 = vld [vmem:[%s6199_s4 + $0x8] sm:$0xff]  ;;  %v5500_v27 = vpop.f32.mrf.mxu0 }
 0x316   :  { %6226 = vst [vmem:[#allocation11_spill] sm:$0xff] %v5433_v61  ;;  %4240 = vmatprep.subr.mxu0 %v41_v33  ;;  %v4335_v52 = vpop.eup %4334  ;;  %4187 = vmatpush3.msra.mxu1 %v59_v47  ;;  %6230 = vst [vmem:[#allocation15_spill] sm:$0xff] %v5500_v27 }
 0x317   :  { %v5445_v43 = vsel %vm1611_vm3, %v3077_v12, %v5380_v40  ;;  %v3353_v22 = vmul.f32 %v3077_v12, %v3077_v12  ;;  %4241 = vmatpush3.msra.mxu0 %v41_v33  ;;  %v1839_v48 = vmul.f32 %v4335_v52, %v4775_v20  ;;  %v57_v20 = vld [vmem:[%s6199_s4 + $0x18] sm:$0xff]  ;;  %v5502_v36 = vpop.f32.mrf.mxu0 }
 0x318   :  { %2719 = vbcast.lane.b32.xlu1 %v2713_v13, 264  ;;  %4242 = vmatprep.subr.mxu0 %v40_v17  ;;  %6231 = vst [vmem:[#allocation16_spill] sm:$0xff] %v5502_v36  ;;  %4336 = vrsqrt.f32 %v5502_v36  ;;  %vm652_vm8 = vcmp.eq.f32.partialorder %v5502_v36, inf  ;;  %v655_v1 = vand.u32 2147483648, %v5502_v36  ;;  %vm654_vm12 = vcmp.eq.f32.partialorder %v5502_v36, 0.0 }
 0x319   :  { %2715 = vbcast.lane.b32.xlu0 %v2713_v13, 256  ;;  %v5456_v40 = vsel %vm1611_vm3, %v3353_v22, %v3390_v50  ;;  %4243 = vmatpush3.msra.mxu0 %v40_v17  ;;  %v58_v50 = vld [vmem:[%s6199_s4 + $0x20] sm:$0xff]  ;;  %v5505_v19 = vpop.f32.mrf.mxu0 }
 0x31a   :  { %6227 = vst [vmem:[#allocation12_spill] sm:$0xff] %v5456_v40  ;;  %4244 = vmatprep.subr.mxu0 %v39_v21  ;;  %4188 = vmatprep.subr.mxu1 %v58_v50  ;;  %6232 = vst [vmem:[#allocation17_spill] sm:$0xff] %v5505_v19  ;;  %4338 = vrsqrt.f32 %v5505_v19  ;;  %vm673_vm13 = vcmp.eq.f32.partialorder %v5505_v19, inf  ;;  %v676_v47 = vand.u32 2147483648, %v5505_v19  ;;  %vm675_vm15 = vcmp.eq.f32.partialorder %v5505_v19, 0.0 }
 0x31b   :  { %4245 = vmatpush3.msra.mxu0 %v39_v21  ;;  %4189 = vmatpush3.msra.mxu1 %v58_v50  ;;  %v5508_v12 = vpop.f32.mrf.mxu0 }
 0x31c   :  { %2895 = vbcast.lane.b32.xlu1 %v2889_v4, 264  ;;  %4246 = vmatprep.subr.mxu0 %v38_v58  ;;  %6233 = vst [vmem:[#allocation18_spill] sm:$0xff] %v5508_v12  ;;  %4340 = vrsqrt.f32 %v5508_v12  ;;  %vm666_vm14 = vcmp.eq.f32.partialorder %v5508_v12, inf  ;;  %v669_v37 = vand.u32 2147483648, %v5508_v12  ;;  %vm668_vm2 = vcmp.eq.f32.partialorder %v5508_v12, 0.0 }
 0x31d   :  { %2891 = vbcast.lane.b32.xlu0 %v2889_v4, 256  ;;  %4247 = vmatpush3.msra.mxu0 %v38_v58  ;;  %v5511_v13 = vpop.f32.mrf.mxu0  ;;  %4342 = vrsqrt.f32 %v5500_v27 }
 0x31e   :  { %4190 = vmatprep.subr.mxu1 %v57_v20  ;;  %6234 = vst [vmem:[#allocation19_spill] sm:$0xff] %v5511_v13  ;;  %4344 = vrcp.f32 %v2311_v5 }
 0x31f   :  { %v2520_v57 = vpop.permute.xlu0 %2519  ;;  %4191 = vmatpush3.msra.mxu1 %v57_v20  ;;  %v5519_v17 = vpop.f32.mrf.mxu0  ;;  %4346 = vrcp.f32 %v2313_v39 }
 0x320   :  { %v2524_v49 = vsel %vm1205_vm0, %v1839_v48, %v2520_v57  ;;  %4192 = vmatprep.subr.mxu1 %v56_v41  ;;  %v3197_v57 = vrot.slane %v5226_v18, 1  ;;  %4348 = vrsqrt.f32 %v5511_v13 }
 0x321   :  { %v3242_v9 = vmul.f32 %v2524_v49, %v2524_v49  ;;  %v3228_v10 = vmul.f32 %v5486_v30, %v2524_v49  ;;  %4193 = vmatpush3.msra.mxu1 %v56_v41  ;;  %v5535_v44 = vpop.f32.mrf.mxu0  ;;  %4350 = vrsqrt.f32 %v5519_v17 }
 0x322   :  { %4194 = vmatprep.subr.mxu1 %v55_v45 }
 0x323   :  { %v4281_v35 = vpack.i.bf16 %v3242_v9, %v3241_v28  ;;  %v4276_v60 = vpack.i.bf16 %v3228_v10, %v3227_v62  ;;  %4195 = vmatpush3.msra.mxu1 %v55_v45  ;;  %v5550_v45 = vpop.f32.mrf.mxu0 }
 0x324   :  { %4196 = vmatprep.subr.mxu1 %v54_v42 }
 0x325   :  { %4282 = vrot.lane.b32.xlu1 %v4281_v35, %s4491_s9  ;;  %4277 = vrot.lane.b32.xlu0 %v4276_v60, %s4491_s9  ;;  %v4337_v33 = vpop.eup %4336  ;;  %v3198_v60 = vrot.slane %v5105_v26, 1 }
 0x326   :  { %4197 = vmatpush3.msra.mxu1 %v54_v42  ;;  %v651_v8 = vmul.f32 %v4337_v33, %v5502_v36 }
 0x327   :  { %v4339_v22 = vpop.eup %4338 }
 0x328   :  { %v653_v15 = vsel %vm652_vm8, %v5502_v36, %v651_v8  ;;  %v672_v4 = vmul.f32 %v4339_v22, %v5505_v19 }
 0x329   :  { %v4341_v52 = vpop.eup %4340  ;;  %v656_v21 = vsel %vm654_vm12, %v655_v1, %v653_v15  ;;  %v3201_v1 = vsel %vm1205_vm0, %v5217_v59, %v3197_v57 }
 0x32a   :  { %v694_v53 = vcombine.high %v656_v21, %v656_v21  ;;  %v701_v58 = vrot.slane %v656_v21, %v4824_v55  ;;  %v674_v48 = vsel %vm673_vm13, %v5505_v19, %v672_v4  ;;  %v665_v50 = vmul.f32 %v4341_v52, %v5508_v12 }
 0x32b   :  { %v5543_v9 = vsel %vm675_vm15, %v676_v47, %v674_v48  ;;  %v5569_v47 = vpop.f32.mrf.mxu0 }
 0x32c   :  { %v5539_v62 = vrot.slane %v694_v53, %v4824_v55  ;;  %v709_v49 = vcombine.high %v701_v58, %v701_v58  ;;  %v667_v20 = vsel %vm666_vm14, %v5508_v12, %v665_v50  ;;  %v717_v28 = vrot.slane %v701_v58, %v4824_v55 }
 0x32d   :  { %v5545_v10 = vsel %vm668_vm2, %v669_v37, %v667_v20 }
 0x32e   :  { %v731_v35 = vrot.slane %v709_v49, %v4824_v55  ;;  %v795_v41 = vrot.slane %v717_v28, %v4701_v63  ;;  %v739_v42 = vcombine.high %v717_v28, %v717_v28  ;;  %v5554_v33 = vrot.slane %v5539_v62, %v4824_v55  ;;  %v4343_v49 = vpop.eup %4342 }
 0x330   :  { %v799_v8 = vrot.slane %v731_v35, %v4701_v63  ;;  %v741_v22 = vcombine.high %v731_v35, %v731_v35  ;;  %v873_v26 = vmul.f32 %v795_v41, %v5543_v9  ;;  %v872_v5 = vmul.f32 %v795_v41, %v5545_v10  ;;  %v5574_v35 = vpop.f32.mrf.mxu0 }
 0x331   :  { %v803_v15 = vrot.slane %v739_v42, %v4701_v63  ;;  %v811_v21 = vrot.slane %v5554_v33, %v4701_v63 }
 0x332   :  { %v875_v4 = vmul.f32 %v799_v8, %v5543_v9  ;;  %v874_v52 = vmul.f32 %v799_v8, %v5545_v10  ;;  %v807_v39 = vrot.slane %v741_v22, %v4701_v63  ;;  %vm905_vm4 = vcmp.gt.f32.partialorder %v873_v26, 1e-08  ;;  %v5577_v8 = vpop.permute.xlu1 %2620 }
 0x333   :  { %vm904_vm7 = vcmp.gt.f32.partialorder %v872_v5, 1e-08  ;;  %v877_v53 = vmul.f32 %v803_v15, %v5543_v9  ;;  %v876_v58 = vmul.f32 %v803_v15, %v5545_v10  ;;  %v937_v37 = vsel %vm905_vm4, %v873_v26, 1e-08 }
 0x334   :  { %v936_v48 = vsel %vm904_vm7, %v872_v5, 1e-08  ;;  %vm907_vm8 = vcmp.gt.f32.partialorder %v875_v4, 1e-08  ;;  %v879_v50 = vmul.f32 %v807_v39, %v5543_v9  ;;  %4352 = vrcp.f32 %v937_v37  ;;  %v4066_v37 = vpop.f32.mrf.mxu0 }
 0x335   :  { %v939_v57 = vsel %vm907_vm8, %v875_v4, 1e-08  ;;  %vm906_vm10 = vcmp.gt.f32.partialorder %v874_v52, 1e-08  ;;  %vm909_vm12 = vcmp.gt.f32.partialorder %v877_v53, 1e-08  ;;  %4354 = vrcp.f32 %v936_v48 }
 0x336   :  { %v938_v20 = vsel %vm906_vm10, %v874_v52, 1e-08  ;;  %v941_v28 = vsel %vm909_vm12, %v877_v53, 1e-08  ;;  %vm908_vm13 = vcmp.gt.f32.partialorder %v876_v58, 1e-08  ;;  %4356 = vrcp.f32 %v939_v57  ;;  %v4345_v52 = vpop.eup %4344 }
 0x337   :  { %v940_v41 = vsel %vm908_vm13, %v876_v58, 1e-08  ;;  %vm911_vm14 = vcmp.gt.f32.partialorder %v879_v50, 1e-08  ;;  %v878_v42 = vmul.f32 %v807_v39, %v5545_v10  ;;  %4358 = vrcp.f32 %v938_v20  ;;  %v4347_v39 = vpop.eup %4346 }
 0x338   :  { %v943_v22 = vsel %vm911_vm14, %v879_v50, 1e-08  ;;  %v881_v26 = vmul.f32 %v811_v21, %v5543_v9  ;;  %v880_v5 = vmul.f32 %v811_v21, %v5545_v10  ;;  %v658_v15 = vmul.f32 %v4343_v49, %v5500_v27  ;;  %v4349_v50 = vpop.eup %4348 }
 0x339   :  { %4360 = vrcp.f32 %v941_v28  ;;  %vm910_vm15 = vcmp.gt.f32.partialorder %v878_v42, 1e-08  ;;  %v710_v4 = vcombine.high %v5539_v62, %v5539_v62  ;;  %v3202_v58 = vsel %vm1205_vm0, %v5096_v6, %v3198_v60  ;;  %v4351_v20 = vpop.eup %4350  ;;  %v5592_v28 = vpop.permute.xlu1 %2697 }
 0x33a   :  { %4362 = vrcp.f32 %v940_v41  ;;  %v942_v53 = vsel %vm910_vm15, %v878_v42, 1e-08  ;;  %vm913_vm2 = vcmp.gt.f32.partialorder %v881_v26, 1e-08  ;;  %vm912_vm4 = vcmp.gt.f32.partialorder %v880_v5, 1e-08  ;;  %v511_v42 = vpop.f32.mrf.mxu0 }
 0x33b   :  { %vm659_vm7 = vcmp.eq.f32.partialorder %v5500_v27, inf  ;;  %4364 = vrcp.f32 %v943_v22  ;;  %v3206_v21 = vrot.slane %v3201_v1, %v5318_v0  ;;  %v945_v48 = vsel %vm913_vm2, %v881_v26, 1e-08 }
 0x33c   :  { %4366 = vrcp.f32 %v942_v53  ;;  %v662_v62 = vand.u32 2147483648, %v5500_v27  ;;  %v944_v57 = vsel %vm912_vm4, %v880_v5, 1e-08  ;;  %v5590_v49 = vrot.slane %v710_v4, %v4824_v55 }
 0x33d   :  { %v5595_v6 = vrot.slane %v3202_v58, %v5318_v0  ;;  %v660_v60 = vsel %vm659_vm7, %v5500_v27, %v658_v15  ;;  %vm661_vm8 = vcmp.eq.f32.partialorder %v5500_v27, 0.0  ;;  %v2316_v1 = vmul.f32 %v4345_v52, %v4821_v54 }
 0x33e   :  { %v5601_v41 = vmul.f32 %v4347_v39, %v5255_v34  ;;  %4368 = vrcp.f32 %v945_v48  ;;  %v5604_v22 = vmul.f32 %v5476_v11, %v3206_v21  ;;  %v5606_v26 = vmul.f32 %v3206_v21, %v3206_v21 }
 0x33f   :  { %v686_v5 = vmul.f32 %v4349_v50, %v5511_v13  ;;  %4370 = vrcp.f32 %v944_v57  ;;  %v5609_v4 = vsel %vm661_vm8, %v662_v62, %v660_v60  ;;  %vm687_vm10 = vcmp.eq.f32.partialorder %v5511_v13, inf  ;;  %v4069_v50 = vpop.f32.mrf.mxu0 }
 0x340   :  { %6235 = vst [vmem:[#allocation20_spill] sm:$0xff] %v5604_v22  ;;  %6236 = vst [vmem:[#allocation21_spill] sm:$0xff] %v5606_v26  ;;  %v815_v54 = vrot.slane %v5590_v49, %v4701_v63  ;;  %v740_v34 = vcombine.high %v5554_v33, %v5554_v33  ;;  %v5618_v53 = vmul.f32 %v5486_v30, %v5595_v6  ;;  %vm689_vm12 = vcmp.eq.f32.partialorder %v5511_v13, 0.0 }
 0x341   :  { %v4353_v15 = vpop.eup %4352  ;;  %v690_v39 = vand.u32 2147483648, %v5511_v13  ;;  %vm1032_vm13 = vcmask 1048320   ;;  %vm680_vm14 = vcmp.eq.f32.partialorder %v5519_v17, inf  ;;  %v5631_v60 = vrot.slane %v5609_v4, %v4824_v55  ;;  %v521_v27 = vpop.f32.mrf.mxu0 }
 0x342   :  { %6237 = vst [vmem:[#allocation22_spill] sm:$0xff] %v5618_v53  ;;  %v4355_v58 = vpop.eup %4354  ;;  %v1001_v33 = vmul.f32 %v4353_v15, %v5535_v44  ;;  %v688_v3 = vsel %vm687_vm10, %v5511_v13, %v686_v5  ;;  %v883_v15 = vmul.f32 %v815_v54, %v5543_v9  ;;  %v819_v48 = vrot.slane %v740_v34, %v4701_v63 }
 0x343   :  { %v4357_v62 = vpop.eup %4356  ;;  %v679_v26 = vmul.f32 %v4351_v20, %v5519_v17  ;;  %vm682_vm10 = vcmp.eq.f32.partialorder %v5519_v17, 0.0 }
 0x344   :  { %v5638_v56 = vsel %vm1032_vm13, %v1001_v33, -inf  ;;  %v1003_v44 = vmul.f32 %v4357_v62, %v5569_v47  ;;  %v5649_v33 = vpop.permute.xlu0 %2616  ;;  %vm915_vm15 = vcmp.gt.f32.partialorder %v883_v15, 1e-08 }
 0x345   :  { %6238 = vst [vmem:[#allocation23_spill] sm:$0xff] %v5638_v56 }
 0x346   :  { %v5655_v34 = vsel %vm1032_vm13, %v1003_v44, -inf }
 0x347   :  { %6239 = vst [vmem:[#allocation24_spill] sm:$0xff] %v5655_v34 }
 0x34a   :  { %v4072_v40 = vpop.f32.mrf.mxu0 }
 0x360   :  { %v2532_v52 = vpop.permute.xlu1 %2531 }
 0x361   :  { %v2542_v21 = vsel %vm1205_vm0, %v4809_v38, %v2532_v52  ;;  %v1000_v38 = vmul.f32 %v4355_v58, %v5550_v45  ;;  %v4359_v52 = vpop.eup %4358  ;;  %v882_v45 = vmul.f32 %v815_v54, %v5545_v10 }
 0x362   :  { %v4361_v57 = vpop.eup %4360  ;;  %v3258_v12 = vmul.f32 %v5217_v59, %v2542_v21  ;;  %v1002_v5 = vmul.f32 %v4359_v52, %v5574_v35 }
 0x363   :  { %v5645_v36 = vsel %vm1032_vm13, %v1000_v38, -inf  ;;  %v4363_v58 = vpop.eup %4362  ;;  %v1005_v59 = vmul.f32 %v4361_v57, %v4066_v37  ;;  %v3284_v38 = vmul.f32 %v2542_v21, %v2542_v21  ;;  %v742_v37 = vcombine.high %v5590_v49, %v5590_v49  ;;  %v5678_v49 = vpop.permute.xlu0 %2693 }
 0x364   :  { %v2530_v19 = vpop.permute.xlu1 %2529  ;;  %v1035_v62 = vmax.f32 %v5645_v36, %v5638_v56  ;;  %v4365_v0 = vpop.eup %4364  ;;  %v5659_v54 = vsel %vm1032_vm13, %v1002_v5, -inf  ;;  %vm914_vm2 = vcmp.gt.f32.partialorder %v882_v45, 1e-08 }
 0x365   :  { %v2541_v47 = vsel %vm1205_vm0, %v2316_v1, %v2530_v19  ;;  %v4367_v52 = vpop.eup %4366  ;;  %v1044_v19 = vmax.f32 %v5659_v54, %v5655_v34  ;;  %v885_v1 = vmul.f32 %v819_v48, %v5543_v9  ;;  %v5668_v21 = vsel %vm1032_vm13, %v1005_v59, -inf }
 0x366   :  { %v3283_v30 = vmul.f32 %v2541_v47, %v2541_v47  ;;  %v3257_v35 = vmul.f32 %v5226_v18, %v2541_v47  ;;  %6240 = vst [vmem:[#allocation25_spill] sm:$0xff] %v5668_v21  ;;  %v1004_v18 = vmul.f32 %v4363_v58, %v511_v42  ;;  %v1036_v47 = vrot.slane %v1035_v62, 4  ;;  %v4369_v20 = vpop.eup %4368 }
 0x367   :  { %v1007_v5 = vmul.f32 %v4365_v0, %v4069_v50  ;;  %v1006_v56 = vmul.f32 %v4367_v52, %v521_v27  ;;  %v5673_v34 = vsel %vm689_vm12, %v690_v39, %v688_v3  ;;  %v1045_v53 = vrot.slane %v1044_v19, 4 }
 0x368   :  { %v4296_v57 = vpack.i.bf16 %v3284_v38, %v3283_v30  ;;  %v4286_v44 = vpack.i.bf16 %v3258_v12, %v3257_v35  ;;  %v5676_v30 = vsel %vm1032_vm13, %v1004_v18, -inf  ;;  %v4371_v12 = vpop.eup %4370  ;;  %v5683_v0 = vsel %vm680_vm14, %v5519_v17, %v679_v26  ;;  %v531_v35 = vpop.f32.mrf.mxu0 }
 0x369   :  { %v1053_v27 = vmax.f32 %v5676_v30, %v5668_v21  ;;  %v884_v42 = vmul.f32 %v819_v48, %v5545_v10  ;;  %v823_v3 = vrot.slane %v742_v37, %v4701_v63  ;;  %v5690_v39 = vsel %vm1032_vm13, %v1007_v5, -inf }
 0x36a   :  { %4287 = vrot.lane.b32.xlu0 %v4286_v44, %s4491_s9  ;;  %6241 = vst [vmem:[#allocation26_spill] sm:$0xff] %v5690_v39  ;;  %v5693_v50 = vsel %vm1032_vm13, %v1006_v56, -inf  ;;  %v947_v58 = vsel %vm915_vm15, %v883_v15, 1e-08  ;;  %vm917_vm4 = vcmp.gt.f32.partialorder %v885_v1, 1e-08  ;;  %v1037_v59 = vmax.f32 %v1035_v62, %v1036_v47  ;;  %v4075_v61 = vpop.f32.mrf.mxu0 }
 0x36b   :  { %v1009_v38 = vmul.f32 %v4369_v20, %v4072_v40  ;;  %v946_v26 = vsel %vm914_vm2, %v882_v45, 1e-08  ;;  %v5697_v52 = vrot.slane %v5631_v60, %v4824_v55  ;;  %v1046_v48 = vmax.f32 %v1044_v19, %v1045_v53  ;;  %v5711_v19 = vld [vmem:[%s6196_s1 + $0x18] sm:$0xff] }
 0x36c   :  { %v1054_v37 = vrot.slane %v1053_v27, 4  ;;  %v1062_v18 = vmax.f32 %v5693_v50, %v5690_v39  ;;  %v1008_v56 = vmul.f32 %v4371_v12, %v531_v35  ;;  %4372 = vrcp.f32 %v947_v58 }
 0x36d   :  { %6242 = vst [vmem:[#allocation27_spill] sm:$0xff] %v5697_v52  ;;  %v949_v40 = vsel %vm917_vm4, %v885_v1, 1e-08  ;;  %v887_v45 = vmul.f32 %v823_v3, %v5543_v9  ;;  %4374 = vrcp.f32 %v946_v26  ;;  %vm916_vm7 = vcmp.gt.f32.partialorder %v884_v42, 1e-08 }
 0x36e   :  { %v2536_v44 = vpop.permute.xlu1 %2535  ;;  %4297 = vrot.lane.b32.xlu0 %v4296_v57, %s4491_s9  ;;  %v886_v53 = vmul.f32 %v823_v3, %v5545_v10  ;;  %v1038_v1 = vrot.slane %v1037_v59, 2  ;;  %v1047_v10 = vrot.slane %v1046_v48, 2  ;;  %v1055_v20 = vmax.f32 %v1053_v27, %v1054_v37 }
 0x36f   :  { %v2544_v15 = vsel %vm1205_vm0, %v4826_v24, %v2536_v44  ;;  %v2534_v62 = vpop.permute.xlu0 %2533  ;;  %v5717_v24 = vld [vmem:[%s6196_s1 + $0x10] sm:$0xff]  ;;  %v1063_v12 = vrot.slane %v1062_v18, 4  ;;  %v5724_v3 = vsel %vm1032_vm13, %v1008_v56, -inf  ;;  %vm919_vm8 = vcmp.gt.f32.partialorder %v887_v45, 1e-08 }
 0x370   :  { %v2543_v47 = vsel %vm1205_vm0, %v5601_v41, %v2534_v62  ;;  %v3260_v57 = vmul.f32 %v5711_v19, %v2544_v15  ;;  %v5721_v41 = vsel %vm1032_vm13, %v1009_v38, -inf  ;;  %v948_v62 = vsel %vm916_vm7, %v884_v42, 1e-08  ;;  %v5732_v38 = vld [vmem:[%s6196_s1 + $0x8] sm:$0xff] }
 0x371   :  { %v3259_v9 = vmul.f32 %v5717_v24, %v2543_v47  ;;  %6243 = vst [vmem:[#allocation28_spill] sm:$0xff] %v5721_v41  ;;  %v3285_v58 = vmul.f32 %v2543_v47, %v2543_v47  ;;  %v5739_v37 = vrot.slane %v5697_v52, %v4701_v63  ;;  %v3286_v56 = vmul.f32 %v2544_v15, %v2544_v15 }
 0x372   :  { %v2797_v5 = vpop.permute.xlu1 %2796  ;;  %vm918_vm12 = vcmp.gt.f32.partialorder %v886_v53, 1e-08  ;;  %v1064_v15 = vmax.f32 %v1062_v18, %v1063_v12  ;;  %4376 = vrcp.f32 %v949_v40  ;;  %vm1615_vm14 = vcmask 1046534  }
 0x373   :  { %v4291_v35 = vpack.i.bf16 %v3260_v57, %v3259_v9  ;;  %v2910_v26 = vsel %vm1205_vm0, %v5577_v8, %v2797_v5  ;;  %v2793_v44 = vpop.permute.xlu0 %2792  ;;  %v5744_v8 = vld [vmem:[%s6196_s1] sm:$0xff]  ;;  %v1039_v57 = vmax.f32 %v1037_v59, %v1038_v1  ;;  %v1048_v9 = vmax.f32 %v1046_v48, %v1047_v10 }
 0x374   :  { %v2942_v13 = vmul.f32 %v5732_v38, %v2910_v26  ;;  %v2909_v27 = vsel %vm1205_vm0, %v5649_v33, %v2793_v44  ;;  %v1071_v33 = vmax.f32 %v5724_v3, %v5721_v41  ;;  %v1056_v5 = vrot.slane %v1055_v20, 2 }
 0x375   :  { %v2941_v42 = vmul.f32 %v5744_v8, %v2909_v27  ;;  %4292 = vrot.lane.b32.xlu1 %v4291_v35, %s4491_s9  ;;  %v4301_v44 = vpack.i.bf16 %v3286_v56, %v3285_v58  ;;  %v1177_v41 = vmax.f32 %v5645_v36, %v5659_v54  ;;  %v951_v59 = vsel %vm919_vm8, %v887_v45, 1e-08  ;;  %v541_v56 = vpop.f32.mrf.mxu0 }
 0x376   :  { %v2874_v47 = vpop.permute.xlu1 %2873  ;;  %v3016_v39 = vsel %vm280_vm5, %v2942_v13, -inf  ;;  %v1072_v13 = vrot.slane %v1071_v33, 4  ;;  %v950_v18 = vsel %vm918_vm12, %v886_v53, 1e-08  ;;  %v1065_v1 = vrot.slane %v1064_v15, 2 }
 0x377   :  { %v3015_v21 = vsel %vm280_vm5, %v2941_v42, -inf  ;;  %v2924_v63 = vsel %vm1205_vm0, %v5592_v28, %v2874_v47  ;;  %v2870_v35 = vpop.permute.xlu0 %2869  ;;  %4378 = vrcp.f32 %v948_v62  ;;  %v1040_v54 = vrot.slane %v1039_v57, 1 }
 0x378   :  { %v3017_v52 = vmax.f32 %v3015_v21, %v3016_v39  ;;  %v2956_v22 = vmul.f32 %v5711_v19, %v2924_v63  ;;  %v2923_v48 = vsel %vm1205_vm0, %v5678_v49, %v2870_v35  ;;  %v1057_v39 = vmax.f32 %v1055_v20, %v1056_v5 }
 0x379   :  { %4302 = vrot.lane.b32.xlu1 %v4301_v44, %s4491_s9  ;;  %v2955_v28 = vmul.f32 %v5717_v24, %v2923_v48  ;;  %v1049_v12 = vrot.slane %v1048_v9, 1  ;;  %4380 = vrcp.f32 %v951_v59  ;;  %v4373_v45 = vpop.eup %4372  ;;  %v1178_v40 = vmax.f32 %v1177_v41, %v5676_v30 }
 0x37a   :  { %v2632_v21 = vpop.permute.xlu1 %2631  ;;  %v3018_v10 = vrot.slane %v3017_v52, 4  ;;  %v3079_v49 = vsel %vm280_vm5, %v2956_v22, -inf  ;;  %4382 = vrcp.f32 %v950_v18  ;;  %v4375_v53 = vpop.eup %4374  ;;  %v3118_v42 = vmul.f32 %v2910_v26, %v5018_v31 }
 0x37b   :  { %v2628_v36 = vpop.permute.xlu0 %2627  ;;  %v3078_v58 = vsel %vm280_vm5, %v2955_v28, -inf  ;;  %v3117_v20 = vmul.f32 %v2909_v27, %v5018_v31  ;;  %v1073_v47 = vmax.f32 %v1071_v33, %v1072_v13  ;;  %v3132_v5 = vmul.f32 %v2924_v63, %v5168_v25 }
 0x37c   :  { %v3080_v62 = vmax.f32 %v3078_v58, %v3079_v49  ;;  %v5772_v35 = vmul.f32 %v5595_v6, %v5595_v6  ;;  %v1058_v22 = vrot.slane %v1057_v39, 1  ;;  %v1066_v59 = vmax.f32 %v1064_v15, %v1065_v1 }
 0x37d   :  { %v3019_v28 = vmax.f32 %v3017_v52, %v3018_v10  ;;  %v1041_v18 = vmax.f32 %v1039_v57, %v1040_v54  ;;  %v1050_v11 = vmax.f32 %v1048_v9, %v1049_v12  ;;  %v6244_v31 = vcombine.high %v5609_v4, %v5609_v4  ;;  %v4078_v52 = vpop.f32.mrf.mxu0 }
 0x37e   :  { %v2709_v44 = vpop.permute.xlu1 %2708  ;;  %v3081_v30 = vrot.slane %v3080_v62, 4  ;;  %v758_v63 = vcombine.high %v5631_v60, %v5631_v60  ;;  %v6245_v6 = vand.u32 2147483648, %v5519_v17  ;;  %v5791_v33 = vmul.f32 %v5739_v37, %v5673_v34 }
 0x37f   :  { %v2705_v41 = vpop.permute.xlu0 %2704  ;;  %v5778_v26 = vrot.slane %v6244_v31, %v4824_v55  ;;  %v3163_v57 = vsel %vm280_vm5, %v3118_v42, -inf  ;;  %v3148_v4 = vsel %vm280_vm5, %v3117_v20, -inf  ;;  %v1179_v9 = vmax.f32 %v1178_v40, %v5693_v50 }
 0x380   :  { %v5787_v27 = vsel %vm682_vm10, %v6245_v6, %v5683_v0  ;;  %v1074_v15 = vrot.slane %v1073_v47, 2  ;;  %v5797_v13 = vsel %vm280_vm5, %v3132_v5, -inf  ;;  %v3131_v1 = vmul.f32 %v2923_v48, %v5168_v25  ;;  %v551_v48 = vpop.f32.mrf.mxu0 }
 0x381   :  { %v1059_v0 = vmax.f32 %v1057_v39, %v1058_v22  ;;  %v1067_v54 = vrot.slane %v1066_v59, 1  ;;  %v3020_v12 = vrot.slane %v3019_v28, 2  ;;  %v3082_v49 = vmax.f32 %v3080_v62, %v3081_v30 }
 0x382   :  { %v2808_v10 = vpop.permute.xlu1 %2807  ;;  %v3719_v42 = vsel %vm1606_vm9, %v1050_v11, %v1041_v18  ;;  %v6246_v20 = vmax.f32 %v5281_v7, %v5349_v32  ;;  %v1011_v25 = vmul.f32 %v4373_v45, %v4075_v61  ;;  %v6247_v39 = vmax.f32 %v5285_v16, %v5359_v29  ;;  %v4377_v7 = vpop.eup %4376 }
 0x383   :  { %v2912_v58 = vsel %vm1205_vm0, %v2632_v21, %v2808_v10  ;;  %v2804_v31 = vpop.permute.xlu0 %2803  ;;  %v3192_v21 = vmax.f32 %v5390_v2, %v5797_v13  ;;  %v1075_v22 = vmax.f32 %v1073_v47, %v1074_v15  ;;  %v5818_v32 = vsel %vm280_vm5, %v3131_v1, -inf }
 0x384   :  { %v5805_v50 = vmax.f32 %v6246_v20, %v3163_v57  ;;  %v2944_v40 = vmul.f32 %v5732_v38, %v2912_v58  ;;  %v2911_v5 = vsel %vm1205_vm0, %v2628_v36, %v2804_v31  ;;  %v5812_v62 = vmax.f32 %v6247_v39, %v3148_v4  ;;  %v4379_v29 = vpop.eup %4378 }
 0x385   :  { %v2943_v11 = vmul.f32 %v5744_v8, %v2911_v5  ;;  %v5821_v36 = vsel %vm1607_vm11, %v1059_v0, %v3719_v42  ;;  %v5823_v61 = vmax.f32 %v1066_v59, %v1067_v54  ;;  %v5826_v16 = vmax.f32 %v1179_v9, %v5724_v3  ;;  %v4081_v59 = vpop.f32.mrf.mxu0 }
 0x386   :  { %v2885_v30 = vpop.permute.xlu1 %2884  ;;  %v3021_v45 = vmax.f32 %v3019_v28, %v3020_v12  ;;  %v3083_v18 = vrot.slane %v3082_v49, 2  ;;  %v3025_v6 = vsel %vm280_vm5, %v2944_v40, -inf  ;;  %v4381_v4 = vpop.eup %4380  ;;  %v1010_v0 = vmul.f32 %v4375_v53, %v541_v56 }
 0x387   :  { %v3024_v47 = vsel %vm280_vm5, %v2943_v11, -inf  ;;  %v2881_v57 = vpop.permute.xlu0 %2880  ;;  %v2926_v1 = vsel %vm1205_vm0, %v2709_v44, %v2885_v30  ;;  %v4383_v54 = vpop.eup %4382  ;;  %v1076_v28 = vrot.slane %v1075_v22, 1  ;;  %v1013_v12 = vmul.f32 %v4377_v7, %v4078_v52 }
 0x388   :  { %v3026_v15 = vmax.f32 %v3024_v47, %v3025_v6  ;;  %v2925_v10 = vsel %vm1205_vm0, %v2705_v41, %v2881_v57  ;;  %v2958_v3 = vmul.f32 %v5711_v19, %v2926_v1  ;;  %v3177_v31 = vmax.f32 %v5397_v51, %v5818_v32  ;;  %v561_v47 = vpop.f32.mrf.mxu0  ;;  %v6252_v32 = vld [vmem:[#allocation22_spill] sm:$0xff] }
 0x389   :  { %v2957_v9 = vmul.f32 %v5717_v24, %v2925_v10  ;;  %v5837_v40 = vsel %vm1032_vm13, %v1011_v25, -inf  ;;  %v1012_v44 = vmul.f32 %v4379_v29, %v551_v48  ;;  %v3022_v41 = vrot.slane %v3021_v45, 1 }
 0x38a   :  { %v3027_v42 = vrot.slane %v3026_v15, 4  ;;  %v2720_v20 = vpop.permute.xlu1 %2719  ;;  %v3084_v56 = vmax.f32 %v3082_v49, %v3083_v18  ;;  %v3088_v53 = vsel %vm280_vm5, %v2958_v3, -inf  ;;  %vm1617_vm15 = vcmask 1047559  }
 0x38b   :  { %v3087_v39 = vsel %vm280_vm5, %v2957_v9, -inf  ;;  %v2716_v11 = vpop.permute.xlu0 %2715  ;;  %v3119_v52 = vmul.f32 %v2911_v5, %v5041_v23  ;;  %v5843_v6 = vsel %vm1032_vm13, %v1010_v0, -inf  ;;  %v5845_v57 = vmax.f32 %v1075_v22, %v1076_v28 }
 0x38c   :  { %v3028_v30 = vmax.f32 %v3026_v15, %v3027_v42  ;;  %v3089_v7 = vmax.f32 %v3087_v39, %v3088_v53  ;;  %v5848_v25 = vsel %vm1032_vm13, %v1013_v12, -inf  ;;  %v1015_v49 = vmul.f32 %v4381_v4, %v4081_v59 }
 0x38d   :  { %v5850_v48 = vmul.f32 %v4383_v54, %v561_v47  ;;  %v3120_v29 = vmul.f32 %v2912_v58, %v5041_v23  ;;  %v5854_v5 = vsel %vm1032_vm13, %v1012_v44, -inf  ;;  %v3023_v9 = vmax.f32 %v3021_v45, %v3022_v41 }
 0x38e   :  { %v3029_v18 = vrot.slane %v3028_v30, 2  ;;  %v3090_v3 = vrot.slane %v3089_v7, 4  ;;  %v2896_v15 = vpop.permute.xlu1 %2895  ;;  %v3085_v0 = vrot.slane %v3084_v56, 1  ;;  %v1080_v28 = vmax.f32 %v5843_v6, %v5837_v40 }
 0x38f   :  { %v2928_v42 = vsel %vm1205_vm0, %v2720_v20, %v2896_v15  ;;  %v2892_v22 = vpop.permute.xlu0 %2891  ;;  %v3150_v4 = vsel %vm280_vm5, %v3119_v52, -inf  ;;  %v1181_v23 = vmax.f32 %v5826_v16, %v5843_v6  ;;  %v3134_v58 = vmul.f32 %v2926_v1, %v5182_v46 }
 0x390   :  { %v3030_v12 = vmax.f32 %v3028_v30, %v3029_v18  ;;  %v3091_v59 = vmax.f32 %v3089_v7, %v3090_v3  ;;  %v2960_v54 = vmul.f32 %v5711_v19, %v2928_v42  ;;  %v2927_v45 = vsel %vm1205_vm0, %v2716_v11, %v2892_v22 }
 0x391   :  { %v1089_v20 = vmax.f32 %v5854_v5, %v5848_v25  ;;  %v3165_v44 = vsel %vm280_vm5, %v3120_v29, -inf  ;;  %v3133_v39 = vmul.f32 %v2925_v10, %v5182_v46  ;;  %v3086_v30 = vmax.f32 %v3084_v56, %v3085_v0  ;;  %v5884_v56 = vpop.f32.mrf.mxu0 }
 0x392   :  { %v3031_v41 = vrot.slane %v3030_v12, 1  ;;  %v3092_v53 = vrot.slane %v3091_v59, 2  ;;  %v3151_v52 = vmax.f32 %v5812_v62, %v3150_v4  ;;  %v2959_v7 = vmul.f32 %v5717_v24, %v2927_v45 }
 0x393   :  { %v3347_v47 = vmul.f32 %v3023_v9, %v3023_v9  ;;  %v3328_v11 = vsel %vm1615_vm14, %v3023_v9, %v5427_v14  ;;  %v1081_v18 = vrot.slane %v1080_v28, 4  ;;  %v5876_v3 = vsel %vm1032_vm13, %v1015_v49, -inf }
 0x394   :  { %v5871_v1 = vmax.f32 %v3030_v12, %v3031_v41  ;;  %v5879_v29 = vmax.f32 %v5805_v50, %v3165_v44  ;;  %v3193_v46 = vsel %vm280_vm5, %v3134_v58, -inf  ;;  %v3097_v10 = vsel %vm280_vm5, %v2960_v54, -inf  ;;  %v6248_v12 = vld [vmem:[#allocation13_spill] sm:$0xff]  ;;  %v6249_v58 = vld [vmem:[#allocation11_spill] sm:$0xff] }
 0x395   :  { %v3096_v62 = vsel %vm280_vm5, %v2959_v7, -inf  ;;  %v3093_v15 = vmax.f32 %v3091_v59, %v3092_v53  ;;  %v3178_v0 = vsel %vm280_vm5, %v3133_v39, -inf  ;;  %v3334_v49 = vsel %vm1613_vm6, %v3086_v30, %v5445_v43 }
 0x396   :  { %v3098_v22 = vmax.f32 %v3096_v62, %v3097_v10  ;;  %v3329_v14 = vsel %vm1617_vm15, %v5871_v1, %v3328_v11  ;;  %v5894_v54 = vsel %vm1615_vm14, %v3347_v47, %v6249_v58  ;;  %v5897_v44 = vmul.f32 %v5744_v8, %v3151_v52  ;;  %v5908_v47 = vpop.f32.mrf.mxu0 }
 0x397   :  { %v4283_v50 = vpop.permute.xlu1 %4282  ;;  %v4278_v9 = vpop.permute.xlu0 %4277  ;;  %v3339_v4 = vmul.f32 %v6248_v12, %v3329_v14  ;;  %v3194_v59 = vmax.f32 %v3192_v21, %v3193_v46  ;;  %v3354_v53 = vmul.f32 %v3086_v30, %v3086_v30  ;;  %v5902_v39 = vmax.f32 %v1080_v28, %v1081_v18  ;;  %v6250_v21 = vld [vmem:[#allocation9_spill] sm:$0xff]  ;;  %v6251_v30 = vld [vmem:[#allocation20_spill] sm:$0xff] }
 0x398   :  { %v3099_v41 = vrot.slane %v3098_v22, 4  ;;  %v3179_v43 = vmax.f32 %v3177_v31, %v3178_v0  ;;  %v4284_v7 = vunpack.i.l.bf16 %v4283_v50  ;;  %v4280_v11 = vunpack.i.h.bf16 %v4278_v9 }
 0x399   :  { %v4279_v10 = vunpack.i.l.bf16 %v4278_v9  ;;  %4198 = vmatprep.mubr.msk.f32.mxu1 %vm280_vm5, %v3339_v4  ;;  %v3094_v62 = vrot.slane %v3093_v15, 1  ;;  %v5912_v2 = vmul.f32 %v5732_v38, %v5879_v29  ;;  %v1090_v13 = vrot.slane %v1089_v20, 4  ;;  %v6253_v9 = vld [vmem:[#allocation12_spill] sm:$0xff] }
 0x39a   :  { %v3100_v14 = vmax.f32 %v3098_v22, %v3099_v41  ;;  %v3136_v28 = vmul.f32 %v2928_v42, %v6250_v21  ;;  %v3238_v31 = vsel %vm280_vm5, %v6252_v32, %v4280_v11  ;;  %v5919_v18 = vmul.f32 %v3151_v52, %v3151_v52  ;;  %v6254_v42 = vld [vmem:[#allocation21_spill] sm:$0xff]  ;;  %v5930_v41 = vpop.f32.mrf.mxu0 }
 0x39b   :  { %v3237_v51 = vsel %vm280_vm5, %v6251_v30, %v4279_v10  ;;  %v4285_v0 = vunpack.i.h.bf16 %v4283_v50  ;;  %v3392_v22 = vsel %vm1613_vm6, %v3354_v53, %v6253_v9  ;;  %v1083_v12 = vrot.slane %v5902_v39, 2 }
 0x39c   :  { %v3101_v46 = vrot.slane %v3100_v14, 2  ;;  %4248 = vmatprep.mubr.f32.mxu0 %v3237_v51  ;;  %v3135_v4 = vmul.f32 %v2927_v45, %v6250_v21  ;;  %v3251_v58 = vsel %vm280_vm5, %v6254_v42, %v4284_v7  ;;  %vm921_vm2 = vcmp.gt.f32.partialorder %v5791_v33, 1e-08 }
 0x39d   :  { %4249 = vmatmul.mubr.f32.vlgmr.msra.gmra.mxu0 %v3238_v31  ;;  %v888_v52 = vmul.f32 %v5739_v37, %v5787_v27  ;;  %v3095_v50 = vmax.f32 %v3093_v15, %v3094_v62  ;;  %v5932_v10 = vmax.f32 %v1089_v20, %v1090_v13  ;;  %v953_v53 = vsel %vm921_vm2, %v5791_v33, 1e-08  ;;  %v6255_v62 = vld [vmem:[#allocation27_spill] sm:$0xff]  ;;  %v6256_v33 = vld [vmem:[#allocation8_spill] sm:$0xff] }
 0x39e   :  { %v3102_v11 = vmax.f32 %v3100_v14, %v3101_v46  ;;  %4251 = vmatprep.mubr.f32.mxu0 %v3251_v58  ;;  %v3195_v45 = vsel %vm280_vm5, %v3136_v28, -inf  ;;  %4384 = vrcp.f32 %v953_v53  ;;  %v780_v7 = vrot.slane %v758_v63, %v4824_v55  ;;  %v5946_v28 = vpop.f32.mrf.mxu0 }
 0x39f   :  { %vm920_vm4 = vcmp.gt.f32.partialorder %v888_v52, 1e-08  ;;  %v3252_v37 = vsel %vm280_vm5, %v5772_v35, %v4285_v0  ;;  %v788_v20 = vcombine.high %v6255_v62, %v6255_v62  ;;  %v3180_v14 = vsel %vm280_vm5, %v3135_v4, -inf }
 0x3a0   :  { %v3103_v21 = vrot.slane %v3102_v11, 1  ;;  %v952_v15 = vsel %vm920_vm4, %v888_v52, 1e-08  ;;  %v831_v13 = vrot.slane %v780_v7, %v6256_v33  ;;  %v790_v30 = vcombine.high %v780_v7, %v780_v7 }
 0x3a1   :  { %4252 = vmatmul.mubr.f32.gmra.mxu0 %v3252_v37  ;;  %4386 = vrcp.f32 %v952_v15  ;;  %v3335_v60 = vsel %vm1615_vm14, %v3095_v50, %v3334_v49  ;;  %v3348_v63 = vmul.f32 %v5871_v1, %v5871_v1  ;;  %v5953_v35 = vsel %vm1032_vm13, %v5850_v48, -inf  ;;  %v6257_v1 = vld [vmem:[#allocation14_spill] sm:$0xff]  ;;  %v5965_v48 = vpop.f32.mrf.mxu0 }
 0x3a2   :  { %v3104_v51 = vmax.f32 %v3102_v11, %v3103_v21  ;;  %v891_v32 = vmul.f32 %v831_v13, %v5673_v34  ;;  %v890_v31 = vmul.f32 %v831_v13, %v5787_v27  ;;  %v835_v46 = vrot.slane %v788_v20, %v6256_v33 }
 0x3a3   :  { %v839_v0 = vrot.slane %v790_v30, %v6256_v33  ;;  %v5959_v9 = vmax.f32 %v3194_v59, %v3195_v45  ;;  %v5961_v4 = vmax.f32 %v3179_v43, %v3180_v14  ;;  %v3355_v42 = vmul.f32 %v3095_v50, %v3095_v50  ;;  %v5981_v62 = vpop.f32.mrf.mxu0 }
 0x3a4   :  { %v3336_v49 = vsel %vm1617_vm15, %v3104_v51, %v3335_v60  ;;  %v3356_v52 = vmul.f32 %v3104_v51, %v3104_v51  ;;  %vm923_vm7 = vcmp.gt.f32.partialorder %v891_v32, 1e-08  ;;  %vm922_vm8 = vcmp.gt.f32.partialorder %v890_v31, 1e-08 }
 0x3a5   :  { %v3340_v58 = vmul.f32 %v6257_v1, %v3336_v49  ;;  %v3387_v11 = vsel %vm1617_vm15, %v3348_v63, %v5894_v54  ;;  %v1098_v53 = vmax.f32 %v5953_v35, %v5876_v3  ;;  %v955_v59 = vsel %vm923_vm7, %v891_v32, 1e-08 }
 0x3a6   :  { %v954_v45 = vsel %vm922_vm8, %v890_v31, 1e-08  ;;  %4388 = vrcp.f32 %v955_v59  ;;  %v893_v43 = vmul.f32 %v835_v46, %v5673_v34  ;;  %v892_v50 = vmul.f32 %v835_v46, %v5787_v27 }
 0x3a7   :  { %4199 = vmatmul.mubr.msk.f32.vlgmr.msra.gmra.mxu1 %vm280_vm5, %v3340_v58  ;;  %v895_v7 = vmul.f32 %v839_v0, %v5673_v34  ;;  %v3393_v21 = vsel %vm1615_vm14, %v3355_v42, %v3392_v22  ;;  %4390 = vrcp.f32 %v954_v45  ;;  %v894_v54 = vmul.f32 %v839_v0, %v5787_v27  ;;  %v5995_v0 = vpop.f32.mrf.mxu0 }
 0x3a8   :  { %4201 = vmatprep.mubr.msk.f32.mxu1 %vm280_vm5, %v3387_v11  ;;  %v773_v37 = vrot.slane %v5778_v26, %v4824_v55  ;;  %v3394_v15 = vsel %vm1617_vm15, %v3356_v52, %v3393_v21  ;;  %vm925_vm10 = vcmp.gt.f32.partialorder %v893_v43, 1e-08  ;;  %vm924_vm12 = vcmp.gt.f32.partialorder %v892_v50, 1e-08 }
 0x3a9   :  { %vm927_vm2 = vcmp.gt.f32.partialorder %v895_v7, 1e-08  ;;  %v957_v20 = vsel %vm925_vm10, %v893_v43, 1e-08  ;;  %v956_v14 = vsel %vm924_vm12, %v892_v50, 1e-08  ;;  %v5988_v22 = vmax.f32 %v5902_v39, %v1083_v12 }
 0x3aa   :  { %v959_v13 = vsel %vm927_vm2, %v895_v7, 1e-08  ;;  %v843_v30 = vrot.slane %v773_v37, %v6256_v33  ;;  %v1099_v51 = vrot.slane %v1098_v53, 4  ;;  %4392 = vrcp.f32 %v957_v20 }
 0x3ab   :  { %4202 = vmatmul.mubr.msk.f32.gmra.mxu1 %vm280_vm5, %v3394_v15  ;;  %vm926_vm4 = vcmp.gt.f32.partialorder %v894_v54, 1e-08  ;;  %v4385_v60 = vpop.eup %4384  ;;  %v1092_v63 = vrot.slane %v5932_v10, 2  ;;  %4394 = vrcp.f32 %v956_v14  ;;  %v759_v12 = vcombine.high %v5778_v26, %v5778_v26 }
 0x3ac   :  { %4204 = vmatprep.mubr.msk.f32.mxu1 %vm280_vm5, %v5897_v44  ;;  %v958_v32 = vsel %vm926_vm4, %v894_v54, 1e-08  ;;  %v897_v31 = vmul.f32 %v843_v30, %v5673_v34  ;;  %v1017_v46 = vmul.f32 %v4385_v60, %v5884_v56  ;;  %4396 = vrcp.f32 %v959_v13 }
 0x3ad   :  { %v896_v39 = vmul.f32 %v843_v30, %v5787_v27  ;;  %v3359_v44 = vmul.f32 %v5717_v24, %v5961_v4  ;;  %4398 = vrcp.f32 %v958_v32  ;;  %v789_v42 = vcombine.high %v773_v37, %v773_v37 }
 0x3ae   :  { %v4387_v49 = vpop.eup %4386  ;;  %vm929_vm7 = vcmp.gt.f32.partialorder %v897_v31, 1e-08  ;;  %v1100_v1 = vmax.f32 %v1098_v53, %v1099_v51  ;;  %v787_v26 = vrot.slane %v759_v12, %v4824_v55  ;;  %v3360_v24 = vmul.f32 %v5711_v19, %v5959_v9 }
 0x3af   :  { %4205 = vmatmul.mubr.msk.f32.gmra.mxu1 %vm280_vm5, %v5912_v2  ;;  %v1016_v56 = vmul.f32 %v4387_v49, %v5908_v47  ;;  %v961_v58 = vsel %vm929_vm7, %v897_v31, 1e-08  ;;  %vm928_vm8 = vcmp.gt.f32.partialorder %v896_v39, 1e-08  ;;  %v851_v11 = vrot.slane %v789_v42, %v6256_v33  ;;  %v601_v47 = vpop.f32.mrf.mxu0 }
 0x3b0   :  { %4207 = vmatprep.mubr.msk.f32.mxu1 %vm280_vm5, %v3359_v44  ;;  %4400 = vrcp.f32 %v961_v58  ;;  %v960_v52 = vsel %vm928_vm8, %v896_v39, 1e-08  ;;  %v3362_v59 = vmul.f32 %v5879_v29, %v5879_v29  ;;  %v6013_v2 = vsel %vm1032_vm13, %v1017_v46, -inf }
 0x3b1   :  { %4402 = vrcp.f32 %v960_v52  ;;  %v6016_v53 = vsel %vm1032_vm13, %v1016_v56, -inf  ;;  %v847_v45 = vrot.slane %v787_v26, %v6256_v33  ;;  %v901_v55 = vmul.f32 %v851_v11, %v5673_v34  ;;  %v4096_v13 = vpop.f32.mrf.mxu0 }
 0x3b2   :  { %v900_v43 = vmul.f32 %v851_v11, %v5787_v27  ;;  %v3364_v19 = vmul.f32 %v5959_v9, %v5959_v9  ;;  %v1085_v29 = vrot.slane %v5988_v22, 1  ;;  %v1093_v50 = vmax.f32 %v5932_v10, %v1092_v63 }
 0x3b3   :  { %4208 = vmatmul.mubr.msk.f32.gmra.mxu1 %vm280_vm5, %v3360_v24  ;;  %v1101_v7 = vrot.slane %v1100_v1, 2  ;;  %v4389_v21 = vpop.eup %4388  ;;  %v899_v54 = vmul.f32 %v847_v45, %v5673_v34  ;;  %v898_v37 = vmul.f32 %v847_v45, %v5787_v27  ;;  %vm933_vm10 = vcmp.gt.f32.partialorder %v901_v55, 1e-08  ;;  %v611_v49 = vpop.f32.mrf.mxu0 }
 0x3b4   :  { %4210 = vmatprep.mubr.msk.f32.mxu1 %vm280_vm5, %v5919_v18  ;;  %v791_v15 = vcombine.high %v787_v26, %v787_v26  ;;  %v4391_v20 = vpop.eup %4390  ;;  %v3363_v14 = vmul.f32 %v5961_v4, %v5961_v4  ;;  %v1107_v9 = vmax.f32 %v6016_v53, %v6013_v2  ;;  %v1019_v10 = vmul.f32 %v4389_v21, %v5930_v41 }
 0x3b5   :  { %v965_v30 = vsel %vm933_vm10, %v901_v55, 1e-08  ;;  %v1018_v51 = vmul.f32 %v4391_v20, %v5946_v28  ;;  %vm931_vm12 = vcmp.gt.f32.partialorder %v899_v54, 1e-08  ;;  %vm930_vm2 = vcmp.gt.f32.partialorder %v898_v37, 1e-08 }
 0x3b6   :  { %vm932_vm4 = vcmp.gt.f32.partialorder %v900_v43, 1e-08  ;;  %v6038_v18 = vsel %vm1032_vm13, %v1019_v10, -inf  ;;  %v963_v60 = vsel %vm931_vm12, %v899_v54, 1e-08  ;;  %4404 = vrcp.f32 %v965_v30 }
 0x3b7   :  { %4211 = vmatmul.mubr.msk.f32.gmra.mxu1 %vm280_vm5, %v3362_v59  ;;  %v962_v63 = vsel %vm930_vm2, %v898_v37, 1e-08  ;;  %v4393_v4 = vpop.eup %4392  ;;  %v1102_v32 = vmax.f32 %v1100_v1, %v1101_v7  ;;  %v1114_v41 = vsel %vm1032_vm13, %v1018_v51, -inf  ;;  %4406 = vrcp.f32 %v963_v60 }
 0x3b8   :  { %4213 = vmatprep.mubr.msk.f32.mxu1 %vm280_vm5, %v3363_v14  ;;  %v855_v28 = vrot.slane %v791_v15, %v6256_v33  ;;  %v4395_v31 = vpop.eup %4394  ;;  %v1108_v46 = vrot.slane %v1107_v9, 4  ;;  %v1116_v39 = vmax.f32 %v1114_v41, %v6038_v18  ;;  %v1021_v12 = vmul.f32 %v4393_v4, %v5965_v48 }
 0x3b9   :  { %4408 = vrcp.f32 %v962_v63  ;;  %v4397_v44 = vpop.eup %4396  ;;  %v1094_v42 = vrot.slane %v1093_v50, 1  ;;  %v1020_v56 = vmul.f32 %v4395_v31, %v5981_v62  ;;  %v964_v58 = vsel %vm932_vm4, %v900_v43, 1e-08 }
 0x3ba   :  { %v3721_v1 = vsel %vm1609_vm1, %v5823_v61, %v5821_v36  ;;  %v4399_v52 = vpop.eup %4398  ;;  %v1117_v33 = vrot.slane %v1116_v39, 4  ;;  %v6052_v26 = vsel %vm1032_vm13, %v1021_v12, -inf  ;;  %v1023_v48 = vmul.f32 %v4397_v44, %v5995_v0 }
 0x3bb   :  { %4214 = vmatmul.mubr.msk.f32.gmra.mxu1 %vm280_vm5, %v3364_v19  ;;  %4410 = vrcp.f32 %v964_v58  ;;  %v1086_v11 = vmax.f32 %v5988_v22, %v1085_v29  ;;  %v1123_v62 = vsel %vm1032_vm13, %v1020_v56, -inf  ;;  %v1022_v24 = vmul.f32 %v4399_v52, %v601_v47  ;;  %v4099_v19 = vpop.f32.mrf.mxu0 }
 0x3bc   :  { %v903_v59 = vmul.f32 %v855_v28, %v5673_v34  ;;  %v1103_v55 = vrot.slane %v1102_v32, 1  ;;  %v1109_v36 = vmax.f32 %v1107_v9, %v1108_v46  ;;  %v1125_v61 = vmax.f32 %v1123_v62, %v6052_v26 }
 0x3bd   :  { %v4401_v45 = vpop.eup %4400  ;;  %v6060_v43 = vsel %vm1032_vm13, %v1023_v48, -inf  ;;  %v1095_v21 = vmax.f32 %v1093_v50, %v1094_v42  ;;  %v1132_v0 = vsel %vm1032_vm13, %v1022_v24, -inf  ;;  %v3722_v22 = vsel %vm1611_vm3, %v5845_v57, %v3721_v1 }
 0x3be   :  { %v4403_v7 = vpop.eup %4402  ;;  %v1025_v54 = vmul.f32 %v4401_v45, %v4096_v13  ;;  %v1118_v47 = vmax.f32 %v1116_v39, %v1117_v33  ;;  %v1191_v34 = vmax.f32 %v6016_v53, %v1114_v41  ;;  %v1126_v29 = vrot.slane %v1125_v61, 4  ;;  %v621_v13 = vpop.f32.mrf.mxu0 }
 0x3bf   :  { %v1134_v37 = vmax.f32 %v1132_v0, %v6060_v43  ;;  %v1024_v20 = vmul.f32 %v4403_v7, %v611_v49  ;;  %vm935_vm7 = vcmp.gt.f32.partialorder %v903_v59, 1e-08  ;;  %v902_v14 = vmul.f32 %v855_v28, %v5787_v27 }
 0x3c0   :  { %v6068_v15 = vsel %vm1032_vm13, %v1025_v54, -inf  ;;  %v1110_v50 = vrot.slane %v1109_v36, 2  ;;  %v1127_v9 = vmax.f32 %v1125_v61, %v1126_v29  ;;  %v1104_v30 = vmax.f32 %v1102_v32, %v1103_v55  ;;  %v4102_v44 = vpop.f32.mrf.mxu0  ;;  %v6259_v54 = vld [vmem:[#allocation23_spill] sm:$0xff] }
 0x3c1   :  { %v1135_v10 = vrot.slane %v1134_v37, 4  ;;  %v1141_v57 = vsel %vm1032_vm13, %v1024_v20, -inf  ;;  %v967_v51 = vsel %vm935_vm7, %v903_v59, 1e-08  ;;  %vm934_vm8 = vcmp.gt.f32.partialorder %v902_v14, 1e-08 }
 0x3c2   :  { %v3723_v53 = vsel %vm1613_vm6, %v1086_v11, %v3722_v22  ;;  %v1182_v60 = vmax.f32 %v1181_v23, %v5854_v5  ;;  %v1119_v63 = vrot.slane %v1118_v47, 2  ;;  %v1192_v4 = vmax.f32 %v1191_v34, %v1123_v62  ;;  %v631_v24 = vpop.f32.mrf.mxu0 }
 0x3c3   :  { %v1143_v27 = vmax.f32 %v1141_v57, %v6068_v15  ;;  %v4405_v41 = vpop.eup %4404  ;;  %4412 = vrcp.f32 %v967_v51  ;;  %v966_v28 = vsel %vm934_vm8, %v902_v14, 1e-08  ;;  %v3724_v32 = vsel %vm1615_vm14, %v1095_v21, %v3723_v53 }
 0x3c4   :  { %v4407_v31 = vpop.eup %4406  ;;  %v1111_v46 = vmax.f32 %v1109_v36, %v1110_v50  ;;  %v1128_v39 = vrot.slane %v1127_v9, 2  ;;  %v1136_v12 = vmax.f32 %v1134_v37, %v1135_v10  ;;  %v1029_v58 = vmul.f32 %v4405_v41, %v4102_v44  ;;  %v4105_v37 = vpop.f32.mrf.mxu0 }
 0x3c5   :  { %v1144_v49 = vrot.slane %v1143_v27, 4  ;;  %v1027_v56 = vmul.f32 %v4407_v31, %v4099_v19  ;;  %4414 = vrcp.f32 %v966_v28  ;;  %v3725_v16 = vsel %vm1617_vm15, %v1104_v30, %v3724_v32  ;;  %v4438_v30 = vld [vmem:[%s6195_s0] sm:$0xff] }
 0x3c6   :  { %v4409_v42 = vpop.eup %4408  ;;  %v1183_v6 = vmax.f32 %v1182_v60, %v5953_v35  ;;  %v1120_v5 = vmax.f32 %v1118_v47, %v1119_v63  ;;  %v1193_v23 = vmax.f32 %v1192_v4, %v1132_v0  ;;  %3733 = vrot.lane.b32.xlu0 %v3725_v16, %s4491_s9  ;;  %v1112_v11 = vrot.slane %v1111_v46, 1  ;;  %v6258_v0 = vld [vmem:[#allocation24_spill] sm:$0xff]  ;;  %v6260_v60 = vld [vmem:[#allocation25_spill] sm:$0xff]  ;;  %v641_v28 = vpop.f32.mrf.mxu0 }
 0x3c7   :  { %v1145_v52 = vmax.f32 %v1143_v27, %v1144_v49  ;;  %v6083_v33 = vsel %vm1032_vm13, %v1027_v56, -inf  ;;  %v1026_v48 = vmul.f32 %v4409_v42, %v621_v13  ;;  %v1137_v62 = vrot.slane %v1136_v12, 2 }
 0x3c8   :  { %v4411_v1 = vpop.eup %4410  ;;  %v1129_v59 = vmax.f32 %v1127_v9, %v1128_v39  ;;  %v6087_v55 = vsel %vm1032_vm13, %v1029_v58, -inf  ;;  %v1121_v36 = vrot.slane %v1120_v5, 1  ;;  %v1194_v61 = vmax.f32 %v1193_v23, %v1141_v57 }
 0x3c9   :  { %v1150_v45 = vsel %vm1032_vm13, %v1026_v48, -inf  ;;  %v1028_v35 = vmul.f32 %v4411_v1, %v631_v24  ;;  %v1146_v7 = vrot.slane %v1145_v52, 2  ;;  %v1184_v22 = vmax.f32 %v6259_v54, %v6258_v0 }
 0x3ca   :  { %v1152_v19 = vmax.f32 %v1150_v45, %v6083_v33  ;;  %3755 = vrot.lane.b32.xlu0 %v1183_v6, %s4491_s9  ;;  %v1138_v47 = vmax.f32 %v1136_v12, %v1137_v62  ;;  %v1113_v20 = vmax.f32 %v1111_v46, %v1112_v11  ;;  %v1130_v14 = vrot.slane %v1129_v59, 1  ;;  %v6262_v11 = vld [vmem:[#allocation10_spill] sm:$0xff] }
 0x3cb   :  { %v1159_v21 = vsel %vm1032_vm13, %v1028_v35, -inf  ;;  %v1122_v50 = vmax.f32 %v1120_v5, %v1121_v36  ;;  %v1195_v10 = vmax.f32 %v1194_v61, %v1150_v45  ;;  %v3211_v57 = vrot.slane %v4438_v30, 1  ;;  %v6261_v5 = vld [vmem:[#allocation26_spill] sm:$0xff] }
 0x3cc   :  { %v1153_v34 = vrot.slane %v1152_v19, 4  ;;  %v1161_v29 = vmax.f32 %v1159_v21, %v6087_v55  ;;  %v1147_v51 = vmax.f32 %v1145_v52, %v1146_v7  ;;  %v1185_v63 = vmax.f32 %v1184_v22, %v6260_v60 }
 0x3cd   :  { %v1139_v4 = vrot.slane %v1138_v47, 1  ;;  %v1198_v32 = vmax.f32 %v6013_v2, %v6038_v18  ;;  %v1131_v31 = vmax.f32 %v1129_v59, %v1130_v14  ;;  %v3726_v12 = vsel %vm1606_vm9, %v1122_v50, %v1113_v20 }
 0x3ce   :  { %v1154_v9 = vmax.f32 %v1152_v19, %v1153_v34  ;;  %v1162_v13 = vrot.slane %v1161_v29, 4  ;;  %v1196_v42 = vmax.f32 %v1195_v10, %v1159_v21  ;;  %v3215_v56 = vsel %vm1205_vm0, %v4438_v30, %v3211_v57  ;;  %v6263_v19 = vld [vmem:[#allocation28_spill] sm:$0xff]  ;;  %v4439_v21 = vld [vmem:[%s6195_s0 + $0x8] sm:$0xff] }
 0x3cf   :  { %v1148_v58 = vrot.slane %v1147_v51, 1  ;;  %v1186_v23 = vmax.f32 %v1185_v63, %v6261_v5  ;;  %v1140_v1 = vmax.f32 %v1138_v47, %v1139_v4  ;;  %v1199_v2 = vmax.f32 %v1198_v32, %v6052_v26  ;;  %v4440_v32 = vld [vmem:[%s6196_s1 + $0x10] sm:$0xff] }
 0x3d0   :  { %v4413_v53 = vpop.eup %4412  ;;  %v1155_v27 = vrot.slane %v1154_v9, 2  ;;  %v1163_v41 = vmax.f32 %v1161_v29, %v1162_v13  ;;  %v3727_v18 = vsel %vm1607_vm11, %v1131_v31, %v3726_v12  ;;  %v3220_v62 = vrot.slane %v3215_v56, %v6262_v11 }
 0x3d1   :  { %v1031_v46 = vmul.f32 %v4413_v53, %v4105_v37  ;;  %v1149_v35 = vmax.f32 %v1147_v51, %v1148_v58  ;;  %v3728_v61 = vsel %vm1609_vm1, %v1140_v1, %v3727_v18  ;;  %v1187_v7 = vmax.f32 %v1186_v23, %v6263_v19  ;;  %v6264_v19 = vld [vmem:[#allocation15_spill] sm:$0xff] }
 0x3d2   :  { %v4415_v39 = vpop.eup %4414  ;;  %v1156_v49 = vmax.f32 %v1154_v9, %v1155_v27  ;;  %v1164_v44 = vrot.slane %v1163_v41, 2  ;;  %v1200_v26 = vmax.f32 %v1199_v2, %v6060_v43  ;;  %v3212_v0 = vrot.slane %v4439_v21, 1 }
 0x3d3   :  { %v6104_v16 = vsel %vm1032_vm13, %v1031_v46, -inf  ;;  %v1030_v6 = vmul.f32 %v4415_v39, %v641_v28  ;;  %v3253_v22 = vmul.f32 %v5744_v8, %v3220_v62  ;;  %v3254_v47 = vmul.f32 %v5732_v38, %v3220_v62 }
 0x3d4   :  { %v1165_v52 = vmax.f32 %v1163_v41, %v1164_v44  ;;  %v1157_v24 = vrot.slane %v1156_v49, 1  ;;  %v3729_v20 = vsel %vm1611_vm3, %v1149_v35, %v3728_v61  ;;  %v1188_v43 = vmax.f32 %v1187_v7, %v5837_v40 }
 0x3d5   :  { %v1168_v48 = vsel %vm1032_vm13, %v1030_v6, -inf  ;;  %v3216_v10 = vsel %vm1205_vm0, %v4439_v21, %v3212_v0  ;;  %v1201_v13 = vmax.f32 %v1200_v26, %v6068_v15  ;;  %v6265_v0 = vld [vmem:[#allocation16_spill] sm:$0xff] }
 0x3d6   :  { %v1170_v59 = vmax.f32 %v1168_v48, %v6104_v16  ;;  %v1197_v45 = vmax.f32 %v1196_v42, %v1168_v48  ;;  %v1166_v54 = vrot.slane %v1165_v52, 1  ;;  %v1158_v34 = vmax.f32 %v1156_v49, %v1157_v24 }
 0x3d7   :  { %v1189_v60 = vmax.f32 %v1188_v43, %v5848_v25  ;;  %v3224_v63 = vrot.slane %v3216_v10, %v6262_v11  ;;  %v1202_v40 = vmax.f32 %v1201_v13, %v6083_v33  ;;  %v4441_v25 = vld [vmem:[%s6196_s1 + $0x18] sm:$0xff]  ;;  %v3281_v42 = vmul.f32 %v3220_v62, %v3220_v62  ;;  %s4492_s1 = smov [#allocation2]  }
 0x3d8   :  { %v1171_v36 = vrot.slane %v1170_v59, 4  ;;  %3759 = vrot.lane.b32.xlu0 %v1197_v45, %s4491_s9  ;;  %v1167_v30 = vmax.f32 %v1165_v52, %v1166_v54  ;;  %v3730_v51 = vsel %vm1613_vm6, %v1158_v34, %v3729_v20  ;;  %s3802_s3 = sshll.u32 %s4492_s1, 4  ;;  %s3803_s3 = int_to_ptr.vmem [resolvable:$true] %s3802_s3 }
 0x3d9   :  { %v1190_v28 = vmax.f32 %v1189_v60, %v5876_v3  ;;  %v3255_v31 = vmul.f32 %v4440_v32, %v3224_v63  ;;  %v3256_v46 = vmul.f32 %v4441_v25, %v3224_v63  ;;  %v1203_v33 = vmax.f32 %v1202_v40, %v6087_v55  ;;  %v6267_v32 = vld [vmem:[#allocation18_spill] sm:$0xff]  ;;  %s4442_s28 = scalar_lea.vmem %s3803_s3, 256  ;;  %p4447_p1 = scmp.lt.s32.totalorder %s3803_s3, %s3803_s3 }
 0x3da   :  { %v1172_v29 = vmax.f32 %v1170_v59, %v1171_v36  ;;  %v3731_v4 = vsel %vm1615_vm14, %v1167_v30, %v3730_v51  ;;  %v3282_v1 = vmul.f32 %v3224_v63, %v3224_v63  ;;  %p4443_p0 = scmp.ne.s32.totalorder %s3803_s3, %s4442_s28  ;;  %p4448_p2 = scmp.lt.s32.totalorder %s4442_s28, %s4442_s28 }
 0x3db   :  { %v1204_v58 = vmax.f32 %v1203_v33, %v6104_v16 }
 0x3dc   :  { %v4288_v37 = vpop.permute.xlu0 %4287  ;;  %v1173_v9 = vrot.slane %v1172_v29, 2  ;;  %p4449_p3 = por %p4448_p2, %p4447_p1 }
 0x3dd   :  { %v4290_v14 = vunpack.i.h.bf16 %v4288_v37  ;;  %v4289_v50 = vunpack.i.l.bf16 %v4288_v37 }
 0x3de   :  { %v1174_v38 = vmax.f32 %v1172_v29, %v1173_v9  ;;  %p4450_p4 = pnand %p4449_p3, %p4443_p0 }
 0x3df   :  { %v3277_v57 = vsel %vm280_vm5, %v3253_v22, %v4289_v50  ;;  %v3278_v8 = vsel %vm280_vm5, %v3254_v47, %v4290_v14 }
 0x3e0   :  { %4254 = vmatprep.mubr.f32.mxu0 %v3277_v57  ;;  %v1175_v53 = vrot.slane %v1174_v38, 1  ;;  %v4298_v27 = vpop.permute.xlu0 %4297 }
 0x3e1   :  { %4255 = vmatmul.mubr.f32.gmra.mxu0 %v3278_v8  ;;  %v4299_v12 = vunpack.i.l.bf16 %v4298_v27  ;;  %v4300_v6 = vunpack.i.h.bf16 %v4298_v27 }
 0x3e2   :  { %v1176_v15 = vmax.f32 %v1174_v38, %v1175_v53 }
 0x3e3   :  { %v3303_v55 = vsel %vm280_vm5, %v3281_v42, %v4299_v12  ;;  %v3304_v18 = vsel %vm280_vm5, %v3281_v42, %v4300_v6  ;;  %v6268_v12 = vld [vmem:[#allocation19_spill] sm:$0xff] }
 0x3e4   :  { %v3732_v41 = vsel %vm1617_vm15, %v1176_v15, %v3731_v4  ;;  %v6266_v4 = vld [vmem:[#allocation17_spill] sm:$0xff] }
 0x3e5   :  { %3735 = vrot.lane.b32.xlu1 %v3732_v41, %s4491_s9 }
 0x3e7   :  { %v4293_v39 = vpop.permute.xlu1 %4292 }
 0x3e8   :  { %v4295_v49 = vunpack.i.h.bf16 %v4293_v39  ;;  %v4294_v44 = vunpack.i.l.bf16 %v4293_v39 }
 0x3e9   :  { %3757 = vrot.lane.b32.xlu1 %v1190_v28, %s4491_s9 }
 0x3ea   :  { %v3279_v3 = vsel %vm280_vm5, %v3255_v31, %v4294_v44  ;;  %v3280_v56 = vsel %vm280_vm5, %v3256_v46, %v4295_v49 }
 0x3eb   :  { %v4303_v5 = vpop.permute.xlu1 %4302  ;;  %4257 = vmatprep.mubr.f32.mxu0 %v3279_v3 }
 0x3ec   :  { %v4304_v23 = vunpack.i.l.bf16 %v4303_v5  ;;  %4258 = vmatmul.mubr.f32.gmra.mxu0 %v3280_v56  ;;  %v4305_v2 = vunpack.i.h.bf16 %v4303_v5 }
 0x3ed   :  { %4260 = vmatprep.mubr.f32.mxu0 %v3303_v55  ;;  %3761 = vrot.lane.b32.xlu1 %v1204_v58, %s4491_s9 }
 0x3ee   :  { %v3305_v52 = vsel %vm280_vm5, %v3282_v1, %v4304_v23  ;;  %v3306_v16 = vsel %vm280_vm5, %v3282_v1, %v4305_v2 }
 0x3f0   :  { %4261 = vmatmul.mubr.f32.gmra.mxu0 %v3304_v18 }
 0x3f1   :  { %4263 = vmatprep.mubr.f32.mxu0 %v3305_v52 }
 0x3f4   :  { %4264 = vmatmul.mubr.f32.gmra.mxu0 %v3306_v16 }
 0x438   :  { %v3734_v6 = vpop.permute.xlu0 %3733 }
 0x43c   :  { %v3756_v1 = vpop.permute.xlu0 %3755 }
 0x457   :  { %v3736_v58 = vpop.permute.xlu1 %3735 }
 0x45b   :  { %v3758_v5 = vpop.permute.xlu1 %3757 }
 0x45d   :  { %v4250_v48 = vpop.f32.mrf.mxu0 }
 0x45f   :  { %v3620_v11 = vpop.f32.mrf.mxu0 }
 0x461   :  { %v4253_v24 = vpop.f32.mrf.mxu0 }
 0x463   :  { %v3630_v36 = vpop.f32.mrf.mxu0 }
 0x467   :  { %v4200_v62 = vpop.f32.mrf.mxu1 }
 0x468   :  { %v3626_v47 = vadd.f32 %v4250_v48, %v4200_v62  ;;  %v3762_v62 = vpop.permute.xlu1 %3761 }
 0x469   :  { %v3495_v59 = vpop.f32.mrf.mxu1 }
 0x46a   :  { %v3621_v29 = vadd.f32 %v3620_v11, %v3495_v59 }
 0x46b   :  { %v4203_v45 = vpop.f32.mrf.mxu1 }
 0x46c   :  { %v3636_v35 = vadd.f32 %v4253_v24, %v4203_v45  ;;  %v3760_v45 = vpop.permute.xlu0 %3759 }
 0x46d   :  { %v3505_v61 = vpop.f32.mrf.mxu1 }
 0x46e   :  { %v3680_v7 = vmul.f32 %v6264_v19, %v3636_v35  ;;  %v3631_v26 = vadd.f32 %v3630_v36, %v3505_v61 }
 0x46f   :  { %v4206_v50 = vpop.f32.mrf.mxu1 }
 0x470   :  { %v3682_v21 = vmax.f32 %v3680_v7, 1e-16  ;;  %v3679_v54 = vmul.f32 %v3631_v26, %v6265_v0 }
 0x471   :  { %v3515_v9 = vpop.f32.mrf.mxu1 }
 0x472   :  { %4416 = vrsqrt.f32 %v3682_v21  ;;  %v3681_v22 = vmax.f32 %v3679_v54, 1e-16 }
 0x473   :  { %v4209_v43 = vpop.f32.mrf.mxu1 }
 0x474   :  { %4418 = vrsqrt.f32 %v3681_v22 }
 0x475   :  { %v3525_v10 = vpop.f32.mrf.mxu1 }
 0x477   :  { %v4212_v30 = vpop.f32.mrf.mxu1 }
 0x479   :  { %v3535_v38 = vpop.f32.mrf.mxu1 }
 0x47b   :  { %v4215_v63 = vpop.f32.mrf.mxu1 }
 0x47d   :  { %v3545_v46 = vpop.f32.mrf.mxu1 }
 0x47f   :  { %v4417_v34 = vpop.eup %4416 }
 0x480   :  { %v6153_v37 = vmul.f32 %v4417_v34, %v3626_v47 }
 0x481   :  { %v4419_v20 = vpop.eup %4418 }
 0x482   :  { %3743 = vrot.lane.b32.xlu1 %v6153_v37, %s4490_s2  ;;  %v6157_v14 = vmul.f32 %v4419_v20, %v3621_v29  ;;  %v3748_v19 = vsel %vm1205_vm0, %v6153_v37, %v3736_v58 }
 0x484   :  { %3741 = vrot.lane.b32.xlu0 %v6157_v14, %s4490_s2  ;;  %v3747_v21 = vsel %vm1205_vm0, %v6157_v14, %v3734_v6 }
 0x4a1   :  { %v4256_v13 = vpop.f32.mrf.mxu0 }
 0x4a2   :  { %v3646_v23 = vadd.f32 %v4256_v13, %v4206_v50 }
 0x4a3   :  { %v3640_v57 = vpop.f32.mrf.mxu0 }
 0x4a4   :  { %v3641_v2 = vadd.f32 %v3640_v57, %v3515_v9 }
 0x4ac   :  { %v4259_v8 = vpop.f32.mrf.mxu0 }
 0x4ad   :  { %v3656_v16 = vadd.f32 %v4259_v8, %v4209_v43 }
 0x4ae   :  { %v3650_v51 = vpop.f32.mrf.mxu0 }
 0x4af   :  { %v3651_v24 = vadd.f32 %v3650_v51, %v3525_v10 }
 0x4b0   :  { %v4262_v53 = vpop.f32.mrf.mxu0 }
 0x4b1   :  { %v3666_v60 = vadd.f32 %v4262_v53, %v4212_v30 }
 0x4b2   :  { %v3660_v40 = vpop.f32.mrf.mxu0 }
 0x4b3   :  { %v3688_v15 = vmul.f32 %v6266_v4, %v3666_v60  ;;  %v3661_v27 = vadd.f32 %v3660_v40, %v3535_v38 }
 0x4b4   :  { %v4265_v41 = vpop.f32.mrf.mxu0 }
 0x4b5   :  { %v3692_v28 = vmax.f32 %v3688_v15, 1e-16  ;;  %v3687_v31 = vmul.f32 %v3661_v27, %v6267_v32  ;;  %v3676_v25 = vadd.f32 %v4265_v41, %v4215_v63 }
 0x4b6   :  { %v3670_v33 = vpop.f32.mrf.mxu0 }
 0x4b7   :  { %4420 = vrsqrt.f32 %v3692_v28  ;;  %v3691_v39 = vmax.f32 %v3687_v31, 1e-16  ;;  %v3690_v49 = vmul.f32 %v6268_v12, %v3676_v25  ;;  %v3671_v44 = vadd.f32 %v3670_v33, %v3545_v46 }
 0x4b9   :  { %4422 = vrsqrt.f32 %v3691_v39  ;;  %v3694_v42 = vmax.f32 %v3690_v49, 1e-16  ;;  %v3689_v3 = vmul.f32 %v3671_v44, %v5519_v17 }
 0x4bb   :  { %4424 = vrsqrt.f32 %v3694_v42  ;;  %v3693_v56 = vmax.f32 %v3689_v3, 1e-16 }
 0x4bd   :  { %4426 = vrsqrt.f32 %v3693_v56 }
 0x4c4   :  { %v4421_v55 = vpop.eup %4420 }
 0x4c5   :  { %v3700_v18 = vmul.f32 %v4421_v55, %v3646_v23 }
 0x4c6   :  { %v4423_v52 = vpop.eup %4422 }
 0x4c7   :  { %3773 = vrot.lane.b32.xlu1 %v3700_v18, %s4490_s2  ;;  %v3699_v48 = vmul.f32 %v4423_v52, %v3641_v2 }
 0x4c8   :  { %v4425_v11 = vpop.eup %4424 }
 0x4c9   :  { %3771 = vrot.lane.b32.xlu0 %v3699_v48, %s4490_s2  ;;  %v3702_v17 = vmul.f32 %v4425_v11, %v3656_v16 }
 0x4ca   :  { %v4427_v59 = vpop.eup %4426 }
 0x4cb   :  { %v3786_v35 = vsel %vm1205_vm0, %v3702_v17, %v3762_v62  ;;  %3777 = vrot.lane.b32.xlu1 %v3702_v17, %s4490_s2  ;;  %v3701_v36 = vmul.f32 %v4427_v59, %v3651_v24 }
 0x4cd   :  { %v3785_v61 = vsel %vm1205_vm0, %v3701_v36, %v3760_v45  ;;  %3775 = vrot.lane.b32.xlu0 %v3701_v36, %s4490_s2 }
 0x4f4   :  { %v3744_v7 = vpop.permute.xlu1 %3743 }
 0x4f5   :  { %v3750_v26 = vsel %vm280_vm5, %v3748_v19, %v3744_v7 }
 0x4f6   :  { %3792 = vst [vmem:[#allocation2 + $0x8] sm:$0xff] %v3750_v26  ;;  %v3742_v0 = vpop.permute.xlu0 %3741 }
 0x4f7   :  { %v3749_v54 = vsel %vm280_vm5, %v3747_v21, %v3742_v0 }
 0x4f8   :  { %3791 = vst [vmem:[#allocation2] sm:$0xff] %v3749_v54 }
 0x4f9   :  { %4453 = shalt.err (!%p4450_p4)
}
 0x4fa   :  { %s4493_s2 = smov 128   ;;  %s4494_s29 = smov 8   ;;  %v3784_v22 = vsel %vm1205_vm0, %v3700_v18, %v3758_v5  ;;  %v3783_v29 = vsel %vm1205_vm0, %v3699_v48, %v3756_v1 }
 0x4fb   :  { %3808 = dma.vmem_to_hbm [thread:$0]  %s3803_s3, 256, %s6200_s5, [#allocation3], %s4493_s2, %s4493_s2, %s4494_s29  }
 0x4fc   :  { %s4495_s8 = smov [#allocation4]  }
 0x4fd   :  { %s3814_s9 = sshll.u32 %s4495_s8, 4  ;;  %s3815_s9 = int_to_ptr.vmem [resolvable:$true] %s3814_s9 }
 0x4fe   :  { %s4462_s5 = scalar_lea.vmem %s3815_s9, 512  ;;  %p4467_p6 = scmp.lt.s32.totalorder %s3815_s9, %s3815_s9 }
 0x4ff   :  { %p4463_p5 = scmp.ne.s32.totalorder %s3815_s9, %s4462_s5  ;;  %p4468_p7 = scmp.lt.s32.totalorder %s4462_s5, %s4462_s5 }
 0x501   :  { %p4469_p8 = por %p4468_p7, %p4467_p6 }
 0x503   :  { %p4470_p9 = pnand %p4469_p8, %p4463_p5 }
 0x539   :  { %v3774_v47 = vpop.permute.xlu1 %3773 }
 0x53a   :  { %v3788_v34 = vsel %vm280_vm5, %v3784_v22, %v3774_v47 }
 0x53b   :  { %3794 = vst [vmem:[#allocation4 + $0x8] sm:$0xff] %v3788_v34  ;;  %v3772_v37 = vpop.permute.xlu0 %3771 }
 0x53c   :  { %v3787_v20 = vsel %vm280_vm5, %v3783_v29, %v3772_v37 }
 0x53d   :  { %3793 = vst [vmem:[#allocation4] sm:$0xff] %v3787_v20  ;;  %v3778_v14 = vpop.permute.xlu1 %3777 }
 0x53e   :  { %v3790_v50 = vsel %vm280_vm5, %v3786_v35, %v3778_v14 }
 0x53f   :  { %3796 = vst [vmem:[#allocation4 + $0x18] sm:$0xff] %v3790_v50  ;;  %v3776_v9 = vpop.permute.xlu0 %3775 }
 0x540   :  { %v3789_v43 = vsel %vm280_vm5, %v3785_v61, %v3776_v9 }
 0x541   :  { %3795 = vst [vmem:[#allocation4 + $0x10] sm:$0xff] %v3789_v43 }
 0x542   :  { %4473 = shalt.err (!%p4470_p9)
}
 0x543   :  { %3820 = dma.vmem_to_hbm [thread:$0]  %s3815_s9, 512, %s6201_s6, [#allocation5], %s4493_s2, %s4493_s2, %s4494_s29  }
 0x544   :  { %4482 = dma.done.wait [#allocation3], 256  }
 0x545   :  { %4483 = vsyncadd [#allocation3], 4294967040 }
 0x546   :  { %4484 = dma.done.wait [#allocation5], 512  }
 0x547   :  { %4485 = vsyncadd [#allocation5], 4294966784 }
 0x548   :  { %3827 = vsyncpa [#allocation3], 1 }
 0x549   :  { %3828 = vsyncpa [#allocation5], 1 }

</bundles_post_ra>
